<compile_context>
chip_gen: v7x
topology: tpu7x:2x2x1
jax: 0.10.0
libtpu: 0.0.40
codegen_flags: <defaults>
</compile_context>

<pallas_src>
import functools

import jax
import jax.numpy as jnp
from jax.experimental import pallas as pl
from jax.experimental.pallas import tpu as pltpu

_EPS = 1e-5


# ------------------------------ Pallas kernels ------------------------------

def _stem_front_kernel(xp00, xp01, xp10, xp11, w1, s1, b1, wl0, sl0, bl0,
                       t_ref, l0_ref, *, pw, ho):
    """conv1(3x3/s2)+ReLU+BN fused with left0(1x1)+ReLU+BN, one sample/step.

    xp* are the even/odd row/col phases of the zero-padded image flattened to
    (3, phase_h*pw).  Every 3x3/stride-2 tap is a unit-stride window of one
    phase, so the conv is 9 accumulating MXU dots with M = ho*pw on the lane
    axis (row stride pw; the trailing column of each row is garbage and is
    stripped by host-side glue).
    """
    L = ho * pw
    phases = (xp00, xp01, xp10, xp11)
    acc = None
    for kh in range(3):
        for kw in range(3):
            start = (kh // 2) * pw + (kw // 2)
            slab = phases[(kh % 2) * 2 + (kw % 2)][0, :, start:start + L]
            d = jnp.dot(w1[kh * 3 + kw], slab,
                        preferred_element_type=jnp.float32)
            acc = d if acc is None else acc + d
    t = jnp.maximum(acc, 0.0) * s1[...] + b1[...]          # conv -> ReLU -> BN
    t_ref[0] = t
    l0 = jnp.dot(wl0[...], t, preferred_element_type=jnp.float32)
    l0_ref[0] = jnp.maximum(l0, 0.0) * sl0[...] + bl0[...]


def _stem_back_kernel(l0p00, l0p01, l0p10, l0p11, tp00, tp01, tp10, tp11,
                      wl1, sl1, bl1, wf, sf, bf, out_ref, fuse_ref,
                      *, rs, ho, wo):
    """left1(3x3/s2 conv), right(3x3/s2 max-pool) and fuse(3x3/s1 conv), fused.

    l0 / t arrive as four flattened zero-/-inf-padded phases with row stride
    rs = wo+2.  Both stride-2 branches are 9 unit-stride tap windows; their
    (16, ho*rs) results are masked (the rs-wo trailing lanes of each row -> 0)
    and stored into a zero-initialised 32-channel VMEM scratch whose layout is
    exactly the zero-padded fuse input, so torch.cat([left, right]) costs
    nothing and the fuse conv is another 9 tap dots over that scratch.
    """
    L = ho * rs
    cl = sl1.shape[0]                       # 16 channels per branch
    l0ph = (l0p00, l0p01, l0p10, l0p11)
    tph = (tp00, tp01, tp10, tp11)

    l1 = None
    r = None
    for kh in range(3):
        for kw in range(3):
            start = (kh // 2) * rs + (kw // 2)
            p = (kh % 2) * 2 + (kw % 2)
            d = jnp.dot(wl1[kh * 3 + kw], l0ph[p][0, :, start:start + L],
                        preferred_element_type=jnp.float32)
            l1 = d if l1 is None else l1 + d
            tap = tph[p][0, :, start:start + L]
            r = tap if r is None else jnp.maximum(r, tap)
    l1 = jnp.maximum(l1, 0.0) * sl1[...] + bl1[...]

    # Garbage columns become the fuse conv's zero padding: mask them and drop
    # both branches into the padded scratch at lane offset rs+1 (the channel
    # concat happens for free via the scratch rows).
    col = jax.lax.broadcasted_iota(jnp.int32, (cl, L), 1) % rs
    valid = col < wo
    off = rs + 1
    fuse_ref[...] = jnp.zeros_like(fuse_ref)
    fuse_ref[0:cl, off:off + L] = jnp.where(valid, l1, 0.0)
    fuse_ref[cl:2 * cl, off:off + L] = jnp.where(valid, r, 0.0)

    acc = None
    for kh in range(3):
        for kw in range(3):
            start = kh * rs + kw
            d = jnp.dot(wf[kh * 3 + kw], fuse_ref[:, start:start + L],
                        preferred_element_type=jnp.float32)
            acc = d if acc is None else acc + d
    out_ref[0] = jnp.maximum(acc, 0.0) * sf[...] + bf[...]


# ----------------------------- host-side helpers -----------------------------

def _phase_flat(x, pad_h, pad_w, fill=0.0):
    """(N, C, H, W) -> four even/odd phases flattened to (N, C, PH*PW)."""
    n, c = x.shape[:2]
    xp = jnp.pad(x, ((0, 0), (0, 0), pad_h, pad_w), constant_values=fill)
    return [xp[:, :, a::2, b::2].reshape(n, c, -1)
            for a in (0, 1) for b in (0, 1)]


def _sample_spec(c, f):
    # One batch element per grid step; last two dims == full dims (lane-dense).
    return pl.BlockSpec((1, c, f), lambda n: (n, 0, 0))


def _bcast_spec(shape):
    # Whole (small) array visible to every grid step.
    return pl.BlockSpec(shape, lambda n: (0,) * len(shape))


# ------------------------------ forward pass ---------------------------------

def stem_block_forward(x_nchw, params):
    x = x_nchw.astype(jnp.float32)
    n, cin, h, w = x.shape
    assert cin == 3 and h % 4 == 0 and w % 4 == 0

    ho1, wo1 = h // 2, w // 2             # spatial size of t / l0
    ho2, wo2 = ho1 // 2, wo1 // 2         # spatial size of the block output

    # ---------------- call 1: conv1 (3x3/s2) + left0 (1x1) ------------------
    pw1 = wo1 + 1                         # tap row stride (1 garbage col/row)
    m1 = ho1 * pw1
    xph = _phase_flat(x, (1, 3), (1, 1))            # 4 x (n, 3, (ho1+2)*pw1)
    f1 = xph[0].shape[-1]

    w1 = jnp.transpose(params['conv']['w'], (2, 3, 0, 1)).reshape(9, 16, 3)
    s1, b1 = (v.reshape(-1, 1) for v in params['conv']['bn'])
    wl0 = params['left0']['w'].reshape(8, 16)
    sl0, bl0 = (v.reshape(-1, 1) for v in params['left0']['bn'])

    t_flat, l0_flat = pl.pallas_call(
        functools.partial(_stem_front_kernel, pw=pw1, ho=ho1),
        out_shape=(jax.ShapeDtypeStruct((n, 16, m1), jnp.float32),
                   jax.ShapeDtypeStruct((n, 8, m1), jnp.float32)),
        grid=(n,),
        in_specs=[_sample_spec(3, f1)] * 4
        + [_bcast_spec((9, 16, 3)), _bcast_spec((16, 1)), _bcast_spec((16, 1)),
           _bcast_spec((8, 16)), _bcast_spec((8, 1)), _bcast_spec((8, 1))],
        out_specs=(_sample_spec(16, m1), _sample_spec(8, m1)),
        compiler_params=pltpu.CompilerParams(dimension_semantics=("parallel",)),
    )(*xph, w1, s1, b1, wl0, sl0, bl0)

    # ---- glue: strip garbage column, re-pad, phase-decompose t and l0 ------
    t = t_flat.reshape(n, 16, ho1, pw1)[..., :wo1]
    l0 = l0_flat.reshape(n, 8, ho1, pw1)[..., :wo1]
    tph = _phase_flat(t, (1, 3), (1, 3), fill=-jnp.inf)    # max-pool padding
    l0ph = _phase_flat(l0, (1, 3), (1, 3), fill=0.0)       # conv zero padding
    rs = wo2 + 2                          # slab row stride == fuse padded width
    m2 = ho2 * rs
    f2 = tph[0].shape[-1]                 # (ho2+2) * rs

    wl1 = jnp.transpose(params['left1']['w'], (2, 3, 0, 1)).reshape(9, 16, 8)
    sl1, bl1 = (v.reshape(-1, 1) for v in params['left1']['bn'])
    wf = jnp.transpose(params['fuse']['w'], (2, 3, 0, 1)).reshape(9, 16, 32)
    sf, bf = (v.reshape(-1, 1) for v in params['fuse']['bn'])

    # Fuse scratch: zero-padded (ho2+2, rs) spatial layout + tap-read slack.
    scratch_w = -(-(2 * rs + 2 + m2) // 128) * 128

    # ------ call 2: left1 (3x3/s2) + max-pool (3x3/s2) + fuse (3x3/s1) ------
    out_flat = pl.pallas_call(
        functools.partial(_stem_back_kernel, rs=rs, ho=ho2, wo=wo2),
        out_shape=jax.ShapeDtypeStruct((n, 16, m2), jnp.float32),
        grid=(n,),
        in_specs=[_sample_spec(8, f2)] * 4 + [_sample_spec(16, f2)] * 4
        + [_bcast_spec((9, 16, 8)), _bcast_spec((16, 1)), _bcast_spec((16, 1)),
           _bcast_spec((9, 16, 32)), _bcast_spec((16, 1)), _bcast_spec((16, 1))],
        out_specs=_sample_spec(16, m2),
        scratch_shapes=[pltpu.VMEM((32, scratch_w), jnp.float32)],
        compiler_params=pltpu.CompilerParams(dimension_semantics=("parallel",)),
    )(*l0ph, *tph, wl1, sl1, bl1, wf, sf, bf)

    return out_flat.reshape(n, 16, ho2, rs)[..., :wo2]


# ------------------------------ parameter init -------------------------------

class _KeyGen:
    def __init__(self, seed):
        self._key = jax.random.PRNGKey(seed)

    def __call__(self):
        self._key, k = jax.random.split(self._key)
        return k


def _init_conv(kg, cout, cin, k):
    return 0.1 * jax.random.normal(kg(), (cout, cin, k, k), jnp.float32)


def _init_bn(kg, c):
    gamma = 1.0 + 0.1 * jax.random.normal(kg(), (c,), jnp.float32)
    beta = 0.1 * jax.random.normal(kg(), (c,), jnp.float32)
    rmean = 0.1 * jax.random.normal(kg(), (c,), jnp.float32)
    rvar = 1.0 + 0.2 * jax.random.uniform(kg(), (c,), jnp.float32)
    scale = gamma / jnp.sqrt(rvar + _EPS)
    shift = beta - rmean * scale
    return scale, shift


def _make_convlayer(kg, cin, cout, k):
    return dict(w=_init_conv(kg, cout, cin, k), bn=_init_bn(kg, cout))


def make_stem_params(seed=0):
    kg = _KeyGen(seed)
    return dict(conv=_make_convlayer(kg, 3, 16, 3),     # ConvLayer(3, 16, 3, s=2)
                left0=_make_convlayer(kg, 16, 8, 1),    # ConvLayer(16, 8, 1, p=0)
                left1=_make_convlayer(kg, 8, 16, 3),    # ConvLayer(8, 16, 3, s=2)
                fuse=_make_convlayer(kg, 32, 16, 3))    # ConvLayer(32, 16, 3)


# ------------------------- pure-JAX reference (check) ------------------------

def _ref_conv_layer(x, p, stride, pad):
    y = jax.lax.conv_general_dilated(
        x, p['w'], (stride, stride), [(pad, pad), (pad, pad)],
        dimension_numbers=('NCHW', 'OIHW', 'NCHW'))
    y = jnp.maximum(y, 0.0)                               # conv -> ReLU -> BN
    scale, shift = p['bn']
    return y * scale[None, :, None, None] + shift[None, :, None, None]


def stem_block_reference(x, params):
    t = _ref_conv_layer(x, params['conv'], 2, 1)
    l = _ref_conv_layer(t, params['left0'], 1, 0)
    l = _ref_conv_layer(l, params['left1'], 2, 1)
    r = jax.lax.reduce_window(t, -jnp.inf, jax.lax.max, (1, 1, 3, 3),
                              (1, 1, 2, 2), [(0, 0), (0, 0), (1, 1), (1, 1)])
    cat = jnp.concatenate([l, r], axis=1)
    return _ref_conv_layer(cat, params['fuse'], 1, 1)


# ----------------------------------- main ------------------------------------

if __name__ == "__main__":
    key = jax.random.PRNGKey(0)
    x = jax.random.normal(key, (2, 3, 64, 64), jnp.float32)   # NCHW, like PyTorch
    params = make_stem_params(seed=0)

    fwd = jax.jit(stem_block_forward)
    out = jax.block_until_ready(fwd(x, params))

    assert out.shape == (2, 16, 16, 16), out.shape
    assert bool(jnp.all(jnp.isfinite(out)))

    ref = jax.block_until_ready(jax.jit(stem_block_reference)(x, params))
    err = float(jnp.max(jnp.abs(out - ref)))
    tol = 1e-2 + 1e-2 * float(jnp.max(jnp.abs(ref)))
    assert err < tol, (err, tol)

    print("KERNEL_OK")
</pallas_src>

<mosaic_0001>
module attributes {stable_mosaic.version = 11 : i64} {
  func.func @_stem_front_kernel(%arg0: i32, %arg1: memref<1x3x1122xf32, #tpu.memory_space<vmem>>, %arg2: memref<1x3x1122xf32, #tpu.memory_space<vmem>>, %arg3: memref<1x3x1122xf32, #tpu.memory_space<vmem>>, %arg4: memref<1x3x1122xf32, #tpu.memory_space<vmem>>, %arg5: memref<9x16x3xf32, #tpu.memory_space<vmem>>, %arg6: memref<16x1xf32, #tpu.memory_space<vmem>>, %arg7: memref<16x1xf32, #tpu.memory_space<vmem>>, %arg8: memref<8x16xf32, #tpu.memory_space<vmem>>, %arg9: memref<8x1xf32, #tpu.memory_space<vmem>>, %arg10: memref<8x1xf32, #tpu.memory_space<vmem>>, %arg11: memref<1x16x1056xf32, #tpu.memory_space<vmem>>, %arg12: memref<1x8x1056xf32, #tpu.memory_space<vmem>>) attributes {dimension_semantics = [#tpu.dimension_semantics<parallel>], iteration_bounds = array<i64: 2>, scalar_prefetch = 0 : i64, scratch_operands = 0 : i64, tpu.core_type = #tpu.core_type<tc>, window_params = [{transform_indices = @transform_0, window_bounds = array<i64: 1, 3, 1122>}, {transform_indices = @transform_1, window_bounds = array<i64: 1, 3, 1122>}, {transform_indices = @transform_2, window_bounds = array<i64: 1, 3, 1122>}, {transform_indices = @transform_3, window_bounds = array<i64: 1, 3, 1122>}, {pipeline_mode = #tpu.pipeline_mode<synchronous>, transform_indices = @transform_4, window_bounds = array<i64: 9, 16, 3>}, {pipeline_mode = #tpu.pipeline_mode<synchronous>, transform_indices = @transform_5, window_bounds = array<i64: 16, 1>}, {pipeline_mode = #tpu.pipeline_mode<synchronous>, transform_indices = @transform_6, window_bounds = array<i64: 16, 1>}, {pipeline_mode = #tpu.pipeline_mode<synchronous>, transform_indices = @transform_7, window_bounds = array<i64: 8, 16>}, {pipeline_mode = #tpu.pipeline_mode<synchronous>, transform_indices = @transform_8, window_bounds = array<i64: 8, 1>}, {pipeline_mode = #tpu.pipeline_mode<synchronous>, transform_indices = @transform_9, window_bounds = array<i64: 8, 1>}, {transform_indices = @transform_10, window_bounds = array<i64: 1, 16, 1056>}, {transform_indices = @transform_11, window_bounds = array<i64: 1, 8, 1056>}]} {
    %c0 = arith.constant 0 : index
    %c0_0 = arith.constant 0 : index
    %c0_1 = arith.constant 0 : index
    %0 = vector.load %arg1[%c0, %c0_0, %c0_1] : memref<1x3x1122xf32, #tpu.memory_space<vmem>>, vector<1x3x1056xf32>
    %1 = vector.shape_cast %0 : vector<1x3x1056xf32> to vector<3x1056xf32>
    %c0_2 = arith.constant 0 : index
    %c0_3 = arith.constant 0 : index
    %c0_4 = arith.constant 0 : index
    %2 = vector.load %arg5[%c0_2, %c0_3, %c0_4] : memref<9x16x3xf32, #tpu.memory_space<vmem>>, vector<1x16x3xf32>
    %3 = vector.shape_cast %2 : vector<1x16x3xf32> to vector<16x3xf32>
    %cst = arith.constant dense<0.000000e+00> : vector<16x1056xf32>
    %4 = tpu.matmul %3, %1, %cst {dimension_numbers = #tpu.dot_dimension_numbers<[1], [0], [0], [1], [0, 0, 1, 1], [], []>} : vector<16x3xf32>, vector<3x1056xf32>, vector<16x1056xf32> -> vector<16x1056xf32>
    %c0_5 = arith.constant 0 : index
    %c0_6 = arith.constant 0 : index
    %c0_7 = arith.constant 0 : index
    %5 = vector.load %arg2[%c0_5, %c0_6, %c0_7] : memref<1x3x1122xf32, #tpu.memory_space<vmem>>, vector<1x3x1056xf32>
    %6 = vector.shape_cast %5 : vector<1x3x1056xf32> to vector<3x1056xf32>
    %c1 = arith.constant 1 : index
    %c0_8 = arith.constant 0 : index
    %c0_9 = arith.constant 0 : index
    %7 = vector.load %arg5[%c1, %c0_8, %c0_9] : memref<9x16x3xf32, #tpu.memory_space<vmem>>, vector<1x16x3xf32>
    %8 = vector.shape_cast %7 : vector<1x16x3xf32> to vector<16x3xf32>
    %cst_10 = arith.constant dense<0.000000e+00> : vector<16x1056xf32>
    %9 = tpu.matmul %8, %6, %cst_10 {dimension_numbers = #tpu.dot_dimension_numbers<[1], [0], [0], [1], [0, 0, 1, 1], [], []>} : vector<16x3xf32>, vector<3x1056xf32>, vector<16x1056xf32> -> vector<16x1056xf32>
    %10 = arith.addf %4, %9 : vector<16x1056xf32>
    %c0_11 = arith.constant 0 : index
    %c0_12 = arith.constant 0 : index
    %c1_13 = arith.constant 1 : index
    %11 = vector.load %arg1[%c0_11, %c0_12, %c1_13] : memref<1x3x1122xf32, #tpu.memory_space<vmem>>, vector<1x3x1056xf32>
    %12 = vector.shape_cast %11 : vector<1x3x1056xf32> to vector<3x1056xf32>
    %c2 = arith.constant 2 : index
    %c0_14 = arith.constant 0 : index
    %c0_15 = arith.constant 0 : index
    %13 = vector.load %arg5[%c2, %c0_14, %c0_15] : memref<9x16x3xf32, #tpu.memory_space<vmem>>, vector<1x16x3xf32>
    %14 = vector.shape_cast %13 : vector<1x16x3xf32> to vector<16x3xf32>
    %cst_16 = arith.constant dense<0.000000e+00> : vector<16x1056xf32>
    %15 = tpu.matmul %14, %12, %cst_16 {dimension_numbers = #tpu.dot_dimension_numbers<[1], [0], [0], [1], [0, 0, 1, 1], [], []>} : vector<16x3xf32>, vector<3x1056xf32>, vector<16x1056xf32> -> vector<16x1056xf32>
    %16 = arith.addf %10, %15 : vector<16x1056xf32>
    %c0_17 = arith.constant 0 : index
    %c0_18 = arith.constant 0 : index
    %c0_19 = arith.constant 0 : index
    %17 = vector.load %arg3[%c0_17, %c0_18, %c0_19] : memref<1x3x1122xf32, #tpu.memory_space<vmem>>, vector<1x3x1056xf32>
    %18 = vector.shape_cast %17 : vector<1x3x1056xf32> to vector<3x1056xf32>
    %c3 = arith.constant 3 : index
    %c0_20 = arith.constant 0 : index
    %c0_21 = arith.constant 0 : index
    %19 = vector.load %arg5[%c3, %c0_20, %c0_21] : memref<9x16x3xf32, #tpu.memory_space<vmem>>, vector<1x16x3xf32>
    %20 = vector.shape_cast %19 : vector<1x16x3xf32> to vector<16x3xf32>
    %cst_22 = arith.constant dense<0.000000e+00> : vector<16x1056xf32>
    %21 = tpu.matmul %20, %18, %cst_22 {dimension_numbers = #tpu.dot_dimension_numbers<[1], [0], [0], [1], [0, 0, 1, 1], [], []>} : vector<16x3xf32>, vector<3x1056xf32>, vector<16x1056xf32> -> vector<16x1056xf32>
    %22 = arith.addf %16, %21 : vector<16x1056xf32>
    %c0_23 = arith.constant 0 : index
    %c0_24 = arith.constant 0 : index
    %c0_25 = arith.constant 0 : index
    %23 = vector.load %arg4[%c0_23, %c0_24, %c0_25] : memref<1x3x1122xf32, #tpu.memory_space<vmem>>, vector<1x3x1056xf32>
    %24 = vector.shape_cast %23 : vector<1x3x1056xf32> to vector<3x1056xf32>
    %c4 = arith.constant 4 : index
    %c0_26 = arith.constant 0 : index
    %c0_27 = arith.constant 0 : index
    %25 = vector.load %arg5[%c4, %c0_26, %c0_27] : memref<9x16x3xf32, #tpu.memory_space<vmem>>, vector<1x16x3xf32>
    %26 = vector.shape_cast %25 : vector<1x16x3xf32> to vector<16x3xf32>
    %cst_28 = arith.constant dense<0.000000e+00> : vector<16x1056xf32>
    %27 = tpu.matmul %26, %24, %cst_28 {dimension_numbers = #tpu.dot_dimension_numbers<[1], [0], [0], [1], [0, 0, 1, 1], [], []>} : vector<16x3xf32>, vector<3x1056xf32>, vector<16x1056xf32> -> vector<16x1056xf32>
    %28 = arith.addf %22, %27 : vector<16x1056xf32>
    %c0_29 = arith.constant 0 : index
    %c0_30 = arith.constant 0 : index
    %c1_31 = arith.constant 1 : index
    %29 = vector.load %arg3[%c0_29, %c0_30, %c1_31] : memref<1x3x1122xf32, #tpu.memory_space<vmem>>, vector<1x3x1056xf32>
    %30 = vector.shape_cast %29 : vector<1x3x1056xf32> to vector<3x1056xf32>
    %c5 = arith.constant 5 : index
    %c0_32 = arith.constant 0 : index
    %c0_33 = arith.constant 0 : index
    %31 = vector.load %arg5[%c5, %c0_32, %c0_33] : memref<9x16x3xf32, #tpu.memory_space<vmem>>, vector<1x16x3xf32>
    %32 = vector.shape_cast %31 : vector<1x16x3xf32> to vector<16x3xf32>
    %cst_34 = arith.constant dense<0.000000e+00> : vector<16x1056xf32>
    %33 = tpu.matmul %32, %30, %cst_34 {dimension_numbers = #tpu.dot_dimension_numbers<[1], [0], [0], [1], [0, 0, 1, 1], [], []>} : vector<16x3xf32>, vector<3x1056xf32>, vector<16x1056xf32> -> vector<16x1056xf32>
    %34 = arith.addf %28, %33 : vector<16x1056xf32>
    %c0_35 = arith.constant 0 : index
    %c0_36 = arith.constant 0 : index
    %c33 = arith.constant 33 : index
    %35 = vector.load %arg1[%c0_35, %c0_36, %c33] : memref<1x3x1122xf32, #tpu.memory_space<vmem>>, vector<1x3x1056xf32>
    %36 = vector.shape_cast %35 : vector<1x3x1056xf32> to vector<3x1056xf32>
    %c6 = arith.constant 6 : index
    %c0_37 = arith.constant 0 : index
    %c0_38 = arith.constant 0 : index
    %37 = vector.load %arg5[%c6, %c0_37, %c0_38] : memref<9x16x3xf32, #tpu.memory_space<vmem>>, vector<1x16x3xf32>
    %38 = vector.shape_cast %37 : vector<1x16x3xf32> to vector<16x3xf32>
    %cst_39 = arith.constant dense<0.000000e+00> : vector<16x1056xf32>
    %39 = tpu.matmul %38, %36, %cst_39 {dimension_numbers = #tpu.dot_dimension_numbers<[1], [0], [0], [1], [0, 0, 1, 1], [], []>} : vector<16x3xf32>, vector<3x1056xf32>, vector<16x1056xf32> -> vector<16x1056xf32>
    %40 = arith.addf %34, %39 : vector<16x1056xf32>
    %c0_40 = arith.constant 0 : index
    %c0_41 = arith.constant 0 : index
    %c33_42 = arith.constant 33 : index
    %41 = vector.load %arg2[%c0_40, %c0_41, %c33_42] : memref<1x3x1122xf32, #tpu.memory_space<vmem>>, vector<1x3x1056xf32>
    %42 = vector.shape_cast %41 : vector<1x3x1056xf32> to vector<3x1056xf32>
    %c7 = arith.constant 7 : index
    %c0_43 = arith.constant 0 : index
    %c0_44 = arith.constant 0 : index
    %43 = vector.load %arg5[%c7, %c0_43, %c0_44] : memref<9x16x3xf32, #tpu.memory_space<vmem>>, vector<1x16x3xf32>
    %44 = vector.shape_cast %43 : vector<1x16x3xf32> to vector<16x3xf32>
    %cst_45 = arith.constant dense<0.000000e+00> : vector<16x1056xf32>
    %45 = tpu.matmul %44, %42, %cst_45 {dimension_numbers = #tpu.dot_dimension_numbers<[1], [0], [0], [1], [0, 0, 1, 1], [], []>} : vector<16x3xf32>, vector<3x1056xf32>, vector<16x1056xf32> -> vector<16x1056xf32>
    %46 = arith.addf %40, %45 : vector<16x1056xf32>
    %c0_46 = arith.constant 0 : index
    %c0_47 = arith.constant 0 : index
    %c34 = arith.constant 34 : index
    %47 = vector.load %arg1[%c0_46, %c0_47, %c34] : memref<1x3x1122xf32, #tpu.memory_space<vmem>>, vector<1x3x1056xf32>
    %48 = vector.shape_cast %47 : vector<1x3x1056xf32> to vector<3x1056xf32>
    %c8 = arith.constant 8 : index
    %c0_48 = arith.constant 0 : index
    %c0_49 = arith.constant 0 : index
    %49 = vector.load %arg5[%c8, %c0_48, %c0_49] : memref<9x16x3xf32, #tpu.memory_space<vmem>>, vector<1x16x3xf32>
    %50 = vector.shape_cast %49 : vector<1x16x3xf32> to vector<16x3xf32>
    %cst_50 = arith.constant dense<0.000000e+00> : vector<16x1056xf32>
    %51 = tpu.matmul %50, %48, %cst_50 {dimension_numbers = #tpu.dot_dimension_numbers<[1], [0], [0], [1], [0, 0, 1, 1], [], []>} : vector<16x3xf32>, vector<3x1056xf32>, vector<16x1056xf32> -> vector<16x1056xf32>
    %52 = arith.addf %46, %51 : vector<16x1056xf32>
    %cst_51 = arith.constant 0.000000e+00 : f32
    %53 = vector.broadcast %cst_51 : f32 to vector<16x1056xf32>
    %54 = arith.maximumf %52, %53 : vector<16x1056xf32>
    %c0_52 = arith.constant 0 : index
    %c0_53 = arith.constant 0 : index
    %55 = vector.load %arg6[%c0_52, %c0_53] : memref<16x1xf32, #tpu.memory_space<vmem>>, vector<16x1xf32>
    %56 = vector.broadcast %55 : vector<16x1xf32> to vector<16x1056xf32>
    %57 = arith.mulf %54, %56 : vector<16x1056xf32>
    %c0_54 = arith.constant 0 : index
    %c0_55 = arith.constant 0 : index
    %58 = vector.load %arg7[%c0_54, %c0_55] : memref<16x1xf32, #tpu.memory_space<vmem>>, vector<16x1xf32>
    %59 = vector.broadcast %58 : vector<16x1xf32> to vector<16x1056xf32>
    %60 = arith.addf %57, %59 : vector<16x1056xf32>
    %c0_56 = arith.constant 0 : index
    %c0_57 = arith.constant 0 : index
    %c0_58 = arith.constant 0 : index
    %61 = vector.load %arg11[%c0_56, %c0_57, %c0_58] : memref<1x16x1056xf32, #tpu.memory_space<vmem>>, vector<1x16x1056xf32>
    %62 = vector.shape_cast %61 : vector<1x16x1056xf32> to vector<16x1056xf32>
    %63 = vector.shape_cast %60 : vector<16x1056xf32> to vector<1x16x1056xf32>
    tpu.vector_store %arg11[%c0_56, %c0_57, %c0_58], %63 {strides = array<i32>} : memref<1x16x1056xf32, #tpu.memory_space<vmem>>, vector<1x16x1056xf32>,
    %c0_59 = arith.constant 0 : index
    %c0_60 = arith.constant 0 : index
    %64 = vector.load %arg8[%c0_59, %c0_60] : memref<8x16xf32, #tpu.memory_space<vmem>>, vector<8x16xf32>
    %cst_61 = arith.constant dense<0.000000e+00> : vector<8x1056xf32>
    %65 = tpu.matmul %64, %60, %cst_61 {dimension_numbers = #tpu.dot_dimension_numbers<[1], [0], [0], [1], [0, 0, 1, 1], [], []>} : vector<8x16xf32>, vector<16x1056xf32>, vector<8x1056xf32> -> vector<8x1056xf32>
    %cst_62 = arith.constant 0.000000e+00 : f32
    %66 = vector.broadcast %cst_62 : f32 to vector<8x1056xf32>
    %67 = arith.maximumf %65, %66 : vector<8x1056xf32>
    %c0_63 = arith.constant 0 : index
    %c0_64 = arith.constant 0 : index
    %68 = vector.load %arg9[%c0_63, %c0_64] : memref<8x1xf32, #tpu.memory_space<vmem>>, vector<8x1xf32>
    %69 = vector.broadcast %68 : vector<8x1xf32> to vector<8x1056xf32>
    %70 = arith.mulf %67, %69 : vector<8x1056xf32>
    %c0_65 = arith.constant 0 : index
    %c0_66 = arith.constant 0 : index
    %71 = vector.load %arg10[%c0_65, %c0_66] : memref<8x1xf32, #tpu.memory_space<vmem>>, vector<8x1xf32>
    %72 = vector.broadcast %71 : vector<8x1xf32> to vector<8x1056xf32>
    %73 = arith.addf %70, %72 : vector<8x1056xf32>
    %c0_67 = arith.constant 0 : index
    %c0_68 = arith.constant 0 : index
    %c0_69 = arith.constant 0 : index
    %74 = vector.load %arg12[%c0_67, %c0_68, %c0_69] : memref<1x8x1056xf32, #tpu.memory_space<vmem>>, vector<1x8x1056xf32>
    %75 = vector.shape_cast %74 : vector<1x8x1056xf32> to vector<8x1056xf32>
    %76 = vector.shape_cast %73 : vector<8x1056xf32> to vector<1x8x1056xf32>
    tpu.vector_store %arg12[%c0_67, %c0_68, %c0_69], %76 {strides = array<i32>} : memref<1x8x1056xf32, #tpu.memory_space<vmem>>, vector<1x8x1056xf32>,
    return
  }
  func.func @transform_0(%arg0: i32) -> (i32, i32, i32) {
    %c0_i32 = arith.constant 0 : i32
    %c0_i32_0 = arith.constant 0 : i32
    %c0_i32_1 = arith.constant 0 : i32
    return %arg0, %c0_i32, %c0_i32_0 : i32, i32, i32
  }
  func.func @transform_1(%arg0: i32) -> (i32, i32, i32) {
    %c0_i32 = arith.constant 0 : i32
    %c0_i32_0 = arith.constant 0 : i32
    %c0_i32_1 = arith.constant 0 : i32
    return %arg0, %c0_i32, %c0_i32_0 : i32, i32, i32
  }
  func.func @transform_2(%arg0: i32) -> (i32, i32, i32) {
    %c0_i32 = arith.constant 0 : i32
    %c0_i32_0 = arith.constant 0 : i32
    %c0_i32_1 = arith.constant 0 : i32
    return %arg0, %c0_i32, %c0_i32_0 : i32, i32, i32
  }
  func.func @transform_3(%arg0: i32) -> (i32, i32, i32) {
    %c0_i32 = arith.constant 0 : i32
    %c0_i32_0 = arith.constant 0 : i32
    %c0_i32_1 = arith.constant 0 : i32
    return %arg0, %c0_i32, %c0_i32_0 : i32, i32, i32
  }
  func.func @transform_4(%arg0: i32) -> (i32, i32, i32) {
    %c0_i32 = arith.constant 0 : i32
    %c0_i32_0 = arith.constant 0 : i32
    %c0_i32_1 = arith.constant 0 : i32
    %c0_i32_2 = arith.constant 0 : i32
    return %c0_i32, %c0_i32_0, %c0_i32_1 : i32, i32, i32
  }
  func.func @transform_5(%arg0: i32) -> (i32, i32) {
    %c0_i32 = arith.constant 0 : i32
    %c0_i32_0 = arith.constant 0 : i32
    %c0_i32_1 = arith.constant 0 : i32
    return %c0_i32, %c0_i32_0 : i32, i32
  }
  func.func @transform_6(%arg0: i32) -> (i32, i32) {
    %c0_i32 = arith.constant 0 : i32
    %c0_i32_0 = arith.constant 0 : i32
    %c0_i32_1 = arith.constant 0 : i32
    return %c0_i32, %c0_i32_0 : i32, i32
  }
  func.func @transform_7(%arg0: i32) -> (i32, i32) {
    %c0_i32 = arith.constant 0 : i32
    %c0_i32_0 = arith.constant 0 : i32
    %c0_i32_1 = arith.constant 0 : i32
    return %c0_i32, %c0_i32_0 : i32, i32
  }
  func.func @transform_8(%arg0: i32) -> (i32, i32) {
    %c0_i32 = arith.constant 0 : i32
    %c0_i32_0 = arith.constant 0 : i32
    %c0_i32_1 = arith.constant 0 : i32
    return %c0_i32, %c0_i32_0 : i32, i32
  }
  func.func @transform_9(%arg0: i32) -> (i32, i32) {
    %c0_i32 = arith.constant 0 : i32
    %c0_i32_0 = arith.constant 0 : i32
    %c0_i32_1 = arith.constant 0 : i32
    return %c0_i32, %c0_i32_0 : i32, i32
  }
  func.func @transform_10(%arg0: i32) -> (i32, i32, i32) {
    %c0_i32 = arith.constant 0 : i32
    %c0_i32_0 = arith.constant 0 : i32
    %c0_i32_1 = arith.constant 0 : i32
    return %arg0, %c0_i32, %c0_i32_0 : i32, i32, i32
  }
  func.func @transform_11(%arg0: i32) -> (i32, i32, i32) {
    %c0_i32 = arith.constant 0 : i32
    %c0_i32_0 = arith.constant 0 : i32
    %c0_i32_1 = arith.constant 0 : i32
    return %arg0, %c0_i32, %c0_i32_0 : i32, i32, i32
  }
}

module attributes {stable_mosaic.version = 11 : i64} {
  func.func @_stem_back_kernel(%arg0: i32, %arg1: memref<1x8x324xf32, #tpu.memory_space<vmem>>, %arg2: memref<1x8x324xf32, #tpu.memory_space<vmem>>, %arg3: memref<1x8x324xf32, #tpu.memory_space<vmem>>, %arg4: memref<1x8x324xf32, #tpu.memory_space<vmem>>, %arg5: memref<1x16x324xf32, #tpu.memory_space<vmem>>, %arg6: memref<1x16x324xf32, #tpu.memory_space<vmem>>, %arg7: memref<1x16x324xf32, #tpu.memory_space<vmem>>, %arg8: memref<1x16x324xf32, #tpu.memory_space<vmem>>, %arg9: memref<9x16x8xf32, #tpu.memory_space<vmem>>, %arg10: memref<16x1xf32, #tpu.memory_space<vmem>>, %arg11: memref<16x1xf32, #tpu.memory_space<vmem>>, %arg12: memref<9x16x32xf32, #tpu.memory_space<vmem>>, %arg13: memref<16x1xf32, #tpu.memory_space<vmem>>, %arg14: memref<16x1xf32, #tpu.memory_space<vmem>>, %arg15: memref<1x16x288xf32, #tpu.memory_space<vmem>>, %arg16: memref<32x384xf32, #tpu.memory_space<vmem>>) attributes {dimension_semantics = [#tpu.dimension_semantics<parallel>], iteration_bounds = array<i64: 2>, scalar_prefetch = 0 : i64, scratch_operands = 1 : i64, tpu.core_type = #tpu.core_type<tc>, window_params = [{transform_indices = @transform_0, window_bounds = array<i64: 1, 8, 324>}, {transform_indices = @transform_1, window_bounds = array<i64: 1, 8, 324>}, {transform_indices = @transform_2, window_bounds = array<i64: 1, 8, 324>}, {transform_indices = @transform_3, window_bounds = array<i64: 1, 8, 324>}, {transform_indices = @transform_4, window_bounds = array<i64: 1, 16, 324>}, {transform_indices = @transform_5, window_bounds = array<i64: 1, 16, 324>}, {transform_indices = @transform_6, window_bounds = array<i64: 1, 16, 324>}, {transform_indices = @transform_7, window_bounds = array<i64: 1, 16, 324>}, {pipeline_mode = #tpu.pipeline_mode<synchronous>, transform_indices = @transform_8, window_bounds = array<i64: 9, 16, 8>}, {pipeline_mode = #tpu.pipeline_mode<synchronous>, transform_indices = @transform_9, window_bounds = array<i64: 16, 1>}, {pipeline_mode = #tpu.pipeline_mode<synchronous>, transform_indices = @transform_10, window_bounds = array<i64: 16, 1>}, {pipeline_mode = #tpu.pipeline_mode<synchronous>, transform_indices = @transform_11, window_bounds = array<i64: 9, 16, 32>}, {pipeline_mode = #tpu.pipeline_mode<synchronous>, transform_indices = @transform_12, window_bounds = array<i64: 16, 1>}, {pipeline_mode = #tpu.pipeline_mode<synchronous>, transform_indices = @transform_13, window_bounds = array<i64: 16, 1>}, {transform_indices = @transform_14, window_bounds = array<i64: 1, 16, 288>}]} {
    %c0 = arith.constant 0 : index
    %c0_0 = arith.constant 0 : index
    %c0_1 = arith.constant 0 : index
    %0 = vector.load %arg9[%c0, %c0_0, %c0_1] : memref<9x16x8xf32, #tpu.memory_space<vmem>>, vector<1x16x8xf32>
    %1 = vector.shape_cast %0 : vector<1x16x8xf32> to vector<16x8xf32>
    %c0_2 = arith.constant 0 : index
    %c0_3 = arith.constant 0 : index
    %c0_4 = arith.constant 0 : index
    %2 = vector.load %arg1[%c0_2, %c0_3, %c0_4] : memref<1x8x324xf32, #tpu.memory_space<vmem>>, vector<1x8x288xf32>
    %3 = vector.shape_cast %2 : vector<1x8x288xf32> to vector<8x288xf32>
    %cst = arith.constant dense<0.000000e+00> : vector<16x288xf32>
    %4 = tpu.matmul %1, %3, %cst {dimension_numbers = #tpu.dot_dimension_numbers<[1], [0], [0], [1], [0, 0, 1, 1], [], []>} : vector<16x8xf32>, vector<8x288xf32>, vector<16x288xf32> -> vector<16x288xf32>
    %c0_5 = arith.constant 0 : index
    %c0_6 = arith.constant 0 : index
    %c0_7 = arith.constant 0 : index
    %5 = vector.load %arg5[%c0_5, %c0_6, %c0_7] : memref<1x16x324xf32, #tpu.memory_space<vmem>>, vector<1x16x288xf32>
    %6 = vector.shape_cast %5 : vector<1x16x288xf32> to vector<16x288xf32>
    %c1 = arith.constant 1 : index
    %c0_8 = arith.constant 0 : index
    %c0_9 = arith.constant 0 : index
    %7 = vector.load %arg9[%c1, %c0_8, %c0_9] : memref<9x16x8xf32, #tpu.memory_space<vmem>>, vector<1x16x8xf32>
    %8 = vector.shape_cast %7 : vector<1x16x8xf32> to vector<16x8xf32>
    %c0_10 = arith.constant 0 : index
    %c0_11 = arith.constant 0 : index
    %c0_12 = arith.constant 0 : index
    %9 = vector.load %arg2[%c0_10, %c0_11, %c0_12] : memref<1x8x324xf32, #tpu.memory_space<vmem>>, vector<1x8x288xf32>
    %10 = vector.shape_cast %9 : vector<1x8x288xf32> to vector<8x288xf32>
    %cst_13 = arith.constant dense<0.000000e+00> : vector<16x288xf32>
    %11 = tpu.matmul %8, %10, %cst_13 {dimension_numbers = #tpu.dot_dimension_numbers<[1], [0], [0], [1], [0, 0, 1, 1], [], []>} : vector<16x8xf32>, vector<8x288xf32>, vector<16x288xf32> -> vector<16x288xf32>
    %12 = arith.addf %4, %11 : vector<16x288xf32>
    %c0_14 = arith.constant 0 : index
    %c0_15 = arith.constant 0 : index
    %c0_16 = arith.constant 0 : index
    %13 = vector.load %arg6[%c0_14, %c0_15, %c0_16] : memref<1x16x324xf32, #tpu.memory_space<vmem>>, vector<1x16x288xf32>
    %14 = vector.shape_cast %13 : vector<1x16x288xf32> to vector<16x288xf32>
    %15 = arith.maximumf %6, %14 : vector<16x288xf32>
    %c2 = arith.constant 2 : index
    %c0_17 = arith.constant 0 : index
    %c0_18 = arith.constant 0 : index
    %16 = vector.load %arg9[%c2, %c0_17, %c0_18] : memref<9x16x8xf32, #tpu.memory_space<vmem>>, vector<1x16x8xf32>
    %17 = vector.shape_cast %16 : vector<1x16x8xf32> to vector<16x8xf32>
    %c0_19 = arith.constant 0 : index
    %c0_20 = arith.constant 0 : index
    %c1_21 = arith.constant 1 : index
    %18 = vector.load %arg1[%c0_19, %c0_20, %c1_21] : memref<1x8x324xf32, #tpu.memory_space<vmem>>, vector<1x8x288xf32>
    %19 = vector.shape_cast %18 : vector<1x8x288xf32> to vector<8x288xf32>
    %cst_22 = arith.constant dense<0.000000e+00> : vector<16x288xf32>
    %20 = tpu.matmul %17, %19, %cst_22 {dimension_numbers = #tpu.dot_dimension_numbers<[1], [0], [0], [1], [0, 0, 1, 1], [], []>} : vector<16x8xf32>, vector<8x288xf32>, vector<16x288xf32> -> vector<16x288xf32>
    %21 = arith.addf %12, %20 : vector<16x288xf32>
    %c0_23 = arith.constant 0 : index
    %c0_24 = arith.constant 0 : index
    %c1_25 = arith.constant 1 : index
    %22 = vector.load %arg5[%c0_23, %c0_24, %c1_25] : memref<1x16x324xf32, #tpu.memory_space<vmem>>, vector<1x16x288xf32>
    %23 = vector.shape_cast %22 : vector<1x16x288xf32> to vector<16x288xf32>
    %24 = arith.maximumf %15, %23 : vector<16x288xf32>
    %c3 = arith.constant 3 : index
    %c0_26 = arith.constant 0 : index
    %c0_27 = arith.constant 0 : index
    %25 = vector.load %arg9[%c3, %c0_26, %c0_27] : memref<9x16x8xf32, #tpu.memory_space<vmem>>, vector<1x16x8xf32>
    %26 = vector.shape_cast %25 : vector<1x16x8xf32> to vector<16x8xf32>
    %c0_28 = arith.constant 0 : index
    %c0_29 = arith.constant 0 : index
    %c0_30 = arith.constant 0 : index
    %27 = vector.load %arg3[%c0_28, %c0_29, %c0_30] : memref<1x8x324xf32, #tpu.memory_space<vmem>>, vector<1x8x288xf32>
    %28 = vector.shape_cast %27 : vector<1x8x288xf32> to vector<8x288xf32>
    %cst_31 = arith.constant dense<0.000000e+00> : vector<16x288xf32>
    %29 = tpu.matmul %26, %28, %cst_31 {dimension_numbers = #tpu.dot_dimension_numbers<[1], [0], [0], [1], [0, 0, 1, 1], [], []>} : vector<16x8xf32>, vector<8x288xf32>, vector<16x288xf32> -> vector<16x288xf32>
    %30 = arith.addf %21, %29 : vector<16x288xf32>
    %c0_32 = arith.constant 0 : index
    %c0_33 = arith.constant 0 : index
    %c0_34 = arith.constant 0 : index
    %31 = vector.load %arg7[%c0_32, %c0_33, %c0_34] : memref<1x16x324xf32, #tpu.memory_space<vmem>>, vector<1x16x288xf32>
    %32 = vector.shape_cast %31 : vector<1x16x288xf32> to vector<16x288xf32>
    %33 = arith.maximumf %24, %32 : vector<16x288xf32>
    %c4 = arith.constant 4 : index
    %c0_35 = arith.constant 0 : index
    %c0_36 = arith.constant 0 : index
    %34 = vector.load %arg9[%c4, %c0_35, %c0_36] : memref<9x16x8xf32, #tpu.memory_space<vmem>>, vector<1x16x8xf32>
    %35 = vector.shape_cast %34 : vector<1x16x8xf32> to vector<16x8xf32>
    %c0_37 = arith.constant 0 : index
    %c0_38 = arith.constant 0 : index
    %c0_39 = arith.constant 0 : index
    %36 = vector.load %arg4[%c0_37, %c0_38, %c0_39] : memref<1x8x324xf32, #tpu.memory_space<vmem>>, vector<1x8x288xf32>
    %37 = vector.shape_cast %36 : vector<1x8x288xf32> to vector<8x288xf32>
    %cst_40 = arith.constant dense<0.000000e+00> : vector<16x288xf32>
    %38 = tpu.matmul %35, %37, %cst_40 {dimension_numbers = #tpu.dot_dimension_numbers<[1], [0], [0], [1], [0, 0, 1, 1], [], []>} : vector<16x8xf32>, vector<8x288xf32>, vector<16x288xf32> -> vector<16x288xf32>
    %39 = arith.addf %30, %38 : vector<16x288xf32>
    %c0_41 = arith.constant 0 : index
    %c0_42 = arith.constant 0 : index
    %c0_43 = arith.constant 0 : index
    %40 = vector.load %arg8[%c0_41, %c0_42, %c0_43] : memref<1x16x324xf32, #tpu.memory_space<vmem>>, vector<1x16x288xf32>
    %41 = vector.shape_cast %40 : vector<1x16x288xf32> to vector<16x288xf32>
    %42 = arith.maximumf %33, %41 : vector<16x288xf32>
    %c5 = arith.constant 5 : index
    %c0_44 = arith.constant 0 : index
    %c0_45 = arith.constant 0 : index
    %43 = vector.load %arg9[%c5, %c0_44, %c0_45] : memref<9x16x8xf32, #tpu.memory_space<vmem>>, vector<1x16x8xf32>
    %44 = vector.shape_cast %43 : vector<1x16x8xf32> to vector<16x8xf32>
    %c0_46 = arith.constant 0 : index
    %c0_47 = arith.constant 0 : index
    %c1_48 = arith.constant 1 : index
    %45 = vector.load %arg3[%c0_46, %c0_47, %c1_48] : memref<1x8x324xf32, #tpu.memory_space<vmem>>, vector<1x8x288xf32>
    %46 = vector.shape_cast %45 : vector<1x8x288xf32> to vector<8x288xf32>
    %cst_49 = arith.constant dense<0.000000e+00> : vector<16x288xf32>
    %47 = tpu.matmul %44, %46, %cst_49 {dimension_numbers = #tpu.dot_dimension_numbers<[1], [0], [0], [1], [0, 0, 1, 1], [], []>} : vector<16x8xf32>, vector<8x288xf32>, vector<16x288xf32> -> vector<16x288xf32>
    %48 = arith.addf %39, %47 : vector<16x288xf32>
    %c0_50 = arith.constant 0 : index
    %c0_51 = arith.constant 0 : index
    %c1_52 = arith.constant 1 : index
    %49 = vector.load %arg7[%c0_50, %c0_51, %c1_52] : memref<1x16x324xf32, #tpu.memory_space<vmem>>, vector<1x16x288xf32>
    %50 = vector.shape_cast %49 : vector<1x16x288xf32> to vector<16x288xf32>
    %51 = arith.maximumf %42, %50 : vector<16x288xf32>
    %c6 = arith.constant 6 : index
    %c0_53 = arith.constant 0 : index
    %c0_54 = arith.constant 0 : index
    %52 = vector.load %arg9[%c6, %c0_53, %c0_54] : memref<9x16x8xf32, #tpu.memory_space<vmem>>, vector<1x16x8xf32>
    %53 = vector.shape_cast %52 : vector<1x16x8xf32> to vector<16x8xf32>
    %c0_55 = arith.constant 0 : index
    %c0_56 = arith.constant 0 : index
    %c18 = arith.constant 18 : index
    %54 = vector.load %arg1[%c0_55, %c0_56, %c18] : memref<1x8x324xf32, #tpu.memory_space<vmem>>, vector<1x8x288xf32>
    %55 = vector.shape_cast %54 : vector<1x8x288xf32> to vector<8x288xf32>
    %cst_57 = arith.constant dense<0.000000e+00> : vector<16x288xf32>
    %56 = tpu.matmul %53, %55, %cst_57 {dimension_numbers = #tpu.dot_dimension_numbers<[1], [0], [0], [1], [0, 0, 1, 1], [], []>} : vector<16x8xf32>, vector<8x288xf32>, vector<16x288xf32> -> vector<16x288xf32>
    %57 = arith.addf %48, %56 : vector<16x288xf32>
    %c0_58 = arith.constant 0 : index
    %c0_59 = arith.constant 0 : index
    %c18_60 = arith.constant 18 : index
    %58 = vector.load %arg5[%c0_58, %c0_59, %c18_60] : memref<1x16x324xf32, #tpu.memory_space<vmem>>, vector<1x16x288xf32>
    %59 = vector.shape_cast %58 : vector<1x16x288xf32> to vector<16x288xf32>
    %60 = arith.maximumf %51, %59 : vector<16x288xf32>
    %c7 = arith.constant 7 : index
    %c0_61 = arith.constant 0 : index
    %c0_62 = arith.constant 0 : index
    %61 = vector.load %arg9[%c7, %c0_61, %c0_62] : memref<9x16x8xf32, #tpu.memory_space<vmem>>, vector<1x16x8xf32>
    %62 = vector.shape_cast %61 : vector<1x16x8xf32> to vector<16x8xf32>
    %c0_63 = arith.constant 0 : index
    %c0_64 = arith.constant 0 : index
    %c18_65 = arith.constant 18 : index
    %63 = vector.load %arg2[%c0_63, %c0_64, %c18_65] : memref<1x8x324xf32, #tpu.memory_space<vmem>>, vector<1x8x288xf32>
    %64 = vector.shape_cast %63 : vector<1x8x288xf32> to vector<8x288xf32>
    %cst_66 = arith.constant dense<0.000000e+00> : vector<16x288xf32>
    %65 = tpu.matmul %62, %64, %cst_66 {dimension_numbers = #tpu.dot_dimension_numbers<[1], [0], [0], [1], [0, 0, 1, 1], [], []>} : vector<16x8xf32>, vector<8x288xf32>, vector<16x288xf32> -> vector<16x288xf32>
    %66 = arith.addf %57, %65 : vector<16x288xf32>
    %c0_67 = arith.constant 0 : index
    %c0_68 = arith.constant 0 : index
    %c18_69 = arith.constant 18 : index
    %67 = vector.load %arg6[%c0_67, %c0_68, %c18_69] : memref<1x16x324xf32, #tpu.memory_space<vmem>>, vector<1x16x288xf32>
    %68 = vector.shape_cast %67 : vector<1x16x288xf32> to vector<16x288xf32>
    %69 = arith.maximumf %60, %68 : vector<16x288xf32>
    %c8 = arith.constant 8 : index
    %c0_70 = arith.constant 0 : index
    %c0_71 = arith.constant 0 : index
    %70 = vector.load %arg9[%c8, %c0_70, %c0_71] : memref<9x16x8xf32, #tpu.memory_space<vmem>>, vector<1x16x8xf32>
    %71 = vector.shape_cast %70 : vector<1x16x8xf32> to vector<16x8xf32>
    %c0_72 = arith.constant 0 : index
    %c0_73 = arith.constant 0 : index
    %c19 = arith.constant 19 : index
    %72 = vector.load %arg1[%c0_72, %c0_73, %c19] : memref<1x8x324xf32, #tpu.memory_space<vmem>>, vector<1x8x288xf32>
    %73 = vector.shape_cast %72 : vector<1x8x288xf32> to vector<8x288xf32>
    %cst_74 = arith.constant dense<0.000000e+00> : vector<16x288xf32>
    %74 = tpu.matmul %71, %73, %cst_74 {dimension_numbers = #tpu.dot_dimension_numbers<[1], [0], [0], [1], [0, 0, 1, 1], [], []>} : vector<16x8xf32>, vector<8x288xf32>, vector<16x288xf32> -> vector<16x288xf32>
    %75 = arith.addf %66, %74 : vector<16x288xf32>
    %c0_75 = arith.constant 0 : index
    %c0_76 = arith.constant 0 : index
    %c19_77 = arith.constant 19 : index
    %76 = vector.load %arg5[%c0_75, %c0_76, %c19_77] : memref<1x16x324xf32, #tpu.memory_space<vmem>>, vector<1x16x288xf32>
    %77 = vector.shape_cast %76 : vector<1x16x288xf32> to vector<16x288xf32>
    %78 = arith.maximumf %69, %77 : vector<16x288xf32>
    %cst_78 = arith.constant 0.000000e+00 : f32
    %79 = vector.broadcast %cst_78 : f32 to vector<16x288xf32>
    %80 = arith.maximumf %75, %79 : vector<16x288xf32>
    %c0_79 = arith.constant 0 : index
    %c0_80 = arith.constant 0 : index
    %81 = vector.load %arg10[%c0_79, %c0_80] : memref<16x1xf32, #tpu.memory_space<vmem>>, vector<16x1xf32>
    %82 = vector.broadcast %81 : vector<16x1xf32> to vector<16x288xf32>
    %83 = arith.mulf %80, %82 : vector<16x288xf32>
    %c0_81 = arith.constant 0 : index
    %c0_82 = arith.constant 0 : index
    %84 = vector.load %arg11[%c0_81, %c0_82] : memref<16x1xf32, #tpu.memory_space<vmem>>, vector<16x1xf32>
    %85 = vector.broadcast %84 : vector<16x1xf32> to vector<16x288xf32>
    %86 = arith.addf %83, %85 : vector<16x288xf32>
    %87 = tpu.iota {dimensions = array<i32: 1>} : vector<16x288xi32>
    %c18_i32 = arith.constant 18 : i32
    %c0_i32 = arith.constant 0 : i32
    %88 = arith.cmpi eq, %c18_i32, %c0_i32 : i32
    %c1_i32 = arith.constant 1 : i32
    %89 = arith.select %88, %c1_i32, %c18_i32 : i32
    %90 = vector.broadcast %89 : i32 to vector<16x288xi32>
    %91 = arith.remsi %87, %90 : vector<16x288xi32>
    %c0_i32_83 = arith.constant 0 : i32
    %92 = vector.broadcast %c0_i32_83 : i32 to vector<16x288xi32>
    %93 = arith.cmpi ne, %91, %92 : vector<16x288xi32>
    %c0_i32_84 = arith.constant 0 : i32
    %94 = vector.broadcast %c0_i32_84 : i32 to vector<16x288xi32>
    %95 = arith.cmpi slt, %91, %94 : vector<16x288xi32>
    %c0_i32_85 = arith.constant 0 : i32
    %96 = arith.cmpi slt, %89, %c0_i32_85 : i32
    %97 = vector.broadcast %96 : i1 to vector<16x288xi1>
    %98 = vector.broadcast %97 : vector<16x288xi1> to vector<16x288xi1>
    %99 = arith.xori %95, %98 : vector<16x288xi1>
    %100 = arith.andi %99, %93 : vector<16x288xi1>
    %101 = vector.broadcast %89 : i32 to vector<16x288xi32>
    %102 = arith.addi %91, %101 : vector<16x288xi32>
    %103 = arith.select %100, %102, %91 : vector<16x288xi1>, vector<16x288xi32>
    %c16_i32 = arith.constant 16 : i32
    %104 = vector.broadcast %c16_i32 : i32 to vector<16x288xi32>
    %105 = arith.cmpi slt, %103, %104 : vector<16x288xi32>
    %cst_86 = arith.constant 0.000000e+00 : f32
    %106 = vector.broadcast %cst_86 : f32 to vector<32x384xf32>
    %c0_87 = arith.constant 0 : index
    %c0_88 = arith.constant 0 : index
    %107 = vector.load %arg16[%c0_87, %c0_88] : memref<32x384xf32, #tpu.memory_space<vmem>>, vector<32x384xf32>
    tpu.vector_store %arg16[%c0_87, %c0_88], %106 {strides = array<i32>} : memref<32x384xf32, #tpu.memory_space<vmem>>, vector<32x384xf32>,
    %cst_89 = arith.constant 0.000000e+00 : f32
    %108 = vector.broadcast %cst_89 : f32 to vector<16x288xf32>
    %109 = arith.select %105, %86, %108 : vector<16x288xi1>, vector<16x288xf32>
    %c0_90 = arith.constant 0 : index
    %c19_91 = arith.constant 19 : index
    %110 = vector.load %arg16[%c0_90, %c19_91] : memref<32x384xf32, #tpu.memory_space<vmem>>, vector<16x288xf32>
    tpu.vector_store %arg16[%c0_90, %c19_91], %109 {strides = array<i32>} : memref<32x384xf32, #tpu.memory_space<vmem>>, vector<16x288xf32>,
    %cst_92 = arith.constant 0.000000e+00 : f32
    %111 = vector.broadcast %cst_92 : f32 to vector<16x288xf32>
    %112 = arith.select %105, %78, %111 : vector<16x288xi1>, vector<16x288xf32>
    %c16 = arith.constant 16 : index
    %c19_93 = arith.constant 19 : index
    %113 = vector.load %arg16[%c16, %c19_93] : memref<32x384xf32, #tpu.memory_space<vmem>>, vector<16x288xf32>
    tpu.vector_store %arg16[%c16, %c19_93], %112 {strides = array<i32>} : memref<32x384xf32, #tpu.memory_space<vmem>>, vector<16x288xf32>,
    %c0_94 = arith.constant 0 : index
    %c0_95 = arith.constant 0 : index
    %c0_96 = arith.constant 0 : index
    %114 = vector.load %arg12[%c0_94, %c0_95, %c0_96] : memref<9x16x32xf32, #tpu.memory_space<vmem>>, vector<1x16x32xf32>
    %115 = vector.shape_cast %114 : vector<1x16x32xf32> to vector<16x32xf32>
    %c0_97 = arith.constant 0 : index
    %c0_98 = arith.constant 0 : index
    %116 = vector.load %arg16[%c0_97, %c0_98] : memref<32x384xf32, #tpu.memory_space<vmem>>, vector<32x288xf32>
    %cst_99 = arith.constant dense<0.000000e+00> : vector<16x288xf32>
    %117 = tpu.matmul %115, %116, %cst_99 {dimension_numbers = #tpu.dot_dimension_numbers<[1], [0], [0], [1], [0, 0, 1, 1], [], []>} : vector<16x32xf32>, vector<32x288xf32>, vector<16x288xf32> -> vector<16x288xf32>
    %c1_100 = arith.constant 1 : index
    %c0_101 = arith.constant 0 : index
    %c0_102 = arith.constant 0 : index
    %118 = vector.load %arg12[%c1_100, %c0_101, %c0_102] : memref<9x16x32xf32, #tpu.memory_space<vmem>>, vector<1x16x32xf32>
    %119 = vector.shape_cast %118 : vector<1x16x32xf32> to vector<16x32xf32>
    %c0_103 = arith.constant 0 : index
    %c1_104 = arith.constant 1 : index
    %120 = vector.load %arg16[%c0_103, %c1_104] : memref<32x384xf32, #tpu.memory_space<vmem>>, vector<32x288xf32>
    %cst_105 = arith.constant dense<0.000000e+00> : vector<16x288xf32>
    %121 = tpu.matmul %119, %120, %cst_105 {dimension_numbers = #tpu.dot_dimension_numbers<[1], [0], [0], [1], [0, 0, 1, 1], [], []>} : vector<16x32xf32>, vector<32x288xf32>, vector<16x288xf32> -> vector<16x288xf32>
    %122 = arith.addf %117, %121 : vector<16x288xf32>
    %c2_106 = arith.constant 2 : index
    %c0_107 = arith.constant 0 : index
    %c0_108 = arith.constant 0 : index
    %123 = vector.load %arg12[%c2_106, %c0_107, %c0_108] : memref<9x16x32xf32, #tpu.memory_space<vmem>>, vector<1x16x32xf32>
    %124 = vector.shape_cast %123 : vector<1x16x32xf32> to vector<16x32xf32>
    %c0_109 = arith.constant 0 : index
    %c2_110 = arith.constant 2 : index
    %125 = vector.load %arg16[%c0_109, %c2_110] : memref<32x384xf32, #tpu.memory_space<vmem>>, vector<32x288xf32>
    %cst_111 = arith.constant dense<0.000000e+00> : vector<16x288xf32>
    %126 = tpu.matmul %124, %125, %cst_111 {dimension_numbers = #tpu.dot_dimension_numbers<[1], [0], [0], [1], [0, 0, 1, 1], [], []>} : vector<16x32xf32>, vector<32x288xf32>, vector<16x288xf32> -> vector<16x288xf32>
    %127 = arith.addf %122, %126 : vector<16x288xf32>
    %c3_112 = arith.constant 3 : index
    %c0_113 = arith.constant 0 : index
    %c0_114 = arith.constant 0 : index
    %128 = vector.load %arg12[%c3_112, %c0_113, %c0_114] : memref<9x16x32xf32, #tpu.memory_space<vmem>>, vector<1x16x32xf32>
    %129 = vector.shape_cast %128 : vector<1x16x32xf32> to vector<16x32xf32>
    %c0_115 = arith.constant 0 : index
    %c18_116 = arith.constant 18 : index
    %130 = vector.load %arg16[%c0_115, %c18_116] : memref<32x384xf32, #tpu.memory_space<vmem>>, vector<32x288xf32>
    %cst_117 = arith.constant dense<0.000000e+00> : vector<16x288xf32>
    %131 = tpu.matmul %129, %130, %cst_117 {dimension_numbers = #tpu.dot_dimension_numbers<[1], [0], [0], [1], [0, 0, 1, 1], [], []>} : vector<16x32xf32>, vector<32x288xf32>, vector<16x288xf32> -> vector<16x288xf32>
    %132 = arith.addf %127, %131 : vector<16x288xf32>
    %c4_118 = arith.constant 4 : index
    %c0_119 = arith.constant 0 : index
    %c0_120 = arith.constant 0 : index
    %133 = vector.load %arg12[%c4_118, %c0_119, %c0_120] : memref<9x16x32xf32, #tpu.memory_space<vmem>>, vector<1x16x32xf32>
    %134 = vector.shape_cast %133 : vector<1x16x32xf32> to vector<16x32xf32>
    %c0_121 = arith.constant 0 : index
    %c19_122 = arith.constant 19 : index
    %135 = vector.load %arg16[%c0_121, %c19_122] : memref<32x384xf32, #tpu.memory_space<vmem>>, vector<32x288xf32>
    %cst_123 = arith.constant dense<0.000000e+00> : vector<16x288xf32>
    %136 = tpu.matmul %134, %135, %cst_123 {dimension_numbers = #tpu.dot_dimension_numbers<[1], [0], [0], [1], [0, 0, 1, 1], [], []>} : vector<16x32xf32>, vector<32x288xf32>, vector<16x288xf32> -> vector<16x288xf32>
    %137 = arith.addf %132, %136 : vector<16x288xf32>
    %c5_124 = arith.constant 5 : index
    %c0_125 = arith.constant 0 : index
    %c0_126 = arith.constant 0 : index
    %138 = vector.load %arg12[%c5_124, %c0_125, %c0_126] : memref<9x16x32xf32, #tpu.memory_space<vmem>>, vector<1x16x32xf32>
    %139 = vector.shape_cast %138 : vector<1x16x32xf32> to vector<16x32xf32>
    %c0_127 = arith.constant 0 : index
    %c20 = arith.constant 20 : index
    %140 = vector.load %arg16[%c0_127, %c20] : memref<32x384xf32, #tpu.memory_space<vmem>>, vector<32x288xf32>
    %cst_128 = arith.constant dense<0.000000e+00> : vector<16x288xf32>
    %141 = tpu.matmul %139, %140, %cst_128 {dimension_numbers = #tpu.dot_dimension_numbers<[1], [0], [0], [1], [0, 0, 1, 1], [], []>} : vector<16x32xf32>, vector<32x288xf32>, vector<16x288xf32> -> vector<16x288xf32>
    %142 = arith.addf %137, %141 : vector<16x288xf32>
    %c6_129 = arith.constant 6 : index
    %c0_130 = arith.constant 0 : index
    %c0_131 = arith.constant 0 : index
    %143 = vector.load %arg12[%c6_129, %c0_130, %c0_131] : memref<9x16x32xf32, #tpu.memory_space<vmem>>, vector<1x16x32xf32>
    %144 = vector.shape_cast %143 : vector<1x16x32xf32> to vector<16x32xf32>
    %c0_132 = arith.constant 0 : index
    %c36 = arith.constant 36 : index
    %145 = vector.load %arg16[%c0_132, %c36] : memref<32x384xf32, #tpu.memory_space<vmem>>, vector<32x288xf32>
    %cst_133 = arith.constant dense<0.000000e+00> : vector<16x288xf32>
    %146 = tpu.matmul %144, %145, %cst_133 {dimension_numbers = #tpu.dot_dimension_numbers<[1], [0], [0], [1], [0, 0, 1, 1], [], []>} : vector<16x32xf32>, vector<32x288xf32>, vector<16x288xf32> -> vector<16x288xf32>
    %147 = arith.addf %142, %146 : vector<16x288xf32>
    %c7_134 = arith.constant 7 : index
    %c0_135 = arith.constant 0 : index
    %c0_136 = arith.constant 0 : index
    %148 = vector.load %arg12[%c7_134, %c0_135, %c0_136] : memref<9x16x32xf32, #tpu.memory_space<vmem>>, vector<1x16x32xf32>
    %149 = vector.shape_cast %148 : vector<1x16x32xf32> to vector<16x32xf32>
    %c0_137 = arith.constant 0 : index
    %c37 = arith.constant 37 : index
    %150 = vector.load %arg16[%c0_137, %c37] : memref<32x384xf32, #tpu.memory_space<vmem>>, vector<32x288xf32>
    %cst_138 = arith.constant dense<0.000000e+00> : vector<16x288xf32>
    %151 = tpu.matmul %149, %150, %cst_138 {dimension_numbers = #tpu.dot_dimension_numbers<[1], [0], [0], [1], [0, 0, 1, 1], [], []>} : vector<16x32xf32>, vector<32x288xf32>, vector<16x288xf32> -> vector<16x288xf32>
    %152 = arith.addf %147, %151 : vector<16x288xf32>
    %c8_139 = arith.constant 8 : index
    %c0_140 = arith.constant 0 : index
    %c0_141 = arith.constant 0 : index
    %153 = vector.load %arg12[%c8_139, %c0_140, %c0_141] : memref<9x16x32xf32, #tpu.memory_space<vmem>>, vector<1x16x32xf32>
    %154 = vector.shape_cast %153 : vector<1x16x32xf32> to vector<16x32xf32>
    %c0_142 = arith.constant 0 : index
    %c38 = arith.constant 38 : index
    %155 = vector.load %arg16[%c0_142, %c38] : memref<32x384xf32, #tpu.memory_space<vmem>>, vector<32x288xf32>
    %cst_143 = arith.constant dense<0.000000e+00> : vector<16x288xf32>
    %156 = tpu.matmul %154, %155, %cst_143 {dimension_numbers = #tpu.dot_dimension_numbers<[1], [0], [0], [1], [0, 0, 1, 1], [], []>} : vector<16x32xf32>, vector<32x288xf32>, vector<16x288xf32> -> vector<16x288xf32>
    %157 = arith.addf %152, %156 : vector<16x288xf32>
    %cst_144 = arith.constant 0.000000e+00 : f32
    %158 = vector.broadcast %cst_144 : f32 to vector<16x288xf32>
    %159 = arith.maximumf %157, %158 : vector<16x288xf32>
    %c0_145 = arith.constant 0 : index
    %c0_146 = arith.constant 0 : index
    %160 = vector.load %arg13[%c0_145, %c0_146] : memref<16x1xf32, #tpu.memory_space<vmem>>, vector<16x1xf32>
    %161 = vector.broadcast %160 : vector<16x1xf32> to vector<16x288xf32>
    %162 = arith.mulf %159, %161 : vector<16x288xf32>
    %c0_147 = arith.constant 0 : index
    %c0_148 = arith.constant 0 : index
    %163 = vector.load %arg14[%c0_147, %c0_148] : memref<16x1xf32, #tpu.memory_space<vmem>>, vector<16x1xf32>
    %164 = vector.broadcast %163 : vector<16x1xf32> to vector<16x288xf32>
    %165 = arith.addf %162, %164 : vector<16x288xf32>
    %c0_149 = arith.constant 0 : index
    %c0_150 = arith.constant 0 : index
    %c0_151 = arith.constant 0 : index
    %166 = vector.load %arg15[%c0_149, %c0_150, %c0_151] : memref<1x16x288xf32, #tpu.memory_space<vmem>>, vector<1x16x288xf32>
    %167 = vector.shape_cast %166 : vector<1x16x288xf32> to vector<16x288xf32>
    %168 = vector.shape_cast %165 : vector<16x288xf32> to vector<1x16x288xf32>
    tpu.vector_store %arg15[%c0_149, %c0_150, %c0_151], %168 {strides = array<i32>} : memref<1x16x288xf32, #tpu.memory_space<vmem>>, vector<1x16x288xf32>,
    return
  }
  func.func @transform_0(%arg0: i32) -> (i32, i32, i32) {
    %c0_i32 = arith.constant 0 : i32
    %c0_i32_0 = arith.constant 0 : i32
    %c0_i32_1 = arith.constant 0 : i32
    return %arg0, %c0_i32, %c0_i32_0 : i32, i32, i32
  }
  func.func @transform_1(%arg0: i32) -> (i32, i32, i32) {
    %c0_i32 = arith.constant 0 : i32
    %c0_i32_0 = arith.constant 0 : i32
    %c0_i32_1 = arith.constant 0 : i32
    return %arg0, %c0_i32, %c0_i32_0 : i32, i32, i32
  }
  func.func @transform_2(%arg0: i32) -> (i32, i32, i32) {
    %c0_i32 = arith.constant 0 : i32
    %c0_i32_0 = arith.constant 0 : i32
    %c0_i32_1 = arith.constant 0 : i32
    return %arg0, %c0_i32, %c0_i32_0 : i32, i32, i32
  }
  func.func @transform_3(%arg0: i32) -> (i32, i32, i32) {
    %c0_i32 = arith.constant 0 : i32
    %c0_i32_0 = arith.constant 0 : i32
    %c0_i32_1 = arith.constant 0 : i32
    return %arg0, %c0_i32, %c0_i32_0 : i32, i32, i32
  }
  func.func @transform_4(%arg0: i32) -> (i32, i32, i32) {
    %c0_i32 = arith.constant 0 : i32
    %c0_i32_0 = arith.constant 0 : i32
    %c0_i32_1 = arith.constant 0 : i32
    return %arg0, %c0_i32, %c0_i32_0 : i32, i32, i32
  }
  func.func @transform_5(%arg0: i32) -> (i32, i32, i32) {
    %c0_i32 = arith.constant 0 : i32
    %c0_i32_0 = arith.constant 0 : i32
    %c0_i32_1 = arith.constant 0 : i32
    return %arg0, %c0_i32, %c0_i32_0 : i32, i32, i32
  }
  func.func @transform_6(%arg0: i32) -> (i32, i32, i32) {
    %c0_i32 = arith.constant 0 : i32
    %c0_i32_0 = arith.constant 0 : i32
    %c0_i32_1 = arith.constant 0 : i32
    return %arg0, %c0_i32, %c0_i32_0 : i32, i32, i32
  }
  func.func @transform_7(%arg0: i32) -> (i32, i32, i32) {
    %c0_i32 = arith.constant 0 : i32
    %c0_i32_0 = arith.constant 0 : i32
    %c0_i32_1 = arith.constant 0 : i32
    return %arg0, %c0_i32, %c0_i32_0 : i32, i32, i32
  }
  func.func @transform_8(%arg0: i32) -> (i32, i32, i32) {
    %c0_i32 = arith.constant 0 : i32
    %c0_i32_0 = arith.constant 0 : i32
    %c0_i32_1 = arith.constant 0 : i32
    %c0_i32_2 = arith.constant 0 : i32
    return %c0_i32, %c0_i32_0, %c0_i32_1 : i32, i32, i32
  }
  func.func @transform_9(%arg0: i32) -> (i32, i32) {
    %c0_i32 = arith.constant 0 : i32
    %c0_i32_0 = arith.constant 0 : i32
    %c0_i32_1 = arith.constant 0 : i32
    return %c0_i32, %c0_i32_0 : i32, i32
  }
  func.func @transform_10(%arg0: i32) -> (i32, i32) {
    %c0_i32 = arith.constant 0 : i32
    %c0_i32_0 = arith.constant 0 : i32
    %c0_i32_1 = arith.constant 0 : i32
    return %c0_i32, %c0_i32_0 : i32, i32
  }
  func.func @transform_11(%arg0: i32) -> (i32, i32, i32) {
    %c0_i32 = arith.constant 0 : i32
    %c0_i32_0 = arith.constant 0 : i32
    %c0_i32_1 = arith.constant 0 : i32
    %c0_i32_2 = arith.constant 0 : i32
    return %c0_i32, %c0_i32_0, %c0_i32_1 : i32, i32, i32
  }
  func.func @transform_12(%arg0: i32) -> (i32, i32) {
    %c0_i32 = arith.constant 0 : i32
    %c0_i32_0 = arith.constant 0 : i32
    %c0_i32_1 = arith.constant 0 : i32
    return %c0_i32, %c0_i32_0 : i32, i32
  }
  func.func @transform_13(%arg0: i32) -> (i32, i32) {
    %c0_i32 = arith.constant 0 : i32
    %c0_i32_0 = arith.constant 0 : i32
    %c0_i32_1 = arith.constant 0 : i32
    return %c0_i32, %c0_i32_0 : i32, i32
  }
  func.func @transform_14(%arg0: i32) -> (i32, i32, i32) {
    %c0_i32 = arith.constant 0 : i32
    %c0_i32_0 = arith.constant 0 : i32
    %c0_i32_1 = arith.constant 0 : i32
    return %arg0, %c0_i32, %c0_i32_0 : i32, i32, i32
  }
}

</mosaic_0001>

<bundles_post_ra>
// kernel: stem_block_forward.2
= control target key start
LH: loop header
LB: loop body
LE: loop exit
PB: predicated region body
PF: predicated region fallthrough
CT: control target
= control target key end

     0   :  { %s5745_s17 = smov 0   ;;  %s6520_s0 = inlined_call_operand.vmem [shape: f32[2,3,1122], index: 0, kind: input, shape index: {}]   ;;  %s6521_s1 = inlined_call_operand.vmem [shape: f32[2,3,1122], index: 1, kind: input, shape index: {}]   ;;  %s6522_s2 = inlined_call_operand.vmem [shape: f32[2,3,1122], index: 2, kind: input, shape index: {}]   ;;  %s6523_s3 = inlined_call_operand.vmem [shape: f32[2,3,1122], index: 3, kind: input, shape index: {}]   ;;  %s6524_s4 = inlined_call_operand.vmem [shape: f32[9,16,3], index: 4, kind: input, shape index: {}]   ;;  %s6525_s5 = inlined_call_operand.vmem [shape: f32[16,1], index: 5, kind: input, shape index: {}]   ;;  %s6526_s6 = inlined_call_operand.vmem [shape: f32[16,1], index: 6, kind: input, shape index: {}]   ;;  %s6527_s7 = inlined_call_operand.vmem [shape: f32[8,16], index: 7, kind: input, shape index: {}]   ;;  %s6528_s8 = inlined_call_operand.vmem [shape: f32[8,1], index: 8, kind: input, shape index: {}]   ;;  %s6529_s9 = inlined_call_operand.vmem [shape: f32[8,1], index: 9, kind: input, shape index: {}]   ;;  %s6530_s10 = inlined_call_operand.vmem [shape: f32[2,16,1056], index: 10, kind: output, shape index: {0}]   ;;  %s6531_s11 = inlined_call_operand.vmem [shape: f32[2,8,1056], index: 11, kind: output, shape index: {1}]  }
   0x1 LB: > { %s5164_s18 = sadd.s32 4294967295, %s5676_s17   ;;  %p5168_p0 = scmp.ge.s32.totalorder %s5676_s17, 1  ;;  %s5676_s17 = sphi %s5745_s17, %s22_s17  }
   0x2   : > { %p370_p1 = scmp.lt.s32.totalorder %s5676_s17, 3 }
   0x4   : > { %p371_p2 = pnand %p5168_p0, %p370_p1 }
   0x5   : > { %p430_p3 = scmp.lt.s32.totalorder (!%p371_p2), %s5164_s18, 1  ;;  %v5678_v0 = vmov (!%p371_p2), 0.0   ;;  %s5679_s23 = smov (!%p371_p2), 127   ;;  %vm491_vm0 = vcmask (!%p371_p2), 1042432   ;;  %v5790_v9 = vld [vmem:[%s6524_s4 + $0x10] sm:$0xff] (!%p371_p2)  ;;  %vm484_vm1 = vcmask (!%p371_p2), 23552  }
   0x6   : > { %374 = sbr.rel (%p371_p2) target bundleno = 728 (0x2d8), region = 60  ;;  %574 = vmatprep.mubr.f32.mxu1 (!%p371_p2), %v5678_v0  ;;  %728 = vmatprep.mubr.f32.mxu0 (!%p371_p2), %v5678_v0  ;;  %v5176_v16 = vld [vmem:[%s6524_s4 + $0x18] sm:$0xff] (!%p371_p2)  ;;  %v5838_v27 = vld [vmem:[%s6524_s4] sm:$0xff] (!%p371_p2)  ;;  %v466_v32 = vld [vmem:[%s6524_s4 + $0x8] sm:$0xff] (!%p371_p2)  ;;  %s5680_s24 = smov (!%p371_p2), 95   ;;  %vm1344_vm2 = vcmask (!%p371_p2), 1039360  }
   0x7   : > { %vm3165_vm3 = vcmask (!%p371_p2), 777216   ;;  %vm4102_vm4 = vcmask (!%p371_p2), 769024   ;;  %vm4634_vm5 = vcmask (!%p371_p2), 130048   ;;  %vm4622_vm6 = vcmask (!%p371_p2), 261120  }
   0x8   : > { %vm5684_vm7 = vmmov (!%p371_p2), 0  }
   0xd   : > { %s6533_s18 = smov (!%p430_p3, %s5164_s18), 1 }
   0xe   : > { %s5758_s19 = smul.u32 36, %s6533_s18 }
   0xf   : > { %s5615_s15 = smul.u32 144, %s6533_s18 }
  0x10   : > { %s5764_s22 = scalar_lea.vmem %s6520_s0, %s5758_s19  ;;  %s5775_s26 = scalar_lea.vmem %s6521_s1, %s5758_s19 }
  0x11   : > { %v1309_v1 = vld [vmem:[%s5764_s22] sm:$0x77]  ;;  %v1311_v2 = vld [vmem:[%s5764_s22 + $0x10] sm:$0x77]  ;;  %v1310_v5 = vld [vmem:[%s5764_s22 + $0x8] sm:$0x77]  ;;  %s5785_s29 = scalar_lea.vmem %s6522_s2, %s5758_s19  ;;  %s5984_s12 = scalar_lea.vmem %s6523_s3, %s5758_s19 }
  0x12   : > { %1326 = vrot.lane.b32.xlu1 %v1309_v1, %s5679_s23  ;;  %v1322_v3 = vcombine.high %v1309_v1, %v1309_v1  ;;  %v1324_v4 = vcombine.high %v1311_v2, %v1311_v2  ;;  %v467_v6 = vld [vmem:[%s5775_s26] sm:$0x77]  ;;  %v469_v8 = vld [vmem:[%s5775_s26 + $0x10] sm:$0x77]  ;;  %v468_v11 = vld [vmem:[%s5775_s26 + $0x8] sm:$0x77]  ;;  %v1323_v13 = vcombine.high %v1310_v5, %v1310_v5  ;;  %s6383_s20 = scalar_lea.vmem %s6530_s10, %s5615_s15 }
  0x13   : > { %v480_v7 = vcombine.high %v467_v6, %v467_v6  ;;  %v482_v10 = vcombine.high %v469_v8, %v469_v8  ;;  %v1312_v12 = vld [vmem:[%s5764_s22 + $0x18] sm:$0x77]  ;;  %v2662_v14 = vld [vmem:[%s5785_s29] sm:$0x77]  ;;  %v481_v15 = vcombine.high %v468_v11, %v468_v11  ;;  %v2663_v24 = vld [vmem:[%s5785_s29 + $0x8] sm:$0x77] }
  0x14   : > { %1328 = vrot.lane.b32.xlu0 %v1322_v3, %s5679_s23  ;;  %v1313_v17 = vld [vmem:[%s5764_s22 + $0x20] sm:$0x7]  ;;  %v2675_v19 = vcombine.high %v2662_v14, %v2662_v14  ;;  %v1325_v21 = vcombine.high %v1312_v12, %v1312_v12  ;;  %v470_v23 = vld [vmem:[%s5775_s26 + $0x18] sm:$0x77]  ;;  %v2664_v25 = vld [vmem:[%s5785_s29 + $0x10] sm:$0x77]  ;;  %v2676_v38 = vcombine.high %v2663_v24, %v2663_v24 }
  0x15   : > { %5177 = vmatprep.subr.msk.mxu1 %vm491_vm0, %v480_v7  ;;  %5185 = vmatprep.subr.msk.mxu0 %vm491_vm0, %v482_v10  ;;  %v471_v18 = vld [vmem:[%s5775_s26 + $0x20] sm:$0x7]  ;;  %v483_v26 = vcombine.high %v470_v23, %v470_v23  ;;  %v462_v28 = vld [vmem:[%s5764_s22 + $0x10] sm:$0x77]  ;;  %v2665_v29 = vld [vmem:[%s5785_s29 + $0x18] sm:$0x77]  ;;  %v2677_v30 = vcombine.high %v2664_v25, %v2664_v25 }
  0x16   : > { %1336 = vrot.lane.b32.xlu1 %v1324_v4, %s5679_s23  ;;  %5178 = vmatpush1.msk.msra.mxu1 %vm491_vm0, %v467_v6  ;;  %v460_v20 = vld [vmem:[%s5764_s22] sm:$0x77]  ;;  %v900_v31 = vcombine.high %v462_v28, %v462_v28  ;;  %v461_v33 = vld [vmem:[%s5764_s22 + $0x8] sm:$0x77]  ;;  %v463_v40 = vld [vmem:[%s5764_s22 + $0x18] sm:$0x77]  ;;  %v2678_v45 = vcombine.high %v2665_v29, %v2665_v29 }
  0x17   : > { %5179 = vmatmul.mubr.msk.f32.vlgmr.msra.gmra.mrb[0].mxu1 %vm484_vm1, %v5790_v9  ;;  %5186 = vmatpush1.msk.msra.mxu0 %vm491_vm0, %v469_v8  ;;  %v898_v22 = vcombine.high %v460_v20, %v460_v20  ;;  %v2666_v34 = vld [vmem:[%s5785_s29 + $0x20] sm:$0x7]  ;;  %v899_v36 = vcombine.high %v461_v33, %v461_v33  ;;  %v3132_v41 = vld [vmem:[%s5764_s22 + $0x10] sm:$0x77]  ;;  %v3131_v42 = vld [vmem:[%s5764_s22 + $0x8] sm:$0x77]  ;;  %v901_v43 = vcombine.high %v463_v40, %v463_v40 }
  0x18   : > { %1330 = vrot.lane.b32.xlu0 %v1310_v5, %s5679_s23  ;;  %5187 = vmatmul.mubr.msk.f32.vlgmr.msra.gmra.mrb[0].mxu0 %vm484_vm1, %v5790_v9  ;;  %v3130_v35 = vld [vmem:[%s5764_s22] sm:$0x77]  ;;  %v3145_v44 = vcombine.high %v3132_v41, %v3132_v41  ;;  %v3133_v46 = vld [vmem:[%s5764_s22 + $0x18] sm:$0x77]  ;;  %v3144_v48 = vcombine.high %v3131_v42, %v3131_v42  ;;  %v3600_v50 = vld [vmem:[%s5775_s26 + $0x8] sm:$0x77] }
  0x19   : > { %580 = vmatprep.mubr.f32.mxu1 %v5678_v0  ;;  %734 = vmatprep.mubr.f32.mxu0 %v5678_v0  ;;  %v3143_v37 = vcombine.high %v3130_v35, %v3130_v35  ;;  %v464_v39 = vld [vmem:[%s5764_s22 + $0x20] sm:$0x7]  ;;  %v3146_v52 = vcombine.high %v3133_v46, %v3133_v46  ;;  %v3601_v53 = vld [vmem:[%s5775_s26 + $0x10] sm:$0x77]  ;;  %v3602_v54 = vld [vmem:[%s5775_s26 + $0x18] sm:$0x77]  ;;  %v3613_v56 = vcombine.high %v3600_v50, %v3600_v50 }
  0x1a   : > { %1334 = vrot.lane.b32.xlu1 %v1311_v2, %s5679_s23  ;;  %5181 = vmatprep.subr.msk.mxu1 %vm491_vm0, %v481_v15  ;;  %v3134_v47 = vld [vmem:[%s5764_s22 + $0x20] sm:$0x7]  ;;  %v3614_v55 = vcombine.high %v3601_v53, %v3601_v53  ;;  %v3615_v57 = vcombine.high %v3602_v54, %v3602_v54  ;;  %v4068_v60 = vld [vmem:[%s5764_s22 + $0x8] sm:$0x77]  ;;  %v4069_v63 = vld [vmem:[%s5764_s22 + $0x10] sm:$0x77] }
  0x1b   : > { %5180 = vmatmul.mubr.msk.f32.gmra.mrb[2].mxu1 %vm484_vm1, %v5176_v16  ;;  %5399 = vmatprep.subr.msk.mxu0 %vm491_vm0, %v471_v18  ;;  %v3599_v49 = vld [vmem:[%s5775_s26] sm:$0x77]  ;;  %v4081_v62 = vcombine.high %v4068_v60, %v4068_v60  ;;  %v4082_v1 = vcombine.high %v4069_v63, %v4069_v63  ;;  %v4070_v2 = vld [vmem:[%s5764_s22 + $0x18] sm:$0x77] }
  0x1c   : > { %1338 = vrot.lane.b32.xlu0 %v1312_v12, %s5679_s23  ;;  %5188 = vmatmul.mubr.msk.f32.gmra.mrb[2].mxu0 %vm484_vm1, %v5176_v16  ;;  %v3612_v51 = vcombine.high %v3599_v49, %v3599_v49  ;;  %v3603_v58 = vld [vmem:[%s5775_s26 + $0x20] sm:$0x7]  ;;  %v4083_v3 = vcombine.high %v4070_v2, %v4070_v2 }
  0x1d   : > { %5182 = vmatpush1.msk.msra.mxu1 %vm491_vm0, %v468_v11  ;;  %651 = vmatprep.mubr.f32.mxu1 %v5678_v0  ;;  %v4067_v59 = vld [vmem:[%s5764_s22] sm:$0x77] }
  0x1e   : > { %1332 = vrot.lane.b32.xlu1 %v1323_v13, %s5679_s23  ;;  %5400 = vmatpush3.msk.msra.mxu0 %vm491_vm0, %v471_v18  ;;  %v4080_v61 = vcombine.high %v4067_v59, %v4067_v59  ;;  %v4071_v4 = vld [vmem:[%s5764_s22 + $0x20] sm:$0x7] }
  0x1f   : > { %5183 = vmatmul.mubr.msk.f32.vlgmr.msra.gmra.mrb[4].mxu1 %vm484_vm1, %v5790_v9  ;;  %5401 = vmatprep.mubr.msk.f32.mxu0 %vm484_vm1, %v5790_v9  ;;  %v5215_v10 = vld [vmem:[%s6524_s4 + $0x20] sm:$0xff] }
  0x20   : > { %1342 = vrot.lane.b32.xlu0 %v1313_v17, %s5679_s23  ;;  %5402 = vmatmul.mubr.msk.f32.vlgmr.msra.gmra.mrb[4].mxu0 %vm484_vm1, %v5176_v16 }
  0x21   : > { %657 = vmatprep.mubr.f32.mxu1 %v5678_v0  ;;  %5196 = vmatprep.subr.msk.mxu0 %vm491_vm0, %v898_v22  ;;  %v1779_v22 = vld [vmem:[%s5785_s29 + $0x8] sm:$0x77] }
  0x22   : > { %2681 = vrot.lane.b32.xlu1 %v2675_v19, %s5679_s23  ;;  %5197 = vmatpush1.msk.msra.mxu0 %vm491_vm0, %v460_v20 }
  0x23   : > { %5184 = vmatmul.mubr.msk.f32.gmra.mrb[6].mxu1 %vm484_vm1, %v5176_v16  ;;  %990 = vmatprep.mubr.f32.mxu0 %v5678_v0 }
  0x24   : > { %1340 = vrot.lane.b32.xlu0 %v1325_v21, %s5679_s23  ;;  %5189 = vmatprep.subr.msk.mxu1 %vm491_vm0, %v483_v26  ;;  %v1778_v21 = vld [vmem:[%s5785_s29] sm:$0x77] }
  0x25   : > { %5198 = vmatmul.mubr.msk.f32.vlgmr.msra.gmra.mrb[6].mxu0 %vm484_vm1, %v5838_v27  ;;  %5190 = vmatpush1.msk.msra.mxu1 %vm491_vm0, %v470_v23 }
  0x26   : > { %2679 = vrot.lane.b32.xlu1 %v2662_v14, %s5679_s23  ;;  %805 = vmatprep.mubr.f32.mxu1 %v5678_v0 }
  0x27   : > { %996 = vmatprep.mubr.f32.mxu0 %v5678_v0  ;;  %5191 = vmatmul.mubr.msk.f32.vlgmr.msra.gmra.mrb[8].mxu1 %vm484_vm1, %v5790_v9 }
  0x28   : > { %2683 = vrot.lane.b32.xlu0 %v2663_v24, %s5679_s23  ;;  %5204 = vmatprep.subr.msk.mxu0 %vm491_vm0, %v900_v31  ;;  %v1780_v31 = vld [vmem:[%s5785_s29 + $0x10] sm:$0x77] }
  0x29   : > { %5199 = vmatmul.mubr.msk.f32.gmra.mrb[8].mxu0 %vm484_vm1, %v466_v32  ;;  %811 = vmatprep.mubr.f32.mxu1 %v5678_v0 }
  0x2a   : > { %2691 = vrot.lane.b32.xlu1 %v2665_v29, %s5679_s23  ;;  %5205 = vmatpush1.msk.msra.mxu0 %vm491_vm0, %v462_v28  ;;  %v1792_v28 = vcombine.high %v1779_v22, %v1779_v22  ;;  %v1781_v29 = vld [vmem:[%s5785_s29 + $0x18] sm:$0x77] }
  0x2b   : > { %1144 = vmatprep.mubr.f32.mxu0 %v5678_v0  ;;  %5192 = vmatmul.mubr.msk.f32.gmra.mrb[10].mxu1 %vm484_vm1, %v5176_v16  ;;  %v5216_v16 = vld [vmem:[%s6524_s4 + $0x28] sm:$0xff] }
  0x2c   : > { %2689 = vrot.lane.b32.xlu0 %v2677_v30, %s5679_s23  ;;  %5200 = vmatprep.subr.msk.mxu1 %vm491_vm0, %v899_v36  ;;  %v5682_v36 = vmov 0  }
  0x2d   : > { %5206 = vmatmul.mubr.msk.f32.vlgmr.msra.gmra.mrb[0].mxu0 %vm484_vm1, %v5838_v27  ;;  %5201 = vmatpush1.msk.msra.mxu1 %vm491_vm0, %v461_v33 }
  0x2e   : > { %2695 = vrot.lane.b32.xlu1 %v2666_v34, %s5679_s23  ;;  %1067 = vmatprep.mubr.f32.mxu1 %v5678_v0  ;;  %v1793_v34 = vcombine.high %v1780_v31, %v1780_v31 }
  0x2f   : > { %1150 = vmatprep.mubr.f32.mxu0 %v5678_v0  ;;  %5202 = vmatmul.mubr.msk.f32.vlgmr.msra.gmra.mrb[4].mxu1 %vm484_vm1, %v5838_v27 }
  0x30   : > { %2687 = vrot.lane.b32.xlu0 %v2664_v25, %s5679_s23  ;;  %5404 = vmatprep.subr.msk.mxu0 %vm491_vm0, %v464_v39  ;;  %v1791_v25 = vcombine.high %v1778_v21, %v1778_v21 }
  0x31   : > { %5207 = vmatmul.mubr.msk.f32.gmra.mrb[2].mxu0 %vm484_vm1, %v466_v32  ;;  %1073 = vmatprep.mubr.f32.mxu1 %v5678_v0 }
  0x32   : > { %3149 = vrot.lane.b32.xlu1 %v3143_v37, %s5680_s24  ;;  %5405 = vmatpush3.msk.msra.mxu0 %vm491_vm0, %v464_v39  ;;  %v5236_v39 = vld [vmem:[%s6524_s4 + $0x30] sm:$0xff] }
  0x33   : > { %5406 = vmatprep.mubr.msk.f32.mxu0 %vm484_vm1, %v5838_v27  ;;  %5203 = vmatmul.mubr.msk.f32.gmra.mrb[6].mxu1 %vm484_vm1, %v466_v32 }
  0x34   : > { %2685 = vrot.lane.b32.xlu0 %v2676_v38, %s5679_s23  ;;  %5208 = vmatprep.subr.msk.mxu1 %vm491_vm0, %v901_v43  ;;  %v4554_v38 = vld [vmem:[%s6525_s5] sm:$0xff] }
  0x35   : > { %5407 = vmatmul.mubr.msk.f32.vlgmr.msra.gmra.mrb[4].mxu0 %vm484_vm1, %v466_v32  ;;  %5209 = vmatpush1.msk.msra.mxu1 %vm491_vm0, %v463_v40  ;;  %v2221_v40 = vld [vmem:[%s5984_s12 + $0x8] sm:$0x77] }
  0x36   : > { %3147 = vrot.lane.b32.xlu1 %v3130_v35, %s5680_s24  ;;  %1221 = vmatprep.mubr.f32.mxu1 %v5678_v0  ;;  %v2234_v43 = vcombine.high %v2221_v40, %v2221_v40 }
  0x37   : > { %1441 = vmatprep.mubr.f32.mxu0 %v5678_v0  ;;  %5210 = vmatmul.mubr.msk.f32.vlgmr.msra.gmra.mrb[8].mxu1 %vm484_vm1, %v5838_v27 }
  0x38   : > { %3151 = vrot.lane.b32.xlu0 %v3131_v42, %s5680_s24  ;;  %1227 = vmatprep.mubr.f32.mxu1 %v5678_v0  ;;  %v1782_v42 = vld [vmem:[%s5785_s29 + $0x20] sm:$0x7] }
  0x39   : > { %5632 = vset.pattern.permute.xlu1 %v5682_v36  ;;  %5633 = vset.pattern.permute.xlu0 %v5682_v36 }
  0x3a   : > { %3157 = vrot.lane.b32.xlu1 %v3145_v44, %s5680_s24 }
  0x3b   : > { %5211 = vmatmul.mubr.msk.f32.gmra.mrb[10].mxu1 %vm484_vm1, %v466_v32  ;;  %v1794_v32 = vcombine.high %v1781_v29, %v1781_v29 }
  0x3c   : > { %2693 = vrot.lane.b32.xlu0 %v2678_v45, %s5679_s23  ;;  %1518 = vmatprep.mubr.f32.mxu1 %v5678_v0  ;;  %s5681_s23 = smov 94   ;;  %v5237_v45 = vld [vmem:[%s6524_s4 + $0x38] sm:$0xff] }
  0x3e   : > { %3155 = vrot.lane.b32.xlu1 %v3132_v41, %s5680_s24 }
  0x40   : > { %3159 = vrot.lane.b32.xlu0 %v3133_v46, %s5680_s24 }
  0x42   : > { %3163 = vrot.lane.b32.xlu1 %v3134_v47, %s5680_s24  ;;  %v4584_v47 = vld [vmem:[%s6526_s6] sm:$0xff] }
  0x44   : > { %3153 = vrot.lane.b32.xlu0 %v3144_v48, %s5680_s24  ;;  %v2220_v48 = vld [vmem:[%s5984_s12] sm:$0x77] }
  0x46   : > { %3620 = vrot.lane.b32.xlu1 %v3600_v50, %s5680_s24 }
  0x48   : > { %3618 = vrot.lane.b32.xlu0 %v3612_v51, %s5680_s24  ;;  %v2223_v51 = vld [vmem:[%s5984_s12 + $0x18] sm:$0x77] }
  0x4a   : > { %3161 = vrot.lane.b32.xlu1 %v3146_v52, %s5680_s24  ;;  %v2233_v52 = vcombine.high %v2220_v48, %v2220_v48 }
  0x4c   : > { %3616 = vrot.lane.b32.xlu0 %v3599_v49, %s5680_s24  ;;  %v4555_v49 = vld [vmem:[%s6525_s5 + $0x8] sm:$0xff] }
  0x4e   : > { %3628 = vrot.lane.b32.xlu1 %v3602_v54, %s5680_s24  ;;  %v2236_v54 = vcombine.high %v2223_v51, %v2223_v51 }
  0x50   : > { %3626 = vrot.lane.b32.xlu0 %v3614_v55, %s5680_s24 }
  0x52   : > { %3622 = vrot.lane.b32.xlu1 %v3613_v56, %s5680_s24 }
  0x54   : > { %3624 = vrot.lane.b32.xlu0 %v3601_v53, %s5680_s24 }
  0x56   : > { %3630 = vrot.lane.b32.xlu1 %v3615_v57, %s5680_s24  ;;  %v4585_v57 = vld [vmem:[%s6526_s6 + $0x8] sm:$0xff] }
  0x58   : > { %3632 = vrot.lane.b32.xlu0 %v3603_v58, %s5680_s24  ;;  %v2222_v58 = vld [vmem:[%s5984_s12 + $0x10] sm:$0x77]  ;;  %s5616_s24 = smul.u32 72, %s6533_s18 }
  0x5a   : > { %4088 = vrot.lane.b32.xlu1 %v4068_v60, %s5681_s23  ;;  %s6505_s26 = scalar_lea.vmem %s6531_s11, %s5616_s24 }
  0x5c   : > { %4086 = vrot.lane.b32.xlu0 %v4080_v61, %s5681_s23  ;;  %v2235_v61 = vcombine.high %v2222_v58, %v2222_v58 }
  0x5e   : > { %4090 = vrot.lane.b32.xlu1 %v4081_v62, %s5681_s23 }
  0x60   : > { %4084 = vrot.lane.b32.xlu0 %v4067_v59, %s5681_s23  ;;  %v5001_v59 = vld [vmem:[%s6528_s8] sm:$0xff] }
  0x62   : > { %4094 = vrot.lane.b32.xlu1 %v4082_v1, %s5681_s23 }
  0x64   : > { %4092 = vrot.lane.b32.xlu0 %v4069_v63, %s5681_s23  ;;  %v5257_v63 = vld [vmem:[%s6524_s4 + $0x40] sm:$0xff] }
  0x66   : > { %4098 = vrot.lane.b32.xlu1 %v4083_v3, %s5681_s23 }
  0x68   : > { %4096 = vrot.lane.b32.xlu0 %v4070_v2, %s5681_s23 }
  0x6a   : > { %4558 = vperm.xlu1 %5632, %v4554_v38  }
  0x6c   : > { %4100 = vrot.lane.b32.xlu0 %v4071_v4, %s5681_s23  ;;  %v5258_v4 = vld [vmem:[%s6524_s4 + $0x48] sm:$0xff] }
  0x6e   : > { %4588 = vperm.xlu1 %5632, %v4584_v47  }
  0x70   : > { %4563 = vperm.xlu0 %5633, %v4555_v49  }
  0x72   : > { %4593 = vperm.xlu1 %5632, %v4585_v57  }
  0x74   : > { %5004 = vperm.xlu0 %5633, %v5001_v59  }
  0x84   : > { %v1327_v5 = vpop.permute.xlu1 %1326 }
  0x86   : > { %v1329_v6 = vpop.permute.xlu0 %1328 }
  0x87   : > { %v1345_v11 = vsel %vm1344_vm2, %v1327_v5, %v1329_v6  ;;  %v2224_v5 = vld [vmem:[%s5984_s12 + $0x20] sm:$0x7] }
  0x88   : > { %v1337_v7 = vpop.permute.xlu1 %1336 }
  0x8a   : > { %v1331_v8 = vpop.permute.xlu0 %1330 }
  0x8b   : > { %v1346_v9 = vsel %vm1344_vm2, %v1329_v6, %v1331_v8 }
  0x8c   : > { %v1335_v12 = vpop.permute.xlu1 %1334  ;;  %5217 = vmatprep.subr.msk.mxu0 %vm491_vm0, %v1346_v9 }
  0x8d   : > { %5218 = vmatpush1.msk.msra.mxu0 %vm491_vm0, %v1345_v11  ;;  %v1349_v13 = vsel %vm1344_vm2, %v1335_v12, %v1337_v7 }
  0x8e   : > { %v1339_v14 = vpop.permute.xlu0 %1338  ;;  %5219 = vmatmul.mubr.msk.f32.vlgmr.msra.gmra.mrb[6].mxu0 %vm484_vm1, %v5215_v10 }
  0x8f   : > { %v1350_v15 = vsel %vm1344_vm2, %v1337_v7, %v1339_v14  ;;  %1447 = vmatprep.mubr.f32.mxu0 %v5678_v0  ;;  %v5016_v7 = vld [vmem:[%s6529_s9] sm:$0xff] }
  0x90   : > { %v1333_v17 = vpop.permute.xlu1 %1332  ;;  %5225 = vmatprep.subr.msk.mxu0 %vm491_vm0, %v1350_v15  ;;  %5019 = vperm.xlu1 %5632, %v5016_v7   ;;  %v5278_v15 = vld [vmem:[%s6524_s4 + $0x50] sm:$0xff] }
  0x91   : > { %v1347_v18 = vsel %vm1344_vm2, %v1331_v8, %v1333_v17  ;;  %v1348_v19 = vsel %vm1344_vm2, %v1333_v17, %v1335_v12  ;;  %5226 = vmatpush1.msk.msra.mxu0 %vm491_vm0, %v1349_v13 }
  0x92   : > { %v1343_v20 = vpop.permute.xlu0 %1342  ;;  %5220 = vmatmul.mubr.msk.f32.gmra.mrb[8].mxu0 %vm484_vm1, %v5216_v16  ;;  %5221 = vmatprep.subr.msk.mxu1 %vm491_vm0, %v1348_v19 }
  0x93   : > { %5222 = vmatpush1.msk.msra.mxu1 %vm491_vm0, %v1347_v18  ;;  %1595 = vmatprep.mubr.f32.mxu0 %v5678_v0 }
  0x94   : > { %5223 = vmatmul.mubr.msk.f32.vlgmr.msra.gmra.mrb[4].mxu1 %vm484_vm1, %v5215_v10  ;;  %5409 = vmatprep.subr.msk.mxu0 %vm491_vm0, %v1343_v20  ;;  %v5957_v23 = vpop.permute.xlu1 %2681 }
  0x95   : > { %1524 = vmatprep.mubr.f32.mxu1 %v5678_v0 }
  0x96   : > { %v1341_v24 = vpop.permute.xlu0 %1340  ;;  %5227 = vmatmul.mubr.msk.f32.vlgmr.msra.gmra.mrb[0].mxu0 %vm484_vm1, %v5215_v10 }
  0x97   : > { %v1351_v26 = vsel %vm1344_vm2, %v1339_v14, %v1341_v24  ;;  %v1352_v27 = vsel %vm1344_vm2, %v1341_v24, %v1343_v20  ;;  %1601 = vmatprep.mubr.f32.mxu0 %v5678_v0  ;;  %5410 = vmatpush3.msk.msra.mxu0 %vm491_vm0, %v1343_v20 }
  0x98   : > { %5224 = vmatmul.mubr.msk.f32.gmra.mrb[6].mxu1 %vm484_vm1, %v5216_v16  ;;  %5229 = vmatprep.subr.msk.mxu1 %vm491_vm0, %v1352_v27  ;;  %v5968_v30 = vpop.permute.xlu1 %2679 }
  0x99   : > { %5230 = vmatpush1.msk.msra.mxu1 %vm491_vm0, %v1351_v26  ;;  %1672 = vmatprep.mubr.f32.mxu1 %v5678_v0  ;;  %v2697_v19 = vsel %vm1344_vm2, %v5968_v30, %v5957_v23 }
  0x9a   : > { %5228 = vmatmul.mubr.msk.f32.gmra.mrb[2].mxu0 %vm484_vm1, %v5216_v16  ;;  %5238 = vmatprep.subr.msk.mxu0 %vm491_vm0, %v1791_v25  ;;  %v5975_v33 = vpop.permute.xlu0 %2683 }
  0x9b   : > { %5411 = vmatprep.mubr.msk.f32.mxu0 %vm484_vm1, %v5215_v10  ;;  %5242 = vmatprep.subr.msk.mxu1 %vm491_vm0, %v1792_v28  ;;  %v2698_v12 = vsel %vm1344_vm2, %v5957_v23, %v5975_v33 }
  0x9c   : > { %5231 = vmatmul.mubr.msk.f32.vlgmr.msra.gmra.mrb[8].mxu1 %vm484_vm1, %v5215_v10  ;;  %v5986_v35 = vpop.permute.xlu1 %2691 }
  0x9d   : > { %1678 = vmatprep.mubr.f32.mxu1 %v5678_v0  ;;  %5243 = vmatpush1.msk.msra.mxu1 %vm491_vm0, %v1779_v22 }
  0x9e   : > { %5412 = vmatmul.mubr.msk.f32.vlgmr.msra.gmra.mrb[4].mxu0 %vm484_vm1, %v5216_v16  ;;  %5250 = vmatprep.subr.msk.mxu1 %vm491_vm0, %v1794_v32  ;;  %v5992_v37 = vpop.permute.xlu0 %2689  ;;  %v6182_v32 = vld [vmem:[%s6524_s4 + $0x60] sm:$0xff] }
  0x9f   : > { %5239 = vmatpush1.msk.msra.mxu0 %vm491_vm0, %v1778_v21  ;;  %1883 = vmatprep.mubr.f32.mxu0 %v5678_v0  ;;  %v2702_v20 = vsel %vm1344_vm2, %v5992_v37, %v5986_v35  ;;  %v5279_v21 = vld [vmem:[%s6524_s4 + $0x58] sm:$0xff] }
  0xa0   : > { %5232 = vmatmul.mubr.msk.f32.gmra.mrb[10].mxu1 %vm484_vm1, %v5216_v16  ;;  %5246 = vmatprep.subr.msk.mxu0 %vm491_vm0, %v1793_v34  ;;  %v6005_v41 = vpop.permute.xlu1 %2695 }
  0xa1   : > { %1960 = vmatprep.mubr.f32.mxu1 %v5678_v0 }
  0xa2   : > { %5240 = vmatmul.mubr.msk.f32.vlgmr.msra.gmra.mrb[6].mxu0 %vm484_vm1, %v5236_v39  ;;  %v6010_v44 = vpop.permute.xlu0 %2687 }
  0xa3   : > { %1889 = vmatprep.mubr.f32.mxu0 %v5678_v0  ;;  %5247 = vmatpush1.msk.msra.mxu0 %vm491_vm0, %v1780_v31  ;;  %v2701_v24 = vsel %vm1344_vm2, %v6010_v44, %v5992_v37 }
  0xa4   : > { %5244 = vmatmul.mubr.msk.f32.vlgmr.msra.gmra.mrb[4].mxu1 %vm484_vm1, %v5236_v39  ;;  %5414 = vmatprep.subr.msk.mxu0 %vm491_vm0, %v1782_v42  ;;  %v6019_v46 = vpop.permute.xlu1 %3149 }
  0xa5   : > { %1966 = vmatprep.mubr.f32.mxu1 %v5678_v0  ;;  %5251 = vmatpush1.msk.msra.mxu1 %vm491_vm0, %v1781_v29 }
  0xa6   : > { %5241 = vmatmul.mubr.msk.f32.gmra.mrb[8].mxu0 %vm484_vm1, %v5237_v45  ;;  %5263 = vmatprep.subr.msk.mxu1 %vm491_vm0, %v2234_v43  ;;  %v2686_v50 = vpop.permute.xlu0 %2685 }
  0xa7   : > { %2037 = vmatprep.mubr.f32.mxu0 %v5678_v0  ;;  %v2700_v2 = vsel %vm1344_vm2, %v2686_v50, %v6010_v44  ;;  %v2699_v8 = vsel %vm1344_vm2, %v5975_v33, %v2686_v50 }
  0xa8   : > { %5245 = vmatmul.mubr.msk.f32.gmra.mrb[6].mxu1 %vm484_vm1, %v5237_v45  ;;  %v6035_v53 = vpop.permute.xlu1 %3147 }
  0xa9   : > { %2114 = vmatprep.mubr.f32.mxu1 %v5678_v0  ;;  %v3166_v38 = vsel %vm3165_vm3, %v6035_v53, %v6019_v46 }
  0xaa   : > { %5248 = vmatmul.mubr.msk.f32.vlgmr.msra.gmra.mrb[0].mxu0 %vm484_vm1, %v5236_v39  ;;  %v6039_v55 = vpop.permute.xlu0 %3151 }
  0xab   : > { %2043 = vmatprep.mubr.f32.mxu0 %v5678_v0  ;;  %5415 = vmatpush3.msk.msra.mxu0 %vm491_vm0, %v1782_v42  ;;  %v3167_v31 = vsel %vm3165_vm3, %v6019_v46, %v6039_v55 }
  0xac   : > { %5252 = vmatmul.mubr.msk.f32.vlgmr.msra.gmra.mrb[8].mxu1 %vm484_vm1, %v5236_v39  ;;  %5259 = vmatprep.subr.msk.mxu0 %vm491_vm0, %v2233_v52  ;;  %v6045_v56 = vpop.permute.xlu1 %3157 }
  0xad   : > { %2120 = vmatprep.mubr.f32.mxu1 %v5678_v0  ;;  %5264 = vmatpush1.msk.msra.mxu1 %vm491_vm0, %v2221_v40 }
  0xae   : > { %5249 = vmatmul.mubr.msk.f32.gmra.mrb[2].mxu0 %vm484_vm1, %v5237_v45  ;;  %5271 = vmatprep.subr.msk.mxu1 %vm491_vm0, %v2236_v54  ;;  %v2694_v60 = vpop.permute.xlu0 %2693 }
  0xaf   : > { %5416 = vmatprep.mubr.msk.f32.mxu0 %vm484_vm1, %v5236_v39  ;;  %v2704_v11 = vsel %vm1344_vm2, %v2694_v60, %v6005_v41  ;;  %v2703_v16 = vsel %vm1344_vm2, %v5986_v35, %v2694_v60  ;;  %v5300_v35 = vld [vmem:[%s6524_s4 + $0x68] sm:$0xff] }
  0xb0   : > { %5253 = vmatmul.mubr.msk.f32.gmra.mrb[10].mxu1 %vm484_vm1, %v5237_v45  ;;  %v6060_v62 = vpop.permute.xlu1 %3155 }
  0xb1   : > { %2402 = vmatprep.mubr.f32.mxu1 %v5678_v0  ;;  %v3170_v42 = vsel %vm3165_vm3, %v6060_v62, %v6045_v56 }
  0xb2   : > { %5417 = vmatmul.mubr.msk.f32.vlgmr.msra.gmra.mrb[4].mxu0 %vm484_vm1, %v5237_v45  ;;  %v6067_v1 = vpop.permute.xlu0 %3159  ;;  %v6244_v45 = vld [vmem:[%s6524_s4 + $0x70] sm:$0xff] }
  0xb3   : > { %5260 = vmatpush1.msk.msra.mxu0 %vm491_vm0, %v2220_v48  ;;  %2325 = vmatprep.mubr.f32.mxu0 %v5678_v0  ;;  %v3171_v39 = vsel %vm3165_vm3, %v6045_v56, %v6067_v1 }
  0xb4   : > { %5265 = vmatmul.mubr.msk.f32.vlgmr.msra.gmra.mrb[4].mxu1 %vm484_vm1, %v5257_v63  ;;  %5267 = vmatprep.subr.msk.mxu0 %vm491_vm0, %v2235_v61  ;;  %v6075_v3 = vpop.permute.xlu1 %3163  ;;  %v5341_v61 = vld [vmem:[%s6524_s4 + $0x80] sm:$0xff] }
  0xb5   : > { %2408 = vmatprep.mubr.f32.mxu1 %v5678_v0  ;;  %5272 = vmatpush1.msk.msra.mxu1 %vm491_vm0, %v2223_v51  ;;  %v5321_v51 = vld [vmem:[%s6524_s4 + $0x78] sm:$0xff] }
  0xb6   : > { %5261 = vmatmul.mubr.msk.f32.vlgmr.msra.gmra.mrb[6].mxu0 %vm484_vm1, %v5257_v63  ;;  %5284 = vmatprep.subr.msk.mxu1 %vm491_vm0, %v2700_v2  ;;  %v3154_v6 = vpop.permute.xlu0 %3153  ;;  %v5342_v2 = vld [vmem:[%s6524_s4 + $0x88] sm:$0xff] }
  0xb7   : > { %2331 = vmatprep.mubr.f32.mxu0 %v5678_v0  ;;  %5268 = vmatpush1.msk.msra.mxu0 %vm491_vm0, %v2222_v58  ;;  %v3169_v18 = vsel %vm3165_vm3, %v3154_v6, %v6060_v62  ;;  %v3168_v25 = vsel %vm3165_vm3, %v6039_v55, %v3154_v6 }
  0xb8   : > { %5266 = vmatmul.mubr.msk.f32.gmra.mrb[6].mxu1 %vm484_vm1, %v5258_v4  ;;  %5419 = vmatprep.subr.msk.mxu0 %vm491_vm0, %v2224_v5  ;;  %v6096_v9 = vpop.permute.xlu1 %3620 }
  0xb9   : > { %2556 = vmatprep.mubr.f32.mxu1 %v5678_v0 }
  0xba   : > { %5262 = vmatmul.mubr.msk.f32.gmra.mrb[8].mxu0 %vm484_vm1, %v5258_v4  ;;  %v6098_v10 = vpop.permute.xlu0 %3618 }
  0xbb   : > { %2479 = vmatprep.mubr.f32.mxu0 %v5678_v0  ;;  %v3635_v50 = vsel %vm3165_vm3, %v6098_v10, %v6096_v9 }
  0xbc   : > { %5273 = vmatmul.mubr.msk.f32.vlgmr.msra.gmra.mrb[8].mxu1 %vm484_vm1, %v5257_v63  ;;  %v3162_v14 = vpop.permute.xlu1 %3161 }
  0xbd   : > { %2562 = vmatprep.mubr.f32.mxu1 %v5678_v0  ;;  %5285 = vmatpush1.msk.msra.mxu1 %vm491_vm0, %v2699_v8  ;;  %v3173_v27 = vsel %vm3165_vm3, %v3162_v14, %v6075_v3  ;;  %v3172_v33 = vsel %vm3165_vm3, %v6067_v1, %v3162_v14 }
  0xbe   : > { %5269 = vmatmul.mubr.msk.f32.vlgmr.msra.gmra.mrb[0].mxu0 %vm484_vm1, %v5257_v63  ;;  %5292 = vmatprep.subr.msk.mxu1 %vm491_vm0, %v2704_v11  ;;  %v6111_v13 = vpop.permute.xlu0 %3616 }
  0xbf   : > { %2485 = vmatprep.mubr.f32.mxu0 %v5678_v0  ;;  %5420 = vmatpush3.msk.msra.mxu0 %vm491_vm0, %v2224_v5  ;;  %v3634_v56 = vsel %vm3165_vm3, %v6111_v13, %v6098_v10 }
  0xc0   : > { %5274 = vmatmul.mubr.msk.f32.gmra.mrb[10].mxu1 %vm484_vm1, %v5258_v4  ;;  %5280 = vmatprep.subr.msk.mxu0 %vm491_vm0, %v2698_v12  ;;  %v6143_v22 = vpop.permute.xlu1 %3628 }
  0xc1   : > { %2870 = vmatprep.mubr.f32.mxu1 %v5678_v0 }
  0xc2   : > { %5270 = vmatmul.mubr.msk.f32.gmra.mrb[2].mxu0 %vm484_vm1, %v5258_v4  ;;  %v6124_v17 = vpop.permute.xlu0 %3626 }
  0xc3   : > { %5421 = vmatprep.mubr.msk.f32.mxu0 %vm484_vm1, %v5257_v63  ;;  %v3639_v57 = vsel %vm3165_vm3, %v6124_v17, %v6143_v22 }
  0xc4   : > { %5286 = vmatmul.mubr.msk.f32.vlgmr.msra.gmra.mrb[4].mxu1 %vm484_vm1, %v5278_v15  ;;  %v3623_v28 = vpop.permute.xlu1 %3622 }
  0xc5   : > { %2876 = vmatprep.mubr.f32.mxu1 %v5678_v0  ;;  %5293 = vmatpush1.msk.msra.mxu1 %vm491_vm0, %v2703_v16  ;;  %v3636_v40 = vsel %vm3165_vm3, %v6096_v9, %v3623_v28 }
  0xc6   : > { %5422 = vmatmul.mubr.msk.f32.vlgmr.msra.gmra.mrb[4].mxu0 %vm484_vm1, %v5258_v4  ;;  %5305 = vmatprep.subr.msk.mxu1 %vm491_vm0, %v3169_v18  ;;  %v6145_v23 = vpop.permute.xlu0 %3624 }
  0xc7   : > { %5281 = vmatpush1.msk.msra.mxu0 %vm491_vm0, %v2697_v19  ;;  %2793 = vmatprep.mubr.f32.mxu0 %v5678_v0  ;;  %v3637_v34 = vsel %vm3165_vm3, %v3623_v28, %v6145_v23  ;;  %v3638_v60 = vsel %vm3165_vm3, %v6145_v23, %v6124_v17 }
  0xc8   : > { %5287 = vmatmul.mubr.msk.f32.gmra.mrb[6].mxu1 %vm484_vm1, %v5279_v21  ;;  %5288 = vmatprep.subr.msk.mxu0 %vm491_vm0, %v2702_v20  ;;  %v3631_v29 = vpop.permute.xlu1 %3630 }
  0xc9   : > { %3024 = vmatprep.mubr.f32.mxu1 %v5678_v0  ;;  %v3640_v46 = vsel %vm3165_vm3, %v6143_v22, %v3631_v29 }
  0xca   : > { %5282 = vmatmul.mubr.msk.f32.vlgmr.msra.gmra.mrb[6].mxu0 %vm484_vm1, %v5278_v15  ;;  %v6158_v26 = vpop.permute.xlu0 %3632 }
  0xcb   : > { %5289 = vmatpush1.msk.msra.mxu0 %vm491_vm0, %v2701_v24  ;;  %2799 = vmatprep.mubr.f32.mxu0 %v5678_v0 }
  0xcc   : > { %5294 = vmatmul.mubr.msk.f32.vlgmr.msra.gmra.mrb[8].mxu1 %vm484_vm1, %v5278_v15  ;;  %5424 = vmatprep.subr.msk.mxu0 %vm491_vm0, %v6005_v41  ;;  %v6202_v36 = vpop.permute.xlu1 %4088 }
  0xcd   : > { %3030 = vmatprep.mubr.f32.mxu1 %v5678_v0  ;;  %5306 = vmatpush1.msk.msra.mxu1 %vm491_vm0, %v3168_v25 }
  0xce   : > { %5283 = vmatmul.mubr.msk.f32.gmra.mrb[8].mxu0 %vm484_vm1, %v5279_v21  ;;  %5313 = vmatprep.subr.msk.mxu1 %vm491_vm0, %v3173_v27  ;;  %v6173_v30 = vpop.permute.xlu0 %4086 }
  0xcf   : > { %2947 = vmatprep.mubr.f32.mxu0 %v5678_v0 }
  0xd0   : > { %5295 = vmatmul.mubr.msk.f32.gmra.mrb[10].mxu1 %vm484_vm1, %v5279_v21  ;;  %v4091_v43 = vpop.permute.xlu1 %4090 }
  0xd1   : > { %3339 = vmatprep.mubr.f32.mxu1 %v5678_v0  ;;  %v4105_v54 = vsel %vm4102_vm4, %v6202_v36, %v4091_v43 }
  0xd2   : > { %5290 = vmatmul.mubr.msk.f32.vlgmr.msra.gmra.mrb[0].mxu0 %vm484_vm1, %v5278_v15  ;;  %v6204_v37 = vpop.permute.xlu0 %4084 }
  0xd3   : > { %5425 = vmatpush3.msk.msra.mxu0 %vm491_vm0, %v6005_v41  ;;  %2953 = vmatprep.mubr.f32.mxu0 %v5678_v0  ;;  %v3641_v41 = vsel %vm3165_vm3, %v3631_v29, %v6158_v26  ;;  %v4103_v4 = vsel %vm4102_vm4, %v6204_v37, %v6173_v30 }
  0xd4   : > { %5307 = vmatmul.mubr.msk.f32.vlgmr.msra.gmra.mrb[4].mxu1 %vm484_vm1, %v6182_v32  ;;  %5301 = vmatprep.subr.msk.mxu0 %vm491_vm0, %v3167_v31  ;;  %v6249_v47 = vpop.permute.xlu1 %4094 }
  0xd5   : > { %3345 = vmatprep.mubr.f32.mxu1 %v5678_v0  ;;  %5314 = vmatpush1.msk.msra.mxu1 %vm491_vm0, %v3172_v33 }
  0xd6   : > { %5291 = vmatmul.mubr.msk.f32.gmra.mrb[2].mxu0 %vm484_vm1, %v5279_v21  ;;  %5326 = vmatprep.subr.msk.mxu1 %vm491_vm0, %v3637_v34  ;;  %v6228_v44 = vpop.permute.xlu0 %4092 }
  0xd7   : > { %5426 = vmatprep.mubr.msk.f32.mxu0 %vm484_vm1, %v5278_v15  ;;  %v4106_v49 = vsel %vm4102_vm4, %v4091_v43, %v6228_v44  ;;  %v4107_v6 = vsel %vm4102_vm4, %v6228_v44, %v6249_v47 }
  0xd8   : > { %5308 = vmatmul.mubr.msk.f32.gmra.mrb[6].mxu1 %vm484_vm1, %v5300_v35  ;;  %v4099_v52 = vpop.permute.xlu1 %4098 }
  0xd9   : > { %3493 = vmatprep.mubr.f32.mxu1 %v5678_v0 }
  0xda   : > { %5427 = vmatmul.mubr.msk.f32.vlgmr.msra.gmra.mrb[4].mxu0 %vm484_vm1, %v5279_v21  ;;  %v6251_v48 = vpop.permute.xlu0 %4096 }
  0xdb   : > { %5302 = vmatpush1.msk.msra.mxu0 %vm491_vm0, %v3166_v38  ;;  %3262 = vmatprep.mubr.f32.mxu0 %v5678_v0  ;;  %v4109_v62 = vsel %vm4102_vm4, %v6251_v48, %v4099_v52  ;;  %v4108_v5 = vsel %vm4102_vm4, %v6249_v47, %v6251_v48 }
  0xdc   : > { %5315 = vmatmul.mubr.msk.f32.vlgmr.msra.gmra.mrb[8].mxu1 %vm484_vm1, %v6182_v32  ;;  %5309 = vmatprep.subr.msk.mxu0 %vm491_vm0, %v3171_v39 }
  0xdd   : > { %3499 = vmatprep.mubr.f32.mxu1 %v5678_v0  ;;  %5327 = vmatpush1.msk.msra.mxu1 %vm491_vm0, %v3636_v40 }
  0xde   : > { %5303 = vmatmul.mubr.msk.f32.vlgmr.msra.gmra.mrb[6].mxu0 %vm484_vm1, %v6182_v32  ;;  %5334 = vmatprep.subr.msk.mxu1 %vm491_vm0, %v3641_v41  ;;  %v4101_v53 = vpop.permute.xlu0 %4100 }
  0xdf   : > { %5310 = vmatpush1.msk.msra.mxu0 %vm491_vm0, %v3170_v42  ;;  %3268 = vmatprep.mubr.f32.mxu0 %v5678_v0  ;;  %v4110_v55 = vsel %vm4102_vm4, %v4099_v52, %v4101_v53 }
  0xe0   : > { %5316 = vmatmul.mubr.msk.f32.gmra.mrb[10].mxu1 %vm484_vm1, %v5300_v35  ;;  %5429 = vmatprep.subr.msk.mxu0 %vm491_vm0, %v6075_v3 }
  0xe1   : > { %3807 = vmatprep.mubr.f32.mxu1 %v5678_v0 }
  0xe2   : > { %5304 = vmatmul.mubr.msk.f32.gmra.mrb[8].mxu0 %vm484_vm1, %v5300_v35 }
  0xe3   : > { %3416 = vmatprep.mubr.f32.mxu0 %v5678_v0 }
  0xe4   : > { %5328 = vmatmul.mubr.msk.f32.vlgmr.msra.gmra.mrb[4].mxu1 %vm484_vm1, %v6244_v45 }
  0xe5   : > { %3813 = vmatprep.mubr.f32.mxu1 %v5678_v0  ;;  %5335 = vmatpush1.msk.msra.mxu1 %vm491_vm0, %v3640_v46 }
  0xe6   : > { %5311 = vmatmul.mubr.msk.f32.vlgmr.msra.gmra.mrb[0].mxu0 %vm484_vm1, %v6182_v32  ;;  %5347 = vmatprep.subr.msk.mxu1 %vm491_vm0, %v4106_v49 }
  0xe7   : > { %5430 = vmatpush3.msk.msra.mxu0 %vm491_vm0, %v6075_v3  ;;  %3422 = vmatprep.mubr.f32.mxu0 %v5678_v0  ;;  %v4104_v3 = vsel %vm4102_vm4, %v6173_v30, %v6202_v36 }
  0xe8   : > { %5329 = vmatmul.mubr.msk.f32.gmra.mrb[6].mxu1 %vm484_vm1, %v5321_v51  ;;  %5322 = vmatprep.subr.msk.mxu0 %vm491_vm0, %v3635_v50 }
  0xe9   : > { %3961 = vmatprep.mubr.f32.mxu1 %v5678_v0  ;;  %v6371_v7 = vpop.permute.xlu1 %4558 }
  0xea   : > { %5312 = vmatmul.mubr.msk.f32.gmra.mrb[2].mxu0 %vm484_vm1, %v5300_v35  ;;  %v6293_v58 = vpop.f32.mrb[0].mxu1 }
  0xeb   : > { %5431 = vmatprep.mubr.msk.f32.mxu0 %vm484_vm1, %v6182_v32  ;;  %v6297_v59 = vpop.f32.mrb[1].mxu1 }
  0xec   : > { %5336 = vmatmul.mubr.msk.f32.vlgmr.msra.gmra.mrb[8].mxu1 %vm484_vm1, %v6244_v45 }
  0xed   : > { %3967 = vmatprep.mubr.f32.mxu1 %v5678_v0  ;;  %5348 = vmatpush1.msk.msra.mxu1 %vm491_vm0, %v4105_v54  ;;  %v6373_v9 = vpop.permute.xlu1 %4588 }
  0xee   : > { %5432 = vmatmul.mubr.msk.f32.vlgmr.msra.gmra.mrb[4].mxu0 %vm484_vm1, %v5300_v35  ;;  %5355 = vmatprep.subr.msk.mxu1 %vm491_vm0, %v4110_v55  ;;  %v6312_v63 = vpop.f32.mrb[2].mxu1 }
  0xef   : > { %5323 = vmatpush1.msk.msra.mxu0 %vm491_vm0, %v3634_v56  ;;  %3730 = vmatprep.mubr.f32.mxu0 %v5678_v0  ;;  %v6316_v1 = vpop.f32.mrb[3].mxu1  ;;  %v6378_v16 = vpop.permute.xlu0 %4563 }
  0xf0   : > { %5337 = vmatmul.mubr.msk.f32.gmra.mrb[10].mxu1 %vm484_vm1, %v5321_v51  ;;  %5330 = vmatprep.subr.msk.mxu0 %vm491_vm0, %v3639_v57 }
  0xf1   : > { %4276 = vmatprep.mubr.f32.mxu1 %v5678_v0  ;;  %v6388_v21 = vpop.permute.xlu1 %4593 }
  0xf2   : > { %5324 = vmatmul.mubr.msk.f32.vlgmr.msra.gmra.mrb[6].mxu0 %vm484_vm1, %v6244_v45 }
  0xf3   : > { %5331 = vmatpush1.msk.msra.mxu0 %vm491_vm0, %v3638_v60  ;;  %3736 = vmatprep.mubr.f32.mxu0 %v5678_v0 }
  0xf4   : > { %5349 = vmatmul.mubr.msk.f32.vlgmr.msra.gmra.mrb[4].mxu1 %vm484_vm1, %v5341_v61  ;;  %5434 = vmatprep.subr.msk.mxu0 %vm491_vm0, %v6158_v26 }
  0xf5   : > { %4282 = vmatprep.mubr.f32.mxu1 %v5678_v0  ;;  %5356 = vmatpush1.msk.msra.mxu1 %vm491_vm0, %v4109_v62 }
  0xf6   : > { %5325 = vmatmul.mubr.msk.f32.gmra.mrb[8].mxu0 %vm484_vm1, %v5321_v51 }
  0xf7   : > { %3884 = vmatprep.mubr.f32.mxu0 %v5678_v0 }
  0xf8   : > { %5350 = vmatmul.mubr.msk.f32.gmra.mrb[6].mxu1 %vm484_vm1, %v5342_v2 }
  0xf9   : > { %4430 = vmatprep.mubr.f32.mxu1 %v5678_v0 }
  0xfa   : > { %5332 = vmatmul.mubr.msk.f32.vlgmr.msra.gmra.mrb[0].mxu0 %vm484_vm1, %v6244_v45 }
  0xfb   : > { %5435 = vmatpush3.msk.msra.mxu0 %vm491_vm0, %v6158_v26  ;;  %3890 = vmatprep.mubr.f32.mxu0 %v5678_v0 }
  0xfc   : > { %5357 = vmatmul.mubr.msk.f32.vlgmr.msra.gmra.mrb[8].mxu1 %vm484_vm1, %v5341_v61  ;;  %5343 = vmatprep.subr.msk.mxu0 %vm491_vm0, %v4104_v3 }
  0xfd   : > { %4436 = vmatprep.mubr.f32.mxu1 %v5678_v0 }
  0xfe   : > { %5333 = vmatmul.mubr.msk.f32.gmra.mrb[2].mxu0 %vm484_vm1, %v5321_v51 }
  0xff   : > { %5436 = vmatprep.mubr.msk.f32.mxu0 %vm484_vm1, %v6244_v45 }
 0x100   : > { %5358 = vmatmul.mubr.msk.f32.gmra.mrb[10].mxu1 %vm484_vm1, %v5342_v2 }
 0x101   : > { %4702 = vmatprep.mubr.f32.mxu1 %v5678_v0 }
 0x102   : > { %5437 = vmatmul.mubr.msk.f32.vlgmr.msra.gmra.mrb[4].mxu0 %vm484_vm1, %v5321_v51 }
 0x103   : > { %5344 = vmatpush1.msk.msra.mxu0 %vm491_vm0, %v4103_v4  ;;  %4199 = vmatprep.mubr.f32.mxu0 %v5678_v0 }
 0x104   : > { %5351 = vmatprep.subr.msk.mxu0 %vm491_vm0, %v4108_v5 }
 0x106   : > { %5345 = vmatmul.mubr.msk.f32.vlgmr.msra.gmra.mrb[6].mxu0 %vm484_vm1, %v5341_v61 }
 0x107   : > { %5352 = vmatpush1.msk.msra.mxu0 %vm491_vm0, %v4107_v6  ;;  %4205 = vmatprep.mubr.f32.mxu0 %v5678_v0 }
 0x108   : > { %5439 = vmatprep.subr.msk.mxu0 %vm491_vm0, %v4101_v53 }
 0x10a   : > { %5346 = vmatmul.mubr.msk.f32.gmra.mrb[8].mxu0 %vm484_vm1, %v5342_v2 }
 0x10b   : > { %4353 = vmatprep.mubr.f32.mxu0 %v5678_v0 }
 0x10e   : > { %5353 = vmatmul.mubr.msk.f32.vlgmr.msra.gmra.mrb[0].mxu0 %vm484_vm1, %v5341_v61 }
 0x10f   : > { %5440 = vmatpush3.msk.msra.mxu0 %vm491_vm0, %v4101_v53  ;;  %4359 = vmatprep.mubr.f32.mxu0 %v5678_v0 }
 0x112   : > { %5354 = vmatmul.mubr.msk.f32.gmra.mrb[2].mxu0 %vm484_vm1, %v5342_v2 }
 0x113   : > { %5441 = vmatprep.mubr.msk.f32.mxu0 %vm484_vm1, %v5341_v61 }
 0x116   : > { %5442 = vmatmul.mubr.msk.f32.vlgmr.msra.gmra.mrb[4].mxu0 %vm484_vm1, %v5342_v2 }
 0x1c7   : > { %v4278_v8 = vpop.f32.mrb[4].mxu1 }
 0x1c8   : > { %v4538_v10 = vmax.f32 %v4278_v8, 0.0  ;;  %v4280_v11 = vpop.f32.mrb[5].mxu1 }
 0x1c9   : > { %v4539_v12 = vmax.f32 %v4280_v11, 0.0 }
 0x1ca   : > { %v4568_v13 = vmul.f32 %v6371_v7, %v4538_v10 }
 0x1cb   : > { %v4569_v14 = vmul.f32 %v6371_v7, %v4539_v12  ;;  %v4284_v15 = vpop.f32.mrb[6].mxu1 }
 0x1cc   : > { %v4547_v17 = vmax.f32 %v4284_v15, 0.0  ;;  %v4286_v18 = vpop.f32.mrb[7].mxu1  ;;  %v6386_v19 = vadd.f32 %v6373_v9, %v4568_v13 }
 0x1cd   : > { %v4548_v20 = vmax.f32 %v4286_v18, 0.0  ;;  %v6391_v22 = vadd.f32 %v6373_v9, %v4569_v14 }
 0x1ce   : > { %v4577_v23 = vmul.f32 %v6378_v16, %v4547_v17  ;;  %4616 = vst [vmem:[%s6383_s20 + $0x10] sm:$0xff] %v6386_v19 }
 0x1cf   : > { %v4432_v24 = vpop.f32.mrb[8].mxu1  ;;  %v4578_v25 = vmul.f32 %v6378_v16, %v4548_v20  ;;  %4617 = vst [vmem:[%s6383_s20 + $0x18] sm:$0xff] %v6391_v22 }
 0x1d0   : > { %v4542_v26 = vmax.f32 %v4432_v24, 0.0  ;;  %v4434_v27 = vpop.f32.mrb[9].mxu1  ;;  %v6400_v28 = vadd.f32 %v6388_v21, %v4577_v23 }
 0x1d1   : > { %v4543_v29 = vmax.f32 %v4434_v27, 0.0  ;;  %v6403_v30 = vadd.f32 %v6388_v21, %v4578_v25 }
 0x1d2   : > { %v4572_v31 = vmul.f32 %v6371_v7, %v4542_v26  ;;  %4626 = vst [vmem:[%s6383_s20 + $0x58] sm:$0xff] %v6400_v28  ;;  %v5457_v32 = vpack.c.bf16 %v6400_v28, %v6386_v19  ;;  %v5005_v28 = vpop.permute.xlu0 %5004 }
 0x1d3   : > { %v4573_v33 = vmul.f32 %v6371_v7, %v4543_v29  ;;  %v4438_v34 = vpop.f32.mrb[10].mxu1  ;;  %4627 = vst [vmem:[%s6383_s20 + $0x60] sm:$0xff] %v6403_v30  ;;  %v5455_v35 = vpack.c.bf16 %v6403_v30, %v6391_v22 }
 0x1d4   : > { %v6416_v36 = vadd.f32 %v6373_v9, %v4572_v31  ;;  %v4551_v37 = vmax.f32 %v4438_v34, 0.0  ;;  %v4440_v38 = vpop.f32.mrb[11].mxu1 }
 0x1d5   : > { %v6419_v39 = vadd.f32 %v6373_v9, %v4573_v33  ;;  %v4552_v40 = vmax.f32 %v4440_v38, 0.0  ;;  %v4633_v33 = vld [vmem:[%s6527_s7] sm:$0xff] }
 0x1d6   : > { %4620 = vst [vmem:[%s6383_s20 + $0x30] sm:$0xff] %v6416_v36  ;;  %v4581_v41 = vmul.f32 %v6378_v16, %v4551_v37 }
 0x1d7   : > { %4621 = vst [vmem:[%s6383_s20 + $0x38] sm:$0xff] %v6419_v39  ;;  %v4582_v42 = vmul.f32 %v6378_v16, %v4552_v40 }
 0x1d8   : > { %v6428_v43 = vadd.f32 %v6388_v21, %v4581_v41 }
 0x1d9   : > { %v6431_v44 = vadd.f32 %v6388_v21, %v4582_v42  ;;  %v4201_v45 = vpop.f32.mrb[6].mxu0 }
 0x1da   : > { %4630 = vst [vmem:[%s6383_s20 + $0x78] sm:$0xff] %v6428_v43  ;;  %v5465_v46 = vpack.c.bf16 %v6428_v43, %v6416_v36  ;;  %v5470_v47 = vadd.f32 %v4201_v45, %v6293_v58  ;;  %v4203_v48 = vpop.f32.mrb[7].mxu0 }
 0x1db   : > { %4631 = vst [vmem:[%s6383_s20 + $0x80] sm:$0xff] %v6431_v44  ;;  %v5471_v49 = vadd.f32 %v4203_v48, %v6297_v59  ;;  %v5463_v50 = vpack.c.bf16 %v6431_v44, %v6419_v39 }
 0x1dc   : > { %v4536_v51 = vmax.f32 %v5470_v47, 0.0 }
 0x1dd   : > { %v4537_v52 = vmax.f32 %v5471_v49, 0.0  ;;  %v4207_v53 = vpop.f32.mrb[8].mxu0 }
 0x1de   : > { %v4566_v54 = vmul.f32 %v6371_v7, %v4536_v51  ;;  %v5472_v55 = vadd.f32 %v4207_v53, %v6312_v63  ;;  %v4209_v56 = vpop.f32.mrb[9].mxu0 }
 0x1df   : > { %v4567_v57 = vmul.f32 %v6371_v7, %v4537_v52  ;;  %v5473_v58 = vadd.f32 %v4209_v56, %v6316_v1 }
 0x1e0   : > { %v4596_v60 = vadd.f32 %v6373_v9, %v4566_v54  ;;  %v4545_v61 = vmax.f32 %v5472_v55, 0.0 }
 0x1e1   : > { %v4597_v59 = vadd.f32 %v6373_v9, %v4567_v57  ;;  %v4546_v62 = vmax.f32 %v5473_v58, 0.0  ;;  %v4355_v2 = vpop.f32.mrb[0].mxu0 }
 0x1e2   : > { %4614 = vst [vmem:[%s6383_s20] sm:$0xff] %v4596_v60  ;;  %v4575_v3 = vmul.f32 %v6378_v16, %v4545_v61  ;;  %v4540_v4 = vmax.f32 %v4355_v2, 0.0  ;;  %v4357_v5 = vpop.f32.mrb[1].mxu0 }
 0x1e3   : > { %4615 = vst [vmem:[%s6383_s20 + $0x8] sm:$0xff] %v4597_v59  ;;  %v4576_v63 = vmul.f32 %v6378_v16, %v4546_v62  ;;  %v4541_v6 = vmax.f32 %v4357_v5, 0.0 }
 0x1e4   : > { %v4605_v1 = vadd.f32 %v6388_v21, %v4575_v3  ;;  %v4570_v8 = vmul.f32 %v6371_v7, %v4540_v4 }
 0x1e5   : > { %v4606_v10 = vadd.f32 %v6388_v21, %v4576_v63  ;;  %v4571_v11 = vmul.f32 %v6371_v7, %v4541_v6  ;;  %v4361_v12 = vpop.f32.mrb[2].mxu0 }
 0x1e6   : > { %4624 = vst [vmem:[%s6383_s20 + $0x48] sm:$0xff] %v4605_v1  ;;  %v5453_v13 = vpack.c.bf16 %v4605_v1, %v4596_v60  ;;  %v4600_v14 = vadd.f32 %v6373_v9, %v4570_v8  ;;  %v4549_v15 = vmax.f32 %v4361_v12, 0.0  ;;  %v4363_v17 = vpop.f32.mrb[3].mxu0 }
 0x1e7   : > { %4625 = vst [vmem:[%s6383_s20 + $0x50] sm:$0xff] %v4606_v10  ;;  %v4601_v18 = vadd.f32 %v6373_v9, %v4571_v11  ;;  %v4550_v20 = vmax.f32 %v4363_v17, 0.0  ;;  %v5451_v23 = vpack.c.bf16 %v4606_v10, %v4597_v59 }
 0x1e8   : > { %4618 = vst [vmem:[%s6383_s20 + $0x20] sm:$0xff] %v4600_v14  ;;  %v4579_v24 = vmul.f32 %v6378_v16, %v4549_v15 }
 0x1e9   : > { %4619 = vst [vmem:[%s6383_s20 + $0x28] sm:$0xff] %v4601_v18  ;;  %v4580_v25 = vmul.f32 %v6378_v16, %v4550_v20  ;;  %v5443_v26 = vpop.f32.mrb[4].mxu0  ;;  %5452 = vmatprep.subr.bf16.mxu1 %v5451_v23 }
 0x1ea   : > { %v4609_v27 = vadd.f32 %v6388_v21, %v4579_v24  ;;  %v4553_v29 = vmax.f32 %v5443_v26, 0.0  ;;  %v4509_v31 = vpop.f32.mrb[5].mxu0  ;;  %5454 = vmatpush1.bf16.msra.mxu1 %v5453_v13 }
 0x1eb   : > { %v4610_v34 = vadd.f32 %v6388_v21, %v4580_v25  ;;  %v4544_v37 = vmax.f32 %v4509_v31, 0.0  ;;  %5456 = vmatprep.subr.bf16.mxu1 %v5455_v35  ;;  %v5020_v35 = vpop.permute.xlu1 %5019 }
 0x1ec   : > { %4628 = vst [vmem:[%s6383_s20 + $0x68] sm:$0xff] %v4609_v27  ;;  %v5461_v38 = vpack.c.bf16 %v4609_v27, %v4600_v14  ;;  %v4583_v40 = vmul.f32 %v6378_v16, %v4553_v29 }
 0x1ed   : > { %4629 = vst [vmem:[%s6383_s20 + $0x70] sm:$0xff] %v4610_v34  ;;  %v4574_v41 = vmul.f32 %v6371_v7, %v4544_v37  ;;  %5362 = vmatmul.mubr.msk.f32.vlgmr.msra.gmra.mrb[12].mxu1 %vm4634_vm5, %v4633_v33  ;;  %v5459_v42 = vpack.c.bf16 %v4610_v34, %v4601_v18 }
 0x1ee   : > { %v4613_v45 = vadd.f32 %v6388_v21, %v4583_v40  ;;  %5458 = vmatpush1.bf16.msra.mxu1 %v5457_v32  ;;  %4773 = vmatprep.mubr.f32.mxu1 %v5678_v0 }
 0x1ef   : > { %v4604_v22 = vadd.f32 %v6373_v9, %v4574_v41  ;;  %5460 = vmatprep.subr.bf16.mxu1 %v5459_v42  ;;  %v5683_v9 = vmov 0.0|0.0  }
 0x1f0   : > { %4632 = vst.msk [vmem:[%s6383_s20 + $0x88] sm:$0xff] %vm4622_vm6, %v4613_v45 }
 0x1f1   : > { %4623 = vst.msk [vmem:[%s6383_s20 + $0x40] sm:$0xff] %vm4622_vm6, %v4604_v22  ;;  %v5468_v7 = vpack.c.bf16 %v4613_v45, %v4604_v22  ;;  %5363 = vmatmul.mubr.msk.f32.vlgmr.msra.gmra.mrb[14].mxu1 %vm4634_vm5, %v4633_v33 }
 0x1f2   : > { %5462 = vmatpush1.bf16.msra.mxu1 %v5461_v38  ;;  %4844 = vmatprep.mubr.f32.mxu1 %v5678_v0 }
 0x1f3   : > { %5464 = vmatprep.subr.bf16.mxu1 %v5463_v50 }
 0x1f5   : > { %5364 = vmatmul.mubr.msk.f32.vlgmr.msra.gmra.mrb[16].mxu1 %vm4634_vm5, %v4633_v33 }
 0x1f6   : > { %5466 = vmatpush1.bf16.msra.mxu1 %v5465_v46  ;;  %4915 = vmatprep.mubr.f32.mxu1 %v5678_v0 }
 0x1f7   : > { %5467 = vmatprep.subr.bf16.mxu1 %v5683_v9 }
 0x1f9   : > { %5365 = vmatmul.mubr.msk.f32.vlgmr.msra.gmra.mrb[18].mxu1 %vm4634_vm5, %v4633_v33 }
 0x1fa   : > { %5469 = vmatpush3.bf16.msra.mxu1 %v5468_v7  ;;  %5448 = vmatprep.mubr.msk.f32.mxu1 %vm5684_vm7, %v5678_v0 }
 0x1fd   : > { %5449 = vmatmul.mubr.msk.f32.vlgmr.msra.gmra.mrb[20].mxu1 %vm4634_vm5, %v4633_v33 }
 0x2c0   : > { %v4704_v16 = vpop.f32.mrb[12].mxu1 }
 0x2c1   : > { %v4992_v19 = vmax.f32 %v4704_v16, 0.0  ;;  %v4706_v21 = vpop.f32.mrb[13].mxu1 }
 0x2c2   : > { %v4993_v30 = vmax.f32 %v4706_v21, 0.0 }
 0x2c3   : > { %v5007_v32 = vmul.f32 %v5005_v28, %v4992_v19 }
 0x2c4   : > { %v5008_v36 = vmul.f32 %v5005_v28, %v4993_v30  ;;  %v4775_v39 = vpop.f32.mrb[14].mxu1 }
 0x2c5   : > { %v5022_v0 = vadd.f32 %v5020_v35, %v5007_v32  ;;  %v4994_v43 = vmax.f32 %v4775_v39, 0.0  ;;  %v4777_v44 = vpop.f32.mrb[15].mxu1 }
 0x2c6   : > { %v5023_v46 = vadd.f32 %v5020_v35, %v5008_v36  ;;  %v4995_v47 = vmax.f32 %v4777_v44, 0.0 }
 0x2c7   : > { %5031 = vst [vmem:[%s6505_s26] sm:$0xff] %v5022_v0  ;;  %v5009_v48 = vmul.f32 %v5005_v28, %v4994_v43 }
 0x2c8   : > { %5032 = vst [vmem:[%s6505_s26 + $0x8] sm:$0xff] %v5023_v46  ;;  %v5010_v49 = vmul.f32 %v5005_v28, %v4995_v47  ;;  %v4846_v50 = vpop.f32.mrb[16].mxu1 }
 0x2c9   : > { %v5024_v51 = vadd.f32 %v5020_v35, %v5009_v48  ;;  %v4996_v52 = vmax.f32 %v4846_v50, 0.0  ;;  %v4848_v53 = vpop.f32.mrb[17].mxu1 }
 0x2ca   : > { %v5025_v54 = vadd.f32 %v5020_v35, %v5010_v49  ;;  %v4997_v55 = vmax.f32 %v4848_v53, 0.0 }
 0x2cb   : > { %5033 = vst [vmem:[%s6505_s26 + $0x10] sm:$0xff] %v5024_v51  ;;  %v5011_v56 = vmul.f32 %v5005_v28, %v4996_v52 }
 0x2cc   : > { %5034 = vst [vmem:[%s6505_s26 + $0x18] sm:$0xff] %v5025_v54  ;;  %v5012_v57 = vmul.f32 %v5005_v28, %v4997_v55  ;;  %v4917_v58 = vpop.f32.mrb[18].mxu1 }
 0x2cd   : > { %v5026_v60 = vadd.f32 %v5020_v35, %v5011_v56  ;;  %v4998_v61 = vmax.f32 %v4917_v58, 0.0  ;;  %v4919_v59 = vpop.f32.mrb[19].mxu1 }
 0x2ce   : > { %v5027_v62 = vadd.f32 %v5020_v35, %v5012_v57  ;;  %v4999_v2 = vmax.f32 %v4919_v59, 0.0 }
 0x2cf   : > { %5035 = vst [vmem:[%s6505_s26 + $0x20] sm:$0xff] %v5026_v60  ;;  %v5013_v3 = vmul.f32 %v5005_v28, %v4998_v61 }
 0x2d0   : > { %5036 = vst [vmem:[%s6505_s26 + $0x28] sm:$0xff] %v5027_v62  ;;  %v5014_v4 = vmul.f32 %v5005_v28, %v4999_v2  ;;  %v4988_v5 = vpop.f32.mrb[20].mxu1 }
 0x2d1   : > { %v5028_v63 = vadd.f32 %v5020_v35, %v5013_v3  ;;  %v5000_v6 = vmax.f32 %v4988_v5, 0.0  ;;  %v5450_v1 = vpop.f32.mrb[21].mxu1 }
 0x2d2   : > { %v5029_v8 = vadd.f32 %v5020_v35, %v5014_v4 }
 0x2d3   : > { %5037 = vst [vmem:[%s6505_s26 + $0x30] sm:$0xff] %v5028_v63  ;;  %v5015_v10 = vmul.f32 %v5005_v28, %v5000_v6 }
 0x2d4   : > { %5038 = vst [vmem:[%s6505_s26 + $0x38] sm:$0xff] %v5029_v8 }
 0x2d5   : > { %v5030_v11 = vadd.f32 %v5020_v35, %v5015_v10 }
 0x2d7   : > { %5039 = vst.msk [vmem:[%s6505_s26 + $0x40] sm:$0xff] %vm4622_vm6, %v5030_v11 }
 0x2d8 PF: > { %s22_s17 = sadd.s32 1, %s5676_s17  }
 0x2d9   : > { %p19_p4 = scmp.ge.s32.totalorder %s22_s17, 4  }
 0x2db   :  { %21 = sbr.rel (!%p19_p4) target bundleno = 1 (0x1), region = 119 }

// kernel: stem_block_forward.3
= control target key start
LH: loop header
LB: loop body
LE: loop exit
PB: predicated region body
PF: predicated region fallthrough
CT: control target
= control target key end

     0   :  { %s5577_s29 = smov 0   ;;  %s6599_s0 = inlined_call_operand.vmem [shape: f32[2,8,324], index: 0, kind: input, shape index: {}]   ;;  %s6600_s1 = inlined_call_operand.vmem [shape: f32[2,8,324], index: 1, kind: input, shape index: {}]   ;;  %s6601_s2 = inlined_call_operand.vmem [shape: f32[2,8,324], index: 2, kind: input, shape index: {}]   ;;  %s6602_s3 = inlined_call_operand.vmem [shape: f32[2,8,324], index: 3, kind: input, shape index: {}]   ;;  %s6603_s4 = inlined_call_operand.vmem [shape: f32[2,16,324], index: 4, kind: input, shape index: {}]   ;;  %s6604_s5 = inlined_call_operand.vmem [shape: f32[2,16,324], index: 5, kind: input, shape index: {}]   ;;  %s6605_s6 = inlined_call_operand.vmem [shape: f32[2,16,324], index: 6, kind: input, shape index: {}]   ;;  %s6606_s7 = inlined_call_operand.vmem [shape: f32[2,16,324], index: 7, kind: input, shape index: {}]   ;;  %s6607_s8 = inlined_call_operand.vmem [shape: f32[9,16,8], index: 8, kind: input, shape index: {}]   ;;  %s6608_s9 = inlined_call_operand.vmem [shape: f32[16,1], index: 9, kind: input, shape index: {}]   ;;  %s6609_s10 = inlined_call_operand.vmem [shape: f32[16,1], index: 10, kind: input, shape index: {}]   ;;  %s6610_s11 = inlined_call_operand.vmem [shape: f32[9,16,32], index: 11, kind: input, shape index: {}]   ;;  %s6611_s12 = inlined_call_operand.vmem [shape: f32[16,1], index: 12, kind: input, shape index: {}]   ;;  %s6612_s13 = inlined_call_operand.vmem [shape: f32[16,1], index: 13, kind: input, shape index: {}]   ;;  %s6613_s14 = inlined_call_operand.vmem [shape: f32[2,16,288], index: 14, kind: output, shape index: {}]  }
   0x1 LB: > { %s4629_s30 = sadd.s32 4294967295, %s5489_s29   ;;  %p4633_p0 = scmp.ge.s32.totalorder %s5489_s29, 1  ;;  %s5489_s29 = sphi %s5577_s29, %s24_s29  }
   0x2   : > { %p482_p1 = scmp.lt.s32.totalorder %s5489_s29, 3 }
   0x4   : > { %p483_p2 = pnand %p4633_p0, %p482_p1 }
   0x5   : > { %p5585_p3 = scmp.lt.s32.totalorder (!%p483_p2), %s4629_s30, 1  ;;  %v4643_v0 = vld [vmem:[%s6607_s8 + $0x10] sm:$0xff] (!%p483_p2)  ;;  %vm625_vm0 = vcmask (!%p483_p2), 64512   ;;  %v5491_v1 = vmov (!%p483_p2), 0.0   ;;  %v5492_v2 = vmov (!%p483_p2), 0   ;;  %s5493_s28 = smov (!%p483_p2), 127  }
   0x6   : > { %486 = sbr.rel (%p483_p2) target bundleno = 991 (0x3df), region = 76  ;;  %4832 = vmatprep.mubr.msk.f32.mxu1 (!%p483_p2), %vm625_vm0, %v4643_v0  ;;  %696 = vmatprep.mubr.f32.mxu0 (!%p483_p2), %v5491_v1  ;;  %2475 = vst [vmem:[#allocation2] sm:$0xff] (!%p483_p2), %v5491_v1  ;;  %2477 = vst [vmem:[#allocation2 + $0x10] sm:$0xff] (!%p483_p2), %v5491_v1  ;;  %v4644_v10 = vld [vmem:[%s6607_s8 + $0x18] sm:$0xff] (!%p483_p2)  ;;  %v608_v13 = vld [vmem:[%s6607_s8] sm:$0xff] (!%p483_p2)  ;;  %s6614_s16 = smov (!%p483_p2), 109  }
   0x7   : > { %2478 = vst [vmem:[#allocation2 + $0x18] sm:$0xff] (!%p483_p2), %v5491_v1  ;;  %2480 = vst [vmem:[#allocation2 + $0x28] sm:$0xff] (!%p483_p2), %v5491_v1  ;;  %5241 = vset.pattern.permute.xlu1 (!%p483_p2), %v5492_v2  ;;  %5242 = vset.pattern.permute.xlu0 (!%p483_p2), %v5492_v2  ;;  %v609_v14 = vld [vmem:[%s6607_s8 + $0x8] sm:$0xff] (!%p483_p2)  ;;  %v5654_v15 = vld [vmem:[%s6607_s8 + $0x20] sm:$0xff] (!%p483_p2)  ;;  %vm966_vm1 = vcmask (!%p483_p2), 1039360   ;;  %vm1758_vm2 = vcmask (!%p483_p2), 900096  }
   0x8   : > { %2481 = vst [vmem:[#allocation2 + $0x30] sm:$0xff] (!%p483_p2), %v5491_v1  ;;  %2483 = vst [vmem:[#allocation2 + $0x40] sm:$0xff] (!%p483_p2), %v5491_v1  ;;  %v2384_v22 = vld [vmem:[%s6608_s9] sm:$0xff] (!%p483_p2)  ;;  %v2385_v23 = vld [vmem:[%s6608_s9 + $0x8] sm:$0xff] (!%p483_p2)  ;;  %vm2180_vm3 = vcmask (!%p483_p2), 891904   ;;  %s5496_s17 = smov (!%p483_p2), 19  }
   0x9   : > { %2484 = vst [vmem:[#allocation2 + $0x48] sm:$0xff] (!%p483_p2), %v5491_v1  ;;  %2486 = vst [vmem:[#allocation2 + $0x58] sm:$0xff] (!%p483_p2), %v5491_v1  ;;  %v2402_v24 = vld [vmem:[%s6609_s10] sm:$0xff] (!%p483_p2)  ;;  %v2403_v25 = vld [vmem:[%s6609_s10 + $0x8] sm:$0xff] (!%p483_p2)  ;;  %s5497_s19 = smov (!%p483_p2), 108   ;;  %s5498_s20 = smov (!%p483_p2), 92  }
   0xa   : > { %v4654_v47 = vld [vmem:[%s6607_s8 + $0x28] sm:$0xff] (!%p483_p2)  ;;  %v4659_v51 = vld [vmem:[%s6607_s8 + $0x30] sm:$0xff] (!%p483_p2)  ;;  %v4660_v56 = vld [vmem:[%s6607_s8 + $0x38] sm:$0xff] (!%p483_p2) }
   0xb   : > { %v4665_v59 = vld [vmem:[%s6607_s8 + $0x40] sm:$0xff] (!%p483_p2) }
   0xd   : > { %s6636_s30 = smov (!%p5585_p3, %s4629_s30), 1 }
   0xe   : > { %s5607_s18 = smul.u32 24, %s6636_s30 }
   0xf   : > { %s5667_s25 = smul.u32 48, %s6636_s30 }
  0x10   : > { %s567_s21 = scalar_lea.vmem %s6599_s0, %s5607_s18  ;;  %s577_s24 = scalar_lea.vmem %s6601_s2, %s5607_s18 }
  0x11   : > { %v611_v3 = vld [vmem:[%s567_s21 + $0x8] sm:$0xff]  ;;  %v610_v4 = vld [vmem:[%s567_s21] sm:$0xff]  ;;  %s572_s27 = scalar_lea.vmem %s6600_s1, %s5607_s18  ;;  %v612_v5 = vld [vmem:[%s567_s21 + $0x10] sm:$0xff]  ;;  %s587_s15 = scalar_lea.vmem %s6603_s4, %s5667_s25 }
  0x12   : > { %962 = vrot.lane.b32.xlu0 %v611_v3, %s5493_s28  ;;  %960 = vrot.lane.b32.xlu1 %v610_v4, %s5493_s28  ;;  %v5623_v6 = vld [vmem:[%s577_s24 + $0x8] sm:$0xff]  ;;  %v624_v8 = vld [vmem:[%s572_s27 + $0x10] sm:$0xff]  ;;  %s592_s30 = scalar_lea.vmem %s6604_s5, %s5667_s25  ;;  %s582_s23 = scalar_lea.vmem %s6602_s3, %s5607_s18 }
  0x13   : > { %v623_v7 = vld [vmem:[%s572_s27 + $0x8] sm:$0xff]  ;;  %v622_v9 = vld [vmem:[%s572_s27] sm:$0xff]  ;;  %4830 = vmatprep.subr.mxu1 %v624_v8  ;;  %v5631_v11 = vld [vmem:[%s577_s24 + $0x10] sm:$0xff]  ;;  %s597_s27 = scalar_lea.vmem %s6605_s6, %s5667_s25  ;;  %s5901_s22 = scalar_lea.vmem %s6606_s7, %s5667_s25 }
  0x14   : > { %632 = vmatprep.subr.mxu0 %v623_v7  ;;  %4831 = vmatpush3.msra.mxu1 %v624_v8  ;;  %v5633_v12 = vld [vmem:[%s577_s24] sm:$0xff]  ;;  %s6616_s24 = smov 110   ;;  %v5683_v17 = vld [vmem:[%s587_s15 + $0x8] sm:$0xff]  ;;  %v5685_v18 = vld [vmem:[%s587_s15 + $0x10] sm:$0xff]  ;;  %s5501_s21 = smov 90  }
  0x15   : > { %633 = vmatpush1.msra.mxu0 %v622_v9  ;;  %4833 = vmatmul.mubr.msk.f32.vlgmr.msra.gmra.mrb[0].mxu1 %vm625_vm0, %v4644_v10  ;;  %v5678_v16 = vld [vmem:[%s587_s15] sm:$0xff]  ;;  %v5691_v19 = vld [vmem:[%s587_s15 + $0x18] sm:$0xff]  ;;  %v5699_v21 = vld [vmem:[%s587_s15 + $0x28] sm:$0xff] }
  0x16   : > { %964 = vrot.lane.b32.xlu0 %v612_v5, %s5493_s28  ;;  %1542 = vrot.lane.b32.xlu1 %v5623_v6, %s5493_s28  ;;  %v5693_v20 = vld [vmem:[%s587_s15 + $0x20] sm:$0xff]  ;;  %v5727_v28 = vld [vmem:[%s592_s30 + $0x10] sm:$0xff] }
  0x17   : > { %4645 = vmatmul.mubr.msk.f32.vlgmr.msra.gmra.mrb[0].mxu0 %vm625_vm0, %v4643_v0  ;;  %4835 = vmatprep.subr.mxu1 %v612_v5  ;;  %v5723_v26 = vld [vmem:[%s597_s27] sm:$0xff]  ;;  %v5729_v29 = vld [vmem:[%s592_s30 + $0x8] sm:$0xff]  ;;  %v950_v31 = vmax.f32 %v5685_v18, %v5727_v28  ;;  %v5739_v34 = vld [vmem:[%s592_s30 + $0x18] sm:$0xff] }
  0x18   : > { %702 = vmatprep.mubr.f32.mxu0 %v5491_v1  ;;  %790 = vmatprep.subr.mxu0 %v611_v3  ;;  %v5725_v27 = vld [vmem:[%s592_s30] sm:$0xff]  ;;  %v949_v32 = vmax.f32 %v5683_v17, %v5729_v29  ;;  %v5741_v35 = vld [vmem:[%s592_s30 + $0x28] sm:$0xff]  ;;  %v951_v37 = vmax.f32 %v5691_v19, %v5739_v34  ;;  %v5751_v39 = vld [vmem:[%s597_s27 + $0x10] sm:$0xff] }
  0x19   : > { %4836 = vmatpush3.msra.mxu1 %v612_v5  ;;  %4837 = vmatprep.mubr.msk.f32.mxu1 %vm625_vm0, %v608_v13  ;;  %v948_v30 = vmax.f32 %v5678_v16, %v5725_v27  ;;  %v5737_v33 = vld [vmem:[%s592_s30 + $0x20] sm:$0xff]  ;;  %v953_v38 = vmax.f32 %v5699_v21, %v5741_v35  ;;  %v5753_v40 = vld [vmem:[%s597_s27 + $0x8] sm:$0xff]  ;;  %v5761_v42 = vld [vmem:[%s597_s27 + $0x18] sm:$0xff] }
  0x1a   : > { %1544 = vrot.lane.b32.xlu0 %v5631_v11, %s5493_s28  ;;  %1540 = vrot.lane.b32.xlu1 %v5633_v12, %s5493_s28  ;;  %v952_v36 = vmax.f32 %v5693_v20, %v5737_v33  ;;  %v5759_v41 = vld [vmem:[%s597_s27 + $0x20] sm:$0xff]  ;;  %v5767_v43 = vld [vmem:[%s597_s27 + $0x28] sm:$0xff]  ;;  %s607_s27 = scalar_lea.vmem %s6613_s14, %s5667_s25 }
  0x1b   : > { %4646 = vmatmul.mubr.msk.f32.gmra.mrb[2].mxu0 %vm625_vm0, %v4644_v10  ;;  %v1357_v52 = vld [vmem:[%s582_s23 + $0x10] sm:$0xff]  ;;  %v1356_v55 = vld [vmem:[%s582_s23 + $0x8] sm:$0xff]  ;;  %v1355_v60 = vld [vmem:[%s582_s23] sm:$0xff] }
  0x1c   : > { %791 = vmatpush1.msra.mxu0 %v610_v4  ;;  %854 = vmatprep.mubr.f32.mxu0 %v5491_v1  ;;  %v4666_v0 = vld [vmem:[%s6607_s8 + $0x48] sm:$0xff] }
  0x1d   : > { %4838 = vmatmul.mubr.msk.f32.vlgmr.msra.gmra.mrb[0].mxu1 %vm625_vm0, %v609_v14 }
  0x1e   : > { %1754 = vrot.lane.b32.xlu0 %v611_v3, %s6616_s24  ;;  %1756 = vrot.lane.b32.xlu1 %v612_v5, %s6616_s24 }
  0x1f   : > { %4649 = vmatmul.mubr.msk.f32.vlgmr.msra.gmra.mrb[0].mxu0 %vm625_vm0, %v608_v13  ;;  %4842 = vmatprep.mubr.msk.f32.mxu1 %vm625_vm0, %v5654_v15  ;;  %v4677_v13 = vld [vmem:[%s6607_s8 + $0x60] sm:$0xff] }
  0x20   : > { %860 = vmatprep.mubr.f32.mxu0 %v5491_v1 }
  0x22   : > { %1752 = vrot.lane.b32.xlu0 %v610_v4, %s6616_s24  ;;  %1964 = vrot.lane.b32.xlu1 %v623_v7, %s6616_s24 }
  0x23   : > { %4650 = vmatmul.mubr.msk.f32.gmra.mrb[2].mxu0 %vm625_vm0, %v609_v14 }
  0x24   : > { %1042 = vmatprep.mubr.f32.mxu0 %v5491_v1 }
  0x26   : > { %1966 = vrot.lane.b32.xlu0 %v624_v8, %s6616_s24  ;;  %1962 = vrot.lane.b32.xlu1 %v622_v9, %s6616_s24  ;;  %s6620_s24 = smov 110   ;;  %v4672_v9 = vld [vmem:[%s6607_s8 + $0x58] sm:$0xff] }
  0x2a   : > { %2176 = vrot.lane.b32.xlu0 %v611_v3, %s6614_s16  ;;  %2178 = vrot.lane.b32.xlu1 %v612_v5, %s6614_s16  ;;  %v4671_v5 = vld [vmem:[%s6607_s8 + $0x50] sm:$0xff] }
  0x2e   : > { %2174 = vrot.lane.b32.xlu0 %v610_v4, %s6614_s16  ;;  %1142 = vrot.lane.b32.xlu1 %v5678_v16, %s5493_s28  ;;  %s6621_s16 = smov 109  }
  0x32   : > { %1144 = vrot.lane.b32.xlu0 %v5683_v17, %s5493_s28  ;;  %1146 = vrot.lane.b32.xlu1 %v5685_v18, %s5493_s28 }
  0x36   : > { %1148 = vrot.lane.b32.xlu0 %v5691_v19, %s5493_s28  ;;  %1150 = vrot.lane.b32.xlu1 %v5693_v20, %s5493_s28 }
  0x3a   : > { %1152 = vrot.lane.b32.xlu0 %v5699_v21, %s5493_s28  ;;  %2388 = vperm.xlu1 %5241, %v2384_v22  }
  0x3e   : > { %2393 = vperm.xlu0 %5242, %v2385_v23   ;;  %2406 = vperm.xlu1 %5241, %v2402_v24   ;;  %v4678_v23 = vld [vmem:[%s6607_s8 + $0x68] sm:$0xff] }
  0x42   : > { %2411 = vperm.xlu1 %5241, %v2403_v25   ;;  %1721 = vrot.lane.b32.xlu0 %v5723_v26, %s5493_s28 }
  0x46   : > { %1725 = vrot.lane.b32.xlu0 %v5751_v39, %s5493_s28  ;;  %1723 = vrot.lane.b32.xlu1 %v5753_v40, %s5493_s28 }
  0x4a   : > { %1729 = vrot.lane.b32.xlu0 %v5759_v41, %s5493_s28  ;;  %1727 = vrot.lane.b32.xlu1 %v5761_v42, %s5493_s28 }
  0x4e   : > { %1928 = vrot.lane.b32.xlu0 %v5678_v16, %s6620_s24  ;;  %1731 = vrot.lane.b32.xlu1 %v5767_v43, %s5493_s28 }
  0x52   : > { %1932 = vrot.lane.b32.xlu0 %v5685_v18, %s6620_s24  ;;  %1930 = vrot.lane.b32.xlu1 %v5683_v17, %s6620_s24 }
  0x56   : > { %1936 = vrot.lane.b32.xlu0 %v5693_v20, %s6620_s24  ;;  %1934 = vrot.lane.b32.xlu1 %v5691_v19, %s6620_s24 }
  0x5a   : > { %2143 = vrot.lane.b32.xlu0 %v5725_v27, %s6620_s24  ;;  %1938 = vrot.lane.b32.xlu1 %v5699_v21, %s6620_s24  ;;  %v1524_v27 = vld [vmem:[%s5901_s22 + $0x10] sm:$0xff] }
  0x5e   : > { %2147 = vrot.lane.b32.xlu0 %v5727_v28, %s6620_s24  ;;  %2145 = vrot.lane.b32.xlu1 %v5729_v29, %s6620_s24  ;;  %v1522_v29 = vld [vmem:[%s5901_s22] sm:$0xff] }
  0x62   : > { %2151 = vrot.lane.b32.xlu0 %v5737_v33, %s6620_s24  ;;  %2149 = vrot.lane.b32.xlu1 %v5739_v34, %s6620_s24 }
  0x66   : > { %2350 = vrot.lane.b32.xlu0 %v5678_v16, %s6621_s16  ;;  %2153 = vrot.lane.b32.xlu1 %v5741_v35, %s6620_s24  ;;  %v4684_v35 = vld [vmem:[%s6607_s8 + $0x78] sm:$0xff] }
  0x6a   : > { %2354 = vrot.lane.b32.xlu0 %v5685_v18, %s6621_s16  ;;  %2352 = vrot.lane.b32.xlu1 %v5683_v17, %s6621_s16 }
  0x6e   : > { %2358 = vrot.lane.b32.xlu0 %v5693_v20, %s6621_s16  ;;  %2356 = vrot.lane.b32.xlu1 %v5691_v19, %s6621_s16 }
  0x72   : > { %2360 = vrot.lane.b32.xlu1 %v5699_v21, %s6621_s16  ;;  %v1526_v21 = vld [vmem:[%s5901_s22 + $0x20] sm:$0xff] }
  0x84   : > { %v963_v44 = vpop.permute.xlu0 %962  ;;  %v961_v45 = vpop.permute.xlu1 %960 }
  0x85   : > { %v967_v50 = vsel %vm966_vm1, %v961_v45, %v963_v44 }
  0x88   : > { %v965_v46 = vpop.permute.xlu0 %964  ;;  %v1543_v48 = vpop.permute.xlu1 %1542 }
  0x89   : > { %4840 = vmatprep.subr.mxu1 %v965_v46  ;;  %v968_v49 = vsel %vm966_vm1, %v963_v44, %v965_v46  ;;  %v4683_v44 = vld [vmem:[%s6607_s8 + $0x70] sm:$0xff] }
  0x8a   : > { %978 = vmatprep.subr.mxu0 %v968_v49  ;;  %4841 = vmatpush3.msra.mxu1 %v965_v46 }
  0x8b   : > { %979 = vmatpush1.msra.mxu0 %v967_v50  ;;  %4843 = vmatmul.mubr.msk.f32.vlgmr.msra.gmra.mrb[0].mxu1 %vm625_vm0, %v4654_v47 }
  0x8c   : > { %4655 = vmatmul.mubr.msk.f32.vlgmr.msra.gmra.mrb[0].mxu0 %vm625_vm0, %v5654_v15  ;;  %4845 = vmatprep.subr.mxu1 %v5631_v11  ;;  %v1545_v53 = vpop.permute.xlu0 %1544  ;;  %v1541_v54 = vpop.permute.xlu1 %1540 }
  0x8d   : > { %1048 = vmatprep.mubr.f32.mxu0 %v5491_v1  ;;  %1182 = vmatprep.subr.mxu0 %v5623_v6  ;;  %v1547_v61 = vsel %vm966_vm1, %v1543_v48, %v1545_v53  ;;  %v1546_v4 = vsel %vm966_vm1, %v1541_v54, %v1543_v48 }
  0x8e   : > { %4846 = vmatpush3.msra.mxu1 %v5631_v11  ;;  %4847 = vmatprep.mubr.msk.f32.mxu1 %vm625_vm0, %v4659_v51 }
  0x8f   : > { %1183 = vmatpush1.msra.mxu0 %v5633_v12  ;;  %4850 = vmatprep.subr.mxu1 %v1357_v52 }
  0x90   : > { %4656 = vmatmul.mubr.msk.f32.gmra.mrb[2].mxu0 %vm625_vm0, %v4654_v47  ;;  %1364 = vmatprep.subr.mxu0 %v1356_v55  ;;  %v1755_v57 = vpop.permute.xlu0 %1754  ;;  %v1757_v58 = vpop.permute.xlu1 %1756 }
  0x91   : > { %1246 = vmatprep.mubr.f32.mxu0 %v5491_v1  ;;  %v1760_v6 = vsel %vm1758_vm2, %v1755_v57, %v1757_v58 }
  0x93   : > { %4848 = vmatmul.mubr.msk.f32.vlgmr.msra.gmra.mrb[0].mxu1 %vm625_vm0, %v4660_v56 }
  0x94   : > { %4661 = vmatmul.mubr.msk.f32.vlgmr.msra.gmra.mrb[0].mxu0 %vm625_vm0, %v4659_v51  ;;  %4851 = vmatpush3.msra.mxu1 %v1357_v52  ;;  %v1753_v62 = vpop.permute.xlu0 %1752  ;;  %v1965_v63 = vpop.permute.xlu1 %1964  ;;  %v1527_v51 = vld [vmem:[%s5901_s22 + $0x28] sm:$0xff] }
  0x95   : > { %1252 = vmatprep.mubr.f32.mxu0 %v5491_v1  ;;  %4852 = vmatprep.mubr.msk.f32.mxu1 %vm625_vm0, %v4665_v59  ;;  %v1759_v12 = vsel %vm1758_vm2, %v1753_v62, %v1755_v57 }
  0x96   : > { %1365 = vmatpush1.msra.mxu0 %v1355_v60  ;;  %4855 = vmatprep.subr.mxu1 %v1545_v53 }
  0x97   : > { %1557 = vmatprep.subr.mxu0 %v1547_v61 }
  0x98   : > { %4662 = vmatmul.mubr.msk.f32.gmra.mrb[2].mxu0 %vm625_vm0, %v4660_v56  ;;  %v1967_v2 = vpop.permute.xlu0 %1966  ;;  %v1963_v3 = vpop.permute.xlu1 %1962  ;;  %v2420_v56 = vlaneseq }
  0x99   : > { %1428 = vmatprep.mubr.f32.mxu0 %v5491_v1  ;;  %v1969_v14 = vsel %vm1758_vm2, %v1965_v63, %v1967_v2  ;;  %v1968_v25 = vsel %vm1758_vm2, %v1963_v3, %v1965_v63 }
  0x9b   : > { %4853 = vmatmul.mubr.msk.f32.vlgmr.msra.gmra.mrb[0].mxu1 %vm625_vm0, %v4666_v0 }
  0x9c   : > { %4667 = vmatmul.mubr.msk.f32.vlgmr.msra.gmra.mrb[0].mxu0 %vm625_vm0, %v4665_v59  ;;  %4856 = vmatpush3.msra.mxu1 %v1545_v53  ;;  %v2177_v7 = vpop.permute.xlu0 %2176  ;;  %v2179_v8 = vpop.permute.xlu1 %2178  ;;  %v2421_v59 = vand.u32 127, %v2420_v56 }
  0x9d   : > { %1434 = vmatprep.mubr.f32.mxu0 %v5491_v1  ;;  %1558 = vmatpush1.msra.mxu0 %v1546_v4  ;;  %v2182_v45 = vsel %vm2180_vm3, %v2177_v7, %v2179_v8 }
  0x9e   : > { %4857 = vmatprep.mubr.msk.f32.mxu1 %vm625_vm0, %v4671_v5  ;;  %1770 = vmatprep.subr.mxu0 %v1760_v6  ;;  %v2423_v62 = vadd.s32 256, %v2421_v59  ;;  %v2422_v63 = vadd.s32 128, %v2421_v59 }
  0x9f   : > { %4860 = vmatprep.subr.mxu1 %v1757_v58 }
  0xa0   : > { %4668 = vmatmul.mubr.msk.f32.gmra.mrb[2].mxu0 %vm625_vm0, %v4666_v0  ;;  %v2175_v10 = vpop.permute.xlu0 %2174  ;;  %v5859_v11 = vpop.permute.xlu1 %1142  ;;  %v5949_v3 = vmul.u32.u64.low 3817748708, %v2423_v62  ;;  %v5950_v4 = vmul.u32.u64.high 3817748708, %v2423_v62, %v5949_v3 }
  0xa1   : > { %1621 = vmatprep.mubr.f32.mxu0 %v5491_v1  ;;  %v2181_v20 = vsel %vm2180_vm3, %v2175_v10, %v2177_v7 }
  0xa3   : > { %4858 = vmatmul.mubr.msk.f32.vlgmr.msra.gmra.mrb[0].mxu1 %vm625_vm0, %v4672_v9 }
  0xa4   : > { %4673 = vmatmul.mubr.msk.f32.vlgmr.msra.gmra.mrb[0].mxu0 %vm625_vm0, %v4671_v5  ;;  %4861 = vmatpush3.msra.mxu1 %v1757_v58  ;;  %v5869_v15 = vpop.permute.xlu0 %1144  ;;  %v5873_v22 = vpop.permute.xlu1 %1146  ;;  %v5952_v5 = vmul.u32.u64.low 3817748708, %v2422_v63  ;;  %v5953_v6 = vmul.u32.u64.high 3817748708, %v2422_v63, %v5952_v5 }
  0xa5   : > { %1627 = vmatprep.mubr.f32.mxu0 %v5491_v1  ;;  %1771 = vmatpush1.msra.mxu0 %v1759_v12 }
  0xa6   : > { %4862 = vmatprep.mubr.msk.f32.mxu1 %vm625_vm0, %v4677_v13  ;;  %1979 = vmatprep.subr.mxu0 %v1969_v14 }
  0xa7   : > { %4865 = vmatprep.subr.mxu1 %v1967_v2 }
  0xa8   : > { %4674 = vmatmul.mubr.msk.f32.gmra.mrb[2].mxu0 %vm625_vm0, %v4672_v9  ;;  %v5879_v24 = vpop.permute.xlu0 %1148  ;;  %v5889_v46 = vpop.permute.xlu1 %1150  ;;  %v5955_v9 = vmul.u32.u64.low 3817748708, %v2421_v59  ;;  %v5956_v10 = vmul.u32.u64.high 3817748708, %v2421_v59, %v5955_v9 }
  0xa9   : > { %1834 = vmatprep.mubr.f32.mxu0 %v5491_v1 }
  0xaa   : > { %v2430_v28 = vshrl.u32 %v5956_v10, 4 }
  0xab   : > { %4863 = vmatmul.mubr.msk.f32.vlgmr.msra.gmra.mrb[0].mxu1 %vm625_vm0, %v4678_v23 }
  0xac   : > { %4679 = vmatmul.mubr.msk.f32.vlgmr.msra.gmra.mrb[0].mxu0 %vm625_vm0, %v4677_v13  ;;  %4866 = vmatpush3.msra.mxu1 %v1967_v2  ;;  %v1153_v47 = vpop.permute.xlu0 %1152 }
  0xad   : > { %1840 = vmatprep.mubr.f32.mxu0 %v5491_v1  ;;  %1980 = vmatpush1.msra.mxu0 %v1968_v25  ;;  %v1157_v48 = vsel %vm966_vm1, %v5889_v46, %v1153_v47  ;;  %v1169_v49 = vmax.f32 %v953_v38, %v1153_v47  ;;  %v1155_v25 = vsel %vm966_vm1, %v5869_v15, %v5873_v22  ;;  %v2452_v47 = vshrl.u32 %v5950_v4, 4 }
  0xae   : > { %4867 = vmatprep.mubr.msk.f32.mxu1 %vm625_vm0, %v4683_v44  ;;  %2192 = vmatprep.subr.mxu0 %v2182_v45  ;;  %v1168_v50 = vmax.f32 %v952_v36, %v1157_v48  ;;  %v4689_v36 = vld [vmem:[%s6607_s8 + $0x80] sm:$0xff]  ;;  %v1166_v48 = vmax.f32 %v950_v31, %v5873_v22 }
  0xaf   : > { %4870 = vmatprep.subr.mxu1 %v2179_v8  ;;  %v1351_v52 = vmax.f32 %v1169_v49, %v5767_v43  ;;  %v2441_v49 = vshrl.u32 %v5953_v6, 4  ;;  %v2453_v18 = vmul.u32 18, %v2452_v47 }
  0xb0   : > { %4680 = vmatmul.mubr.msk.f32.gmra.mrb[2].mxu0 %vm625_vm0, %v4678_v23  ;;  %v1350_v38 = vmax.f32 %v1168_v50, %v5759_v41  ;;  %v4690_v41 = vld [vmem:[%s6607_s8 + $0x88] sm:$0xff]  ;;  %v1154_v23 = vsel %vm966_vm1, %v5859_v11, %v5869_v15  ;;  %v1165_v15 = vmax.f32 %v949_v32, %v1155_v25  ;;  %v1156_v50 = vsel %vm966_vm1, %v5879_v24, %v5889_v46 }
  0xb1   : > { %2043 = vmatprep.mubr.f32.mxu0 %v5491_v1  ;;  %v5916_v53 = vmax.f32 %v1351_v52, %v1527_v51  ;;  %v1164_v11 = vmax.f32 %v948_v30, %v1154_v23  ;;  %v1348_v31 = vmax.f32 %v1166_v48, %v5751_v39  ;;  %v2442_v22 = vmul.u32 18, %v2441_v49  ;;  %v1523_v30 = vld [vmem:[%s5901_s22 + $0x8] sm:$0xff] }
  0xb2   : > { %v5919_v33 = vmax.f32 %v1350_v38, %v1526_v21  ;;  %v1347_v16 = vmax.f32 %v1165_v15, %v5753_v40  ;;  %v1167_v17 = vmax.f32 %v951_v37, %v1156_v50  ;;  %v2454_v46 = vsub.s32 %v2423_v62, %v2453_v18 }
  0xb3   : > { %4868 = vmatmul.mubr.msk.f32.vlgmr.msra.gmra.mrb[0].mxu1 %vm625_vm0, %v4684_v35  ;;  %v1346_v21 = vmax.f32 %v1164_v11, %v5723_v26  ;;  %v1530_v38 = vmax.f32 %v1348_v31, %v1524_v27  ;;  %v2443_v26 = vsub.s32 %v2422_v63, %v2442_v22 }
  0xb4   : > { %4685 = vmatmul.mubr.msk.f32.vlgmr.msra.gmra.mrb[0].mxu0 %vm625_vm0, %v4683_v44  ;;  %4871 = vmatpush3.msra.mxu1 %v2179_v8  ;;  %v1349_v40 = vmax.f32 %v1167_v17, %v5761_v42  ;;  %vm2459_vm4 = vcmp.ne.s32.totalorder %v2454_v46, 0  ;;  %vm2462_vm5 = vcmp.lt.s32.totalorder %v2454_v46, 0  ;;  %v2468_v9 = vadd.s32 18, %v2454_v46 }
  0xb5   : > { %2049 = vmatprep.mubr.f32.mxu0 %v5491_v1  ;;  %2193 = vmatpush1.msra.mxu0 %v2181_v20  ;;  %v1528_v20 = vmax.f32 %v1346_v21, %v1522_v29  ;;  %vm2458_vm6 = vcmp.ne.s32.totalorder %v2443_v26, 0  ;;  %vm2461_vm7 = vcmp.lt.s32.totalorder %v2443_v26, 0  ;;  %vm6007_vm8 = vmand %vm2462_vm5, %vm2459_vm4  ;;  %vm2525_vm4 = vcmask 416768  }
  0xb6   : > { %4872 = vmatprep.mubr.msk.f32.mxu1 %vm625_vm0, %v4689_v36  ;;  %vm6012_vm11 = vmand %vm2461_vm7, %vm2458_vm6  ;;  %v2471_v47 = vsel %vm6007_vm8, %v2468_v9, %v2454_v46  ;;  %vm2522_vm5 = vcmask 1047704   ;;  %vm2643_vm6 = vcmask 261120   ;;  %vm2987_vm7 = vcmask 1031168  }
  0xb7   : > { %vm6033_vm13 = vcmp.lt.s32.totalorder %v2471_v47, 16  ;;  %vm4257_vm8 = vcmask 736256  }
  0xb8   : > { %4686 = vmatmul.mubr.msk.f32.gmra.mrb[2].mxu0 %vm625_vm0, %v4684_v35  ;;  %v2431_v35 = vmul.u32 18, %v2430_v28 }
  0xb9   : > { %2256 = vmatprep.mubr.f32.mxu0 %v5491_v1  ;;  %v5933_v43 = vpop.permute.xlu1 %2388 }
  0xba   : > { %v2432_v3 = vsub.s32 %v2421_v59, %v2431_v35  ;;  %v2467_v59 = vadd.s32 18, %v2443_v26 }
  0xbb   : > { %4873 = vmatmul.mubr.msk.f32.vlgmr.msra.gmra.mrb[0].mxu1 %vm625_vm0, %v4690_v41 }
  0xbc   : > { %4691 = vmatmul.mubr.msk.f32.vlgmr.msra.gmra.mrb[0].mxu0 %vm625_vm0, %v4689_v36  ;;  %3289 = vmatprep.mubr.f32.mxu1 %v5491_v1  ;;  %v1525_v36 = vld [vmem:[%s5901_s22 + $0x18] sm:$0xff]  ;;  %vm2457_vm9 = vcmp.ne.s32.totalorder %v2432_v3, 0  ;;  %vm2460_vm10 = vcmp.lt.s32.totalorder %v2432_v3, 0  ;;  %v2466_v25 = vadd.s32 18, %v2432_v3  ;;  %v2470_v50 = vsel %vm6012_vm11, %v2467_v59, %v2443_v26 }
  0xbd   : > { %2262 = vmatprep.mubr.f32.mxu0 %v5491_v1  ;;  %v5939_v54 = vpop.permute.xlu0 %2393  ;;  %v5941_v55 = vpop.permute.xlu1 %2406  ;;  %v1531_v42 = vmax.f32 %v1349_v40, %v1525_v36  ;;  %vm6021_vm12 = vmand %vm2460_vm10, %vm2457_vm9  ;;  %vm6039_vm14 = vcmp.lt.s32.totalorder %v2470_v50, 16 }
  0xbe   : > { %v2469_v22 = vsel %vm6021_vm12, %v2466_v25, %v2432_v3 }
  0xbf   : > { %vm6043_vm15 = vcmp.lt.s32.totalorder %v2469_v22, 16 }
  0xc0   : > { %4692 = vmatmul.mubr.msk.f32.gmra.mrb[2].mxu0 %vm625_vm0, %v4690_v41  ;;  %vm2511_vm0 = vcmask 154624  }
  0xc1   : > { %v1722_v57 = vpop.permute.xlu0 %1721  ;;  %v5944_v58 = vpop.permute.xlu1 %2411  ;;  %2714 = vmatprep.mubr.f32.mxu0 %v5491_v1 }
  0xc5   : > { %v5947_v60 = vpop.permute.xlu0 %1725  ;;  %v1724_v61 = vpop.permute.xlu1 %1723 }
  0xc6   : > { %v1733_v34 = vsel %vm966_vm1, %v1722_v57, %v1724_v61  ;;  %v1734_v37 = vsel %vm966_vm1, %v1724_v61, %v5947_v60  ;;  %v1745_v62 = vmax.f32 %v1530_v38, %v5947_v60 }
  0xc7   : > { %v1743_v63 = vmax.f32 %v1528_v20, %v1733_v34 }
  0xc9   : > { %v1730_v0 = vpop.permute.xlu0 %1729  ;;  %v1728_v2 = vpop.permute.xlu1 %1727 }
  0xca   : > { %v1735_v5 = vsel %vm966_vm1, %v1728_v2, %v1730_v0 }
  0xcd   : > { %v1929_v7 = vpop.permute.xlu0 %1928  ;;  %v1732_v8 = vpop.permute.xlu1 %1731 }
  0xce   : > { %v1736_v12 = vsel %vm966_vm1, %v1730_v0, %v1732_v8  ;;  %v1748_v13 = vmax.f32 %v5916_v53, %v1732_v8 }
  0xcf   : > { %v1747_v14 = vmax.f32 %v5919_v33, %v1736_v12  ;;  %v1529_v33 = vmax.f32 %v1347_v16, %v1523_v30  ;;  %v1746_v12 = vmax.f32 %v1531_v42, %v1735_v5 }
  0xd1   : > { %v1933_v44 = vpop.permute.xlu0 %1932  ;;  %v1931_v45 = vpop.permute.xlu1 %1930  ;;  %v1744_v4 = vmax.f32 %v1529_v33, %v1734_v37 }
  0xd2   : > { %v1940_v6 = vsel %vm1758_vm2, %v1929_v7, %v1931_v45  ;;  %v1941_v57 = vsel %vm1758_vm2, %v1931_v45, %v1933_v44  ;;  %v1952_v10 = vmax.f32 %v1745_v62, %v1933_v44 }
  0xd3   : > { %v1951_v0 = vmax.f32 %v1744_v4, %v1941_v57 }
  0xd5   : > { %v1937_v51 = vpop.permute.xlu0 %1936  ;;  %v1935_v52 = vpop.permute.xlu1 %1934 }
  0xd6   : > { %v1942_v7 = vsel %vm1758_vm2, %v1935_v52, %v1937_v51 }
  0xd9   : > { %v2144_v32 = vpop.permute.xlu0 %2143  ;;  %v1939_v24 = vpop.permute.xlu1 %1938 }
  0xda   : > { %v1943_v39 = vsel %vm1758_vm2, %v1937_v51, %v1939_v24  ;;  %v5993_v53 = vmax.f32 %v1748_v13, %v1939_v24  ;;  %v1950_v13 = vmax.f32 %v1743_v63, %v1940_v6  ;;  %v1953_v51 = vmax.f32 %v1746_v12, %v1942_v7 }
  0xdb   : > { %v5996_v19 = vmax.f32 %v1747_v14, %v1943_v39 }
  0xdd   : > { %v2148_v41 = vpop.permute.xlu0 %2147  ;;  %v2146_v56 = vpop.permute.xlu1 %2145 }
  0xde   : > { %v2155_v14 = vsel %vm1758_vm2, %v2144_v32, %v2146_v56  ;;  %v2156_v23 = vsel %vm1758_vm2, %v2146_v56, %v2148_v41  ;;  %v2167_v49 = vmax.f32 %v1952_v10, %v2148_v41 }
  0xdf   : > { %v2165_v52 = vmax.f32 %v1950_v13, %v2155_v14  ;;  %v2166_v18 = vmax.f32 %v1951_v0, %v2156_v23 }
  0xe1   : > { %v2152_v61 = vpop.permute.xlu0 %2151  ;;  %v2150_v8 = vpop.permute.xlu1 %2149 }
  0xe2   : > { %v2157_v31 = vsel %vm1758_vm2, %v2150_v8, %v2152_v61 }
  0xe3   : > { %v2168_v24 = vmax.f32 %v1953_v51, %v2157_v31 }
  0xe5   : > { %v2351_v44 = vpop.permute.xlu0 %2350  ;;  %v2154_v45 = vpop.permute.xlu1 %2153 }
  0xe6   : > { %v2158_v11 = vsel %vm1758_vm2, %v2152_v61, %v2154_v45  ;;  %v2170_v15 = vmax.f32 %v5993_v53, %v2154_v45 }
  0xe7   : > { %v2169_v28 = vmax.f32 %v5996_v19, %v2158_v11 }
  0xe9   : > { %v2355_v21 = vpop.permute.xlu0 %2354  ;;  %v2353_v16 = vpop.permute.xlu1 %2352 }
  0xea   : > { %v2374_v27 = vmax.f32 %v2167_v49, %v2355_v21  ;;  %v2362_v29 = vsel %vm2180_vm3, %v2351_v44, %v2353_v16  ;;  %v2363_v30 = vsel %vm2180_vm3, %v2353_v16, %v2355_v21 }
  0xeb   : > { %v2372_v46 = vmax.f32 %v2165_v52, %v2362_v29  ;;  %v2373_v35 = vmax.f32 %v2166_v18, %v2363_v30 }
  0xec   : > { %v2532_v39 = vsel %vm6033_vm13, %v2374_v27, 0.0 }
  0xed   : > { %2546 = vrot.lane.b32.xlu0 %v2532_v39, %s5496_s17  ;;  %v2359_v53 = vpop.permute.xlu0 %2358  ;;  %v2531_v26 = vsel %vm6039_vm14, %v2373_v35, 0.0  ;;  %v2357_v40 = vpop.permute.xlu1 %2356  ;;  %v2530_v20 = vsel %vm6043_vm15, %v2372_v46, 0.0 }
  0xee   : > { %2544 = vrot.lane.b32.xlu1 %v2531_v26, %s5496_s17  ;;  %v2364_v33 = vsel %vm2180_vm3, %v2357_v40, %v2359_v53 }
  0xef   : > { %v2375_v19 = vmax.f32 %v2168_v24, %v2364_v33 }
  0xf1   : > { %2542 = vrot.lane.b32.xlu0 %v2530_v20, %s5496_s17  ;;  %v2533_v34 = vsel %vm6043_vm15, %v2375_v19, 0.0  ;;  %v2361_v37 = vpop.permute.xlu1 %2360 }
  0xf2   : > { %2548 = vrot.lane.b32.xlu1 %v2533_v34, %s5496_s17  ;;  %v2365_v36 = vsel %vm2180_vm3, %v2359_v53, %v2361_v37  ;;  %v2377_v41 = vmax.f32 %v2170_v15, %v2361_v37 }
  0xf3   : > { %v2376_v56 = vmax.f32 %v2169_v28, %v2365_v36 }
  0xf4   : > { %v2535_v27 = vsel %vm6033_vm13, %v2377_v41, 0.0 }
 0x15f   : > { %v2547_v62 = vpop.permute.xlu0 %2546 }
 0x160   : > { %v2545_v3 = vpop.permute.xlu1 %2544 }
 0x161   : > { %v2555_v63 = vsel %vm2511_vm0, %v2545_v3, %v2547_v62 }
 0x162   : > { %2566 = vst.msk [vmem:[#allocation2 + $0x40] sm:$0xff] %vm2525_vm4, %v2555_v63 }
 0x163   : > { %v2543_v4 = vpop.permute.xlu0 %2542 }
 0x164   : > { %2564 = vst.msk [vmem:[#allocation2 + $0x30] sm:$0xff] %vm2522_vm5, %v2543_v4  ;;  %v6065_v42 = vsel %vm2511_vm0, %v2543_v4, %v2545_v3  ;;  %v6067_v5 = vpop.permute.xlu1 %2548 }
 0x165   : > { %2567 = vst.msk [vmem:[#allocation2 + $0x48] sm:$0xff] %vm2522_vm5, %v6067_v5 }
 0x169   : > { %v6111_v16 = vld [vmem:[#allocation2 + $0x40] sm:$0xff] }
 0x16a   : > { %v6120_v29 = vpack.i.bf16 %v6111_v16, %v6065_v42 }
 0x16b   : > { %v6071_v6 = vld [vmem:[#allocation2 + $0x30] sm:$0xff] }
 0x16c   : > { %v6073_v57 = vld [vmem:[#allocation2 + $0x48] sm:$0xff] }
 0x16d   : > { %v6077_v61 = vpack.i.bf16 %v6073_v57, %v6071_v6  ;;  %v4996_v8 = vpack.c.bf16 %v6073_v57, %v6071_v6 }
 0x18e   : > { %v4874_v9 = vpop.f32.mrb[0].mxu1 }
 0x18f   : > { %v2383_v10 = vmax.f32 %v4874_v9, 0.0  ;;  %v2258_v60 = vpop.f32.mrb[0].mxu0  ;;  %v2335_v59 = vpop.f32.mrb[1].mxu1 }
 0x190   : > { %v2378_v12 = vmax.f32 %v2258_v60, 0.0  ;;  %v2380_v13 = vmax.f32 %v2335_v59, 0.0  ;;  %v2260_v0 = vpop.f32.mrb[1].mxu0  ;;  %v4449_v60 = vld [vmem:[%s6611_s12 + $0x8] sm:$0xff] }
 0x191   : > { %v2401_v2 = vmul.f32 %v5939_v54, %v2383_v10  ;;  %v2379_v7 = vmax.f32 %v2260_v0, 0.0  ;;  %v4467_v59 = vld [vmem:[%s6612_s13 + $0x8] sm:$0xff] }
 0x192   : > { %v2396_v14 = vmul.f32 %v5933_v43, %v2378_v12  ;;  %v2398_v23 = vmul.f32 %v5933_v43, %v2380_v13  ;;  %v4448_v12 = vld [vmem:[%s6611_s12] sm:$0xff] }
 0x193   : > { %v2397_v25 = vmul.f32 %v5933_v43, %v2379_v7  ;;  %v2264_v44 = vpop.f32.mrb[2].mxu0  ;;  %v2419_v45 = vadd.f32 %v5944_v58, %v2401_v2  ;;  %v4466_v13 = vld [vmem:[%s6612_s13] sm:$0xff] }
 0x194   : > { %v2381_v47 = vmax.f32 %v2264_v44, 0.0  ;;  %v2266_v48 = vpop.f32.mrb[3].mxu0  ;;  %v2414_v49 = vadd.f32 %v5941_v55, %v2396_v14  ;;  %v2416_v52 = vadd.f32 %v5941_v55, %v2398_v23 }
 0x195   : > { %v2382_v11 = vmax.f32 %v2266_v48, 0.0  ;;  %v2492_v15 = vsel %vm6033_vm13, %v2419_v45, 0.0  ;;  %v2415_v50 = vadd.f32 %v5941_v55, %v2397_v25 }
 0x196   : > { %v2399_v51 = vmul.f32 %v5939_v54, %v2381_v47  ;;  %2509 = vrot.lane.b32.xlu1 %v2492_v15, %s5496_s17  ;;  %v2487_v43 = vsel %vm6043_vm15, %v2414_v49, 0.0  ;;  %v2489_v22 = vsel %vm6033_vm13, %v2416_v52, 0.0 }
 0x197   : > { %v2400_v18 = vmul.f32 %v5939_v54, %v2382_v11  ;;  %2499 = vrot.lane.b32.xlu0 %v2487_v43, %s5496_s17  ;;  %v2488_v28 = vsel %vm6039_vm14, %v2415_v50, 0.0 }
 0x198   : > { %v2417_v31 = vadd.f32 %v5944_v58, %v2399_v51 }
 0x199   : > { %v2418_v21 = vadd.f32 %v5944_v58, %v2400_v18  ;;  %v2534_v58 = vsel %vm6039_vm14, %v2376_v56, 0.0 }
 0x19a   : > { %2501 = vrot.lane.b32.xlu1 %v2488_v28, %s5496_s17  ;;  %v2490_v55 = vsel %vm6043_vm15, %v2417_v31, 0.0 }
 0x19b   : > { %2503 = vrot.lane.b32.xlu0 %v2489_v22, %s5496_s17  ;;  %v2491_v54 = vsel %vm6039_vm14, %v2418_v21, 0.0 }
 0x19e   : > { %2505 = vrot.lane.b32.xlu1 %v2490_v55, %s5496_s17 }
 0x19f   : > { %2507 = vrot.lane.b32.xlu0 %v2491_v54, %s5496_s17 }
 0x1a2   : > { %2552 = vrot.lane.b32.xlu1 %v2535_v27, %s5496_s17 }
 0x1a3   : > { %2550 = vrot.lane.b32.xlu0 %v2534_v58, %s5496_s17 }
 0x1a6   : > { %5244 = vrot.lane.b32.xlu1 %v6120_v29, %s6620_s24 }
 0x1aa   : > { %5254 = vrot.lane.b32.xlu1 %v6077_v61, %s6620_s24 }
 0x1ae   : > { %5259 = vrot.lane.b32.xlu1 %v6120_v29, %s6621_s16 }
 0x208   : > { %v2510_v17 = vpop.permute.xlu1 %2509 }
 0x209   : > { %v2500_v30 = vpop.permute.xlu0 %2499 }
 0x20a   : > { %2523 = vst.msk [vmem:[#allocation2] sm:$0xff] %vm2522_vm5, %v2500_v30 }
 0x20c   : > { %v2502_v32 = vpop.permute.xlu1 %2501 }
 0x20d   : > { %v6131_v24 = vsel %vm2511_vm0, %v2500_v30, %v2502_v32  ;;  %v2504_v46 = vpop.permute.xlu0 %2503 }
 0x20e   : > { %v2513_v35 = vsel %vm2511_vm0, %v2502_v32, %v2504_v46 }
 0x20f   : > { %2526 = vst.msk [vmem:[#allocation2 + $0x10] sm:$0xff] %vm2525_vm4, %v2513_v35 }
 0x210   : > { %v2506_v38 = vpop.permute.xlu1 %2505 }
 0x211   : > { %2527 = vst.msk [vmem:[#allocation2 + $0x18] sm:$0xff] %vm2522_vm5, %v2506_v38  ;;  %v2508_v39 = vpop.permute.xlu0 %2507  ;;  %v6151_v41 = vld [vmem:[#allocation2] sm:$0xff] }
 0x212   : > { %v6137_v53 = vsel %vm2511_vm0, %v2506_v38, %v2508_v39  ;;  %v2515_v26 = vsel %vm2511_vm0, %v2508_v39, %v2510_v17 }
 0x213   : > { %2529 = vst.msk [vmem:[#allocation2 + $0x28] sm:$0xff] %vm2525_vm4, %v2515_v26  ;;  %v4990_v40 = vpack.c.bf16 %v6137_v53, %v6131_v24 }
 0x214   : > { %v2553_v20 = vpop.permute.xlu1 %2552 }
 0x215   : > { %v2551_v33 = vpop.permute.xlu0 %2550 }
 0x216   : > { %v6145_v19 = vsel %vm2511_vm0, %v6067_v5, %v2551_v33  ;;  %v2557_v34 = vsel %vm2511_vm0, %v2551_v33, %v2553_v20  ;;  %v2574_v62 = vld [vmem:[#allocation2 + $0x10] sm:$0xff] }
 0x217   : > { %2569 = vst.msk [vmem:[#allocation2 + $0x58] sm:$0xff] %vm2525_vm4, %v2557_v34  ;;  %v5268_v10 = vpack.i.bf16 %v2574_v62, %v6131_v24 }
 0x218   : > { %v6149_v37 = vld [vmem:[#allocation2 + $0x18] sm:$0xff] }
 0x219   : > { %v5458_v3 = vpack.i.bf16 %v6149_v37, %v6151_v41  ;;  %v4992_v63 = vpack.c.bf16 %v6149_v37, %v6151_v41 }
 0x21a   : > { %v2577_v36 = vld [vmem:[#allocation2 + $0x28] sm:$0xff] }
 0x21b   : > { %v5288_v56 = vpack.i.bf16 %v2577_v36, %v6137_v53  ;;  %v6158_v4 = vpack.c.bf16 %v2577_v36, %v2574_v62 }
 0x21d   : > { %5289 = vrot.lane.b32.xlu1 %v5288_v56, %s6620_s24 }
 0x21e   : > { %v6161_v5 = vld [vmem:[#allocation2 + $0x58] sm:$0xff] }
 0x21f   : > { %v5248_v9 = vpack.i.bf16 %v6161_v5, %v6145_v19 }
 0x221   : > { %5294 = vrot.lane.b32.xlu1 %v6077_v61, %s6621_s16  ;;  %5249 = vrot.lane.b32.xlu0 %v5248_v9, %s6620_s24 }
 0x225   : > { %5309 = vrot.lane.b32.xlu1 %v5288_v56, %s6621_s16  ;;  %5264 = vrot.lane.b32.xlu0 %v5248_v9, %s6621_s16 }
 0x229   : > { %5314 = vrot.lane.b32.xlu1 %v6120_v29, %s5497_s19  ;;  %5269 = vrot.lane.b32.xlu0 %v5268_v10, %s6620_s24 }
 0x22d   : > { %5324 = vrot.lane.b32.xlu1 %v6077_v61, %s5497_s19  ;;  %5274 = vrot.lane.b32.xlu0 %v5268_v10, %s6621_s16 }
 0x231   : > { %5339 = vrot.lane.b32.xlu1 %v6120_v29, %s5493_s28  ;;  %5279 = vrot.lane.b32.xlu0 %v5458_v3, %s6620_s24  ;;  %s5499_s24 = smov 91  }
 0x235   : > { %5349 = vrot.lane.b32.xlu1 %v5288_v56, %s5497_s19  ;;  %5284 = vrot.lane.b32.xlu0 %v5458_v3, %s6621_s16  ;;  %s5500_s16 = smov 126  }
 0x239   : > { %5354 = vrot.lane.b32.xlu1 %v6077_v61, %s5493_s28  ;;  %5299 = vrot.lane.b32.xlu0 %v5268_v10, %s5497_s19 }
 0x23d   : > { %5369 = vrot.lane.b32.xlu1 %v5288_v56, %s5493_s28  ;;  %5304 = vrot.lane.b32.xlu0 %v5458_v3, %s5497_s19 }
 0x241   : > { %5374 = vrot.lane.b32.xlu1 %v6120_v29, %s5498_s20  ;;  %5319 = vrot.lane.b32.xlu0 %v5248_v9, %s5497_s19 }
 0x245   : > { %5384 = vrot.lane.b32.xlu1 %v5288_v56, %s5498_s20  ;;  %5329 = vrot.lane.b32.xlu0 %v5268_v10, %s5493_s28 }
 0x249   : > { %5389 = vrot.lane.b32.xlu1 %v6077_v61, %s5498_s20  ;;  %5334 = vrot.lane.b32.xlu0 %v5458_v3, %s5493_s28 }
 0x24d   : > { %5404 = vrot.lane.b32.xlu1 %v6120_v29, %s5499_s24  ;;  %5344 = vrot.lane.b32.xlu0 %v5248_v9, %s5493_s28 }
 0x251   : > { %5414 = vrot.lane.b32.xlu1 %v6077_v61, %s5499_s24  ;;  %5359 = vrot.lane.b32.xlu0 %v5268_v10, %s5498_s20 }
 0x255   : > { %5429 = vrot.lane.b32.xlu1 %v5288_v56, %s5499_s24  ;;  %5364 = vrot.lane.b32.xlu0 %v5458_v3, %s5498_s20 }
 0x259   : > { %5434 = vrot.lane.b32.xlu1 %v6120_v29, %s5500_s16  ;;  %5379 = vrot.lane.b32.xlu0 %v5248_v9, %s5498_s20 }
 0x25d   : > { %5444 = vrot.lane.b32.xlu1 %v5288_v56, %s5500_s16  ;;  %5394 = vrot.lane.b32.xlu0 %v5268_v10, %s5499_s24 }
 0x261   : > { %5449 = vrot.lane.b32.xlu1 %v6077_v61, %s5500_s16  ;;  %5399 = vrot.lane.b32.xlu0 %v5458_v3, %s5499_s24 }
 0x265   : > { %5464 = vrot.lane.b32.xlu1 %v5288_v56, %s5501_s21  ;;  %5409 = vrot.lane.b32.xlu0 %v5248_v9, %s5499_s24 }
 0x269   : > { %5469 = vrot.lane.b32.xlu1 %v6120_v29, %s5501_s21  ;;  %5419 = vrot.lane.b32.xlu0 %v5268_v10, %s5500_s16 }
 0x26d   : > { %5479 = vrot.lane.b32.xlu1 %v6077_v61, %s5501_s21  ;;  %5424 = vrot.lane.b32.xlu0 %v5458_v3, %s5500_s16  ;;  %v6202_v61 = vpop.permute.xlu1 %5244 }
 0x26e   : > { %v5247_v21 = vunpack.i.h.bf16 %v6202_v61  ;;  %v5246_v55 = vunpack.i.l.bf16 %v6202_v61 }
 0x270   : > { %v3204_v56 = vsel %vm1758_vm2, %v5246_v55, %v5247_v21 }
 0x271   : > { %4457 = vperm.xlu1 %5241, %v4449_v60   ;;  %5439 = vrot.lane.b32.xlu0 %v5248_v9, %s5500_s16  ;;  %v5255_v0 = vpop.permute.xlu1 %5254 }
 0x272   : > { %v5257_v46 = vunpack.i.h.bf16 %v5255_v0  ;;  %v5256_v35 = vunpack.i.l.bf16 %v5255_v0 }
 0x275   : > { %4475 = vperm.xlu1 %5241, %v4467_v59   ;;  %5454 = vrot.lane.b32.xlu0 %v5268_v10, %s5501_s21  ;;  %v6207_v2 = vpop.permute.xlu1 %5259 }
 0x276   : > { %v5262_v0 = vunpack.i.h.bf16 %v6207_v2 }
 0x279   : > { %5459 = vrot.lane.b32.xlu0 %v5458_v3, %s5501_s21 }
 0x27d   : > { %5474 = vrot.lane.b32.xlu0 %v5248_v9, %s5501_s21 }
 0x281   : > { %4452 = vperm.xlu0 %5242, %v4448_v12  }
 0x285   : > { %4470 = vperm.xlu0 %5242, %v4466_v13   ;;  %v3203_v13 = vsel %vm1758_vm2, %v5256_v35, %v5246_v55 }
 0x28f   : > { %v5290_v7 = vpop.permute.xlu1 %5289 }
 0x290   : > { %v5292_v45 = vunpack.i.h.bf16 %v5290_v7  ;;  %v5291_v47 = vunpack.i.l.bf16 %v5290_v7  ;;  %v5261_v7 = vunpack.i.l.bf16 %v6207_v2 }
 0x292   : > { %v3202_v43 = vsel %vm1758_vm2, %v5291_v47, %v5292_v45 }
 0x293   : > { %v6209_v14 = vpop.permute.xlu1 %5294  ;;  %v6211_v23 = vpop.permute.xlu0 %5249 }
 0x294   : > { %v6618_v31 = vunpack.i.h.bf16 %v6211_v23  ;;  %v5251_v22 = vunpack.i.l.bf16 %v6211_v23 }
 0x296   : > { %v3206_v32 = vsel %vm1758_vm2, %v5251_v22, %v6618_v31  ;;  %v3205_v62 = vsel %vm1758_vm2, %v5257_v46, %v5251_v22 }
 0x297   : > { %v6213_v25 = vpop.permute.xlu1 %5309  ;;  %v6215_v44 = vpop.permute.xlu0 %5264  ;;  %v5026_v10 = vpack.c.bf16 %v3206_v32, %v3204_v56 }
 0x298   : > { %v5312_v26 = vunpack.i.h.bf16 %v6213_v25  ;;  %v5311_v20 = vunpack.i.l.bf16 %v6213_v25  ;;  %v5267_v60 = vunpack.i.h.bf16 %v6215_v44  ;;  %v5266_v59 = vunpack.i.l.bf16 %v6215_v44 }
 0x299   : > { %v5028_v25 = vpack.c.bf16 %v3205_v62, %v3203_v13 }
 0x29a   : > { %v3417_v2 = vsel %vm2180_vm3, %v5266_v59, %v5267_v60 }
 0x29b   : > { %v6217_v48 = vpop.permute.xlu1 %5314  ;;  %v5270_v49 = vpop.permute.xlu0 %5269 }
 0x29c   : > { %v5272_v11 = vunpack.i.h.bf16 %v5270_v49  ;;  %v5271_v15 = vunpack.i.l.bf16 %v5270_v49  ;;  %v3413_v49 = vsel %vm2180_vm3, %v5311_v20, %v5312_v26 }
 0x29e   : > { %v6219_v50 = vpack.c.bf16 %v5292_v45, %v5272_v11  ;;  %v3200_v51 = vsel %vm1758_vm2, %v5271_v15, %v5272_v11 }
 0x29f   : > { %v6223_v52 = vpop.permute.xlu1 %5324  ;;  %v6225_v18 = vpop.permute.xlu0 %5274  ;;  %v5022_v28 = vpack.c.bf16 %v3202_v43, %v3200_v51  ;;  %v6264_v51 = vld [vmem:[%s6610_s11 + $0x30] sm:$0xff]  ;;  %v5297_v43 = vunpack.i.h.bf16 %v6209_v14 }
 0x2a0   : > { %v5277_v17 = vunpack.i.h.bf16 %v6225_v18  ;;  %v5276_v30 = vunpack.i.l.bf16 %v6225_v18  ;;  %v5296_v18 = vunpack.i.l.bf16 %v6209_v14  ;;  %v6279_v14 = vld [vmem:[%s6610_s11 + $0x38] sm:$0xff] }
 0x2a1   : > { %5023 = vmatprep.subr.bf16.mxu1 %v5022_v28 }
 0x2a2   : > { %v3411_v12 = vsel %vm2180_vm3, %v5276_v30, %v5277_v17 }
 0x2a3   : > { %v6231_v54 = vpop.permute.xlu1 %5339  ;;  %v5280_v27 = vpop.permute.xlu0 %5279 }
 0x2a4   : > { %v5282_v58 = vunpack.i.h.bf16 %v5280_v27  ;;  %v5281_v29 = vunpack.i.l.bf16 %v5280_v27  ;;  %v3415_v27 = vsel %vm2180_vm3, %v5261_v7, %v5262_v0  ;;  %v5341_v31 = vunpack.i.l.bf16 %v6231_v54 }
 0x2a6   : > { %v3201_v38 = vsel %vm1758_vm2, %v5282_v58, %v5291_v47  ;;  %v3199_v39 = vsel %vm1758_vm2, %v5281_v29, %v5271_v15  ;;  %v5038_v15 = vpack.c.bf16 %v3413_v49, %v3411_v12  ;;  %v3416_v58 = vsel %vm2180_vm3, %v5297_v43, %v5266_v59 }
 0x2a7   : > { %v5024_v33 = vpack.c.bf16 %v3201_v38, %v3199_v39  ;;  %v6242_v34 = vpop.permute.xlu1 %5349  ;;  %v5285_v36 = vpop.permute.xlu0 %5284  ;;  %v5042_v29 = vpack.c.bf16 %v3417_v2, %v3415_v27  ;;  %vm3621_vm2 = vcmask 883712   ;;  %v5316_v2 = vunpack.i.l.bf16 %v6217_v48 }
 0x2a8   : > { %v5287_v3 = vunpack.i.h.bf16 %v5285_v36  ;;  %v5286_v9 = vunpack.i.l.bf16 %v5285_v36  ;;  %v5352_v36 = vunpack.i.h.bf16 %v6242_v34  ;;  %v5351_v56 = vunpack.i.l.bf16 %v6242_v34 }
 0x2a9   : > { %5025 = vmatpush1.bf16.msra.mxu1 %v5024_v33  ;;  %v4717_v33 = vld [vmem:[%s6610_s11 + $0x40] sm:$0xff] }
 0x2aa   : > { %5027 = vmatprep.subr.bf16.mxu1 %v5026_v10  ;;  %v3412_v11 = vsel %vm2180_vm3, %v5287_v3, %v5311_v20  ;;  %v3410_v44 = vsel %vm2180_vm3, %v5286_v9, %v5276_v30  ;;  %v3414_v30 = vsel %vm2180_vm3, %v5296_v18, %v5261_v7  ;;  %v5046_v20 = vpack.c.bf16 %v5312_v26, %v5277_v17 }
 0x2ab   : > { %v6254_v45 = vpop.permute.xlu1 %5354  ;;  %v6256_v47 = vpop.permute.xlu0 %5299  ;;  %v5040_v28 = vpack.c.bf16 %v3412_v11, %v3410_v44  ;;  %v5044_v32 = vpack.c.bf16 %v3416_v58, %v3414_v30  ;;  %v5050_v17 = vpack.c.bf16 %v5267_v60, %v5262_v0  ;;  %v4718_v0 = vld [vmem:[%s6610_s11 + $0x48] sm:$0xff]  ;;  %v3625_v44 = vsel %vm3621_vm2, %v5351_v56, %v5352_v36 }
 0x2ac   : > { %v5302_v46 = vunpack.i.h.bf16 %v6256_v47  ;;  %v5301_v35 = vunpack.i.l.bf16 %v6256_v47  ;;  %vm4045_vm3 = vcmask 744448  }
 0x2ad   : > { %5029 = vmatpush1.bf16.msra.mxu1 %v5028_v25 }
 0x2ae   : > { %5039 = vmatprep.subr.bf16.mxu1 %v5038_v15  ;;  %v3623_v10 = vsel %vm3621_vm2, %v5301_v35, %v5302_v46  ;;  %v5317_v15 = vunpack.i.h.bf16 %v6217_v48 }
 0x2af   : > { %v6269_v22 = vpop.permute.xlu1 %5369  ;;  %v5305_v55 = vpop.permute.xlu0 %5304 }
 0x2b0   : > { %4713 = vmatmul.mubr.msk.f32.vlgmr.msra.gmra.mrb[2].mxu1 %vm2643_vm6, %v6264_v51  ;;  %v5372_v62 = vunpack.i.h.bf16 %v6269_v22  ;;  %v5371_v3 = vunpack.i.l.bf16 %v6269_v22  ;;  %v5307_v59 = vunpack.i.h.bf16 %v5305_v55  ;;  %v5306_v12 = vunpack.i.l.bf16 %v5305_v55 }
 0x2b1   : > { %5041 = vmatpush1.bf16.msra.mxu1 %v5040_v28  ;;  %3295 = vmatprep.mubr.f32.mxu1 %v5491_v1  ;;  %v5054_v55 = vpack.c.bf16 %v3625_v44, %v3623_v10 }
 0x2b2   : > { %5043 = vmatprep.subr.bf16.mxu1 %v5042_v29  ;;  %v2626_v11 = vsel %vm966_vm1, %v5371_v3, %v5372_v62  ;;  %v3624_v27 = vsel %vm3621_vm2, %v5307_v59, %v5351_v56  ;;  %v3622_v58 = vsel %vm3621_vm2, %v5306_v12, %v5301_v35  ;;  %v5327_v56 = vunpack.i.h.bf16 %v6223_v52 }
 0x2b3   : > { %v6284_v38 = vpop.permute.xlu1 %5374  ;;  %v6286_v39 = vpop.permute.xlu0 %5319  ;;  %v5356_v35 = vunpack.i.l.bf16 %v6254_v45 }
 0x2b4   : > { %4714 = vmatmul.mubr.msk.f32.gmra.mrb[4].mxu1 %vm2643_vm6, %v6279_v14  ;;  %v5322_v25 = vunpack.i.h.bf16 %v6286_v39  ;;  %v5321_v60 = vunpack.i.l.bf16 %v6286_v39  ;;  %v5377_v48 = vunpack.i.h.bf16 %v6284_v38  ;;  %v5376_v39 = vunpack.i.l.bf16 %v6284_v38 }
 0x2b5   : > { %5045 = vmatpush1.bf16.msra.mxu1 %v5044_v32  ;;  %3500 = vmatprep.mubr.f32.mxu1 %v5491_v1  ;;  %v5326_v32 = vunpack.i.l.bf16 %v6223_v52  ;;  %v3627_v52 = vsel %vm3621_vm2, %v5316_v2, %v5317_v15 }
 0x2b6   : > { %5047 = vmatprep.subr.bf16.mxu1 %v5046_v20  ;;  %v3629_v10 = vsel %vm3621_vm2, %v5321_v60, %v5322_v25 }
 0x2b7   : > { %v6298_v26 = vpop.permute.xlu1 %5384  ;;  %v6300_v9 = vpop.permute.xlu0 %5329 }
 0x2b8   : > { %v5332_v13 = vunpack.i.h.bf16 %v6300_v9  ;;  %v5331_v7 = vunpack.i.l.bf16 %v6300_v9  ;;  %4719 = vmatmul.mubr.msk.f32.vlgmr.msra.gmra.mrb[2].mxu1 %vm2643_vm6, %v4717_v33  ;;  %v5387_v47 = vunpack.i.h.bf16 %v6298_v26  ;;  %v5386_v34 = vunpack.i.l.bf16 %v6298_v26 }
 0x2b9   : > { %5049 = vmatpush3.bf16.msra.mxu1 %v5046_v20  ;;  %3506 = vmatprep.mubr.f32.mxu1 %v5491_v1  ;;  %v5342_v20 = vunpack.i.h.bf16 %v6231_v54  ;;  %v5056_v54 = vpack.c.bf16 %v3624_v27, %v3622_v58 }
 0x2ba   : > { %5051 = vmatprep.subr.bf16.mxu1 %v5050_v17  ;;  %v2624_v49 = vsel %vm966_vm1, %v5331_v7, %v5332_v13 }
 0x2bb   : > { %v6325_v43 = vpop.permute.xlu1 %5389  ;;  %v5335_v18 = vpop.permute.xlu0 %5334  ;;  %v4974_v28 = vpack.c.bf16 %v2626_v11, %v2624_v49  ;;  %v5357_v49 = vunpack.i.h.bf16 %v6254_v45  ;;  %v2628_v45 = vsel %vm966_vm1, %v5341_v31, %v5342_v20 }
 0x2bc   : > { %v5337_v29 = vunpack.i.h.bf16 %v5335_v18  ;;  %v5336_v30 = vunpack.i.l.bf16 %v5335_v18  ;;  %4720 = vmatmul.mubr.msk.f32.gmra.mrb[4].mxu1 %vm2643_vm6, %v4718_v0  ;;  %v3628_v18 = vsel %vm3621_vm2, %v5327_v56, %v5321_v60  ;;  %v4982_v56 = vpack.c.bf16 %v5372_v62, %v5332_v13 }
 0x2bd   : > { %4975 = vmatprep.subr.bf16.mxu0 %v4974_v28  ;;  %5053 = vmatpush3.bf16.msra.mxu1 %v5050_v17  ;;  %v5066_v62 = vpack.c.bf16 %v5322_v25, %v5317_v15  ;;  %v4696_v25 = vld [vmem:[%s6610_s11 + $0x18] sm:$0xff] }
 0x2be   : > { %v2625_v59 = vsel %vm966_vm1, %v5337_v29, %v5371_v3  ;;  %v2623_v12 = vsel %vm966_vm1, %v5336_v30, %v5331_v7  ;;  %5055 = vmatprep.subr.bf16.mxu1 %v5054_v55  ;;  %4927 = vmatprep.mubr.msk.f32.mxu1 %vm2643_vm6, %v4717_v33  ;;  %v5058_v7 = vpack.c.bf16 %v3629_v10, %v3627_v52 }
 0x2bf   : > { %v4976_v11 = vpack.c.bf16 %v2625_v59, %v2623_v12  ;;  %v6342_v17 = vpop.permute.xlu1 %5404  ;;  %v5345_v44 = vpop.permute.xlu0 %5344  ;;  %v3626_v33 = vsel %vm3621_vm2, %v5326_v32, %v5316_v2  ;;  %v2627_v55 = vsel %vm966_vm1, %v5356_v35, %v5341_v31  ;;  %v5062_v32 = vpack.c.bf16 %v5352_v36, %v5302_v46  ;;  %v4723_v35 = vld [vmem:[%s6610_s11 + $0x50] sm:$0xff]  ;;  %v4724_v12 = vld [vmem:[%s6610_s11 + $0x58] sm:$0xff] }
 0x2c0   : > { %v5347_v28 = vunpack.i.h.bf16 %v5345_v44  ;;  %v5346_v3 = vunpack.i.l.bf16 %v5345_v44  ;;  %4928 = vmatmul.mubr.msk.f32.vlgmr.msra.gmra.mrb[6].mxu1 %vm2643_vm6, %v4718_v0  ;;  %v5060_v60 = vpack.c.bf16 %v3628_v18, %v3626_v33  ;;  %v4695_v46 = vld [vmem:[%s6610_s11 + $0x10] sm:$0xff]  ;;  %v5392_v18 = vunpack.i.h.bf16 %v6325_v43 }
 0x2c1   : > { %4977 = vmatpush1.bf16.msra.mxu0 %v4976_v11  ;;  %5057 = vmatpush1.bf16.msra.mxu1 %v5056_v54 }
 0x2c2   : > { %v2629_v27 = vsel %vm966_vm1, %v5357_v49, %v5346_v3  ;;  %5059 = vmatprep.subr.bf16.mxu1 %v5058_v7  ;;  %v2630_v58 = vsel %vm966_vm1, %v5346_v3, %v5347_v28  ;;  %3712 = vmatprep.mubr.f32.mxu1 %v5491_v1  ;;  %vm3833_vm1 = vcmask 752640   ;;  %v4986_v59 = vpack.c.bf16 %v5347_v28, %v5342_v20 }
 0x2c3   : > { %v4980_v29 = vpack.c.bf16 %v2629_v27, %v2627_v55  ;;  %v6355_v30 = vpop.permute.xlu1 %5414  ;;  %v6357_v0 = vpop.permute.xlu0 %5359  ;;  %v4978_v2 = vpack.c.bf16 %v2630_v58, %v2628_v45  ;;  %v3837_v15 = vsel %vm3833_vm1, %v5386_v34, %v5387_v47  ;;  %v5391_v28 = vunpack.i.l.bf16 %v6325_v43 }
 0x2c4   : > { %v5362_v31 = vunpack.i.h.bf16 %v6357_v0  ;;  %v5361_v10 = vunpack.i.l.bf16 %v6357_v0  ;;  %v3839_v3 = vsel %vm3833_vm1, %v5376_v39, %v5377_v48  ;;  %v4994_v43 = vpack.c.bf16 %v6145_v19, %v6065_v42  ;;  %v4729_v19 = vld [vmem:[%s6610_s11 + $0x60] sm:$0xff] }
 0x2c5   : > { %4979 = vmatprep.subr.bf16.mxu0 %v4978_v2  ;;  %5061 = vmatpush1.bf16.msra.mxu1 %v5060_v60  ;;  %v3838_v58 = vsel %vm3833_vm1, %v5391_v28, %v5376_v39  ;;  %v5416_v39 = vunpack.i.l.bf16 %v6355_v30 }
 0x2c6   : > { %4981 = vmatpush1.bf16.msra.mxu0 %v4980_v29  ;;  %5063 = vmatprep.subr.bf16.mxu1 %v5062_v32  ;;  %v3835_v26 = vsel %vm3833_vm1, %v5361_v10, %v5362_v31  ;;  %v5078_v60 = vpack.c.bf16 %v5387_v47, %v5362_v31 }
 0x2c7   : > { %v6377_v36 = vpop.permute.xlu1 %5429  ;;  %v5365_v22 = vpop.permute.xlu0 %5364  ;;  %4983 = vmatprep.subr.bf16.mxu0 %v4982_v56  ;;  %v5070_v49 = vpack.c.bf16 %v3837_v15, %v3835_v26 }
 0x2c8   : > { %v5367_v9 = vunpack.i.h.bf16 %v5365_v22  ;;  %v5366_v13 = vunpack.i.l.bf16 %v5365_v22  ;;  %4725 = vmatmul.mubr.msk.f32.vlgmr.msra.gmra.mrb[2].mxu1 %vm2643_vm6, %v4723_v35  ;;  %v5432_v37 = vunpack.i.h.bf16 %v6377_v36  ;;  %v5431_v41 = vunpack.i.l.bf16 %v6377_v36 }
 0x2c9   : > { %5065 = vmatpush3.bf16.msra.mxu1 %v5062_v32  ;;  %4697 = vmatmul.mubr.msk.f32.vlgmr.msra.gmra.mrb[4].mxu0 %vm2643_vm6, %v4695_v46  ;;  %v5407_v22 = vunpack.i.h.bf16 %v6342_v17 }
 0x2ca   : > { %4985 = vmatpush3.bf16.msra.mxu0 %v4982_v56  ;;  %5067 = vmatprep.subr.bf16.mxu1 %v5066_v62  ;;  %v3836_v54 = vsel %vm3833_vm1, %v5367_v9, %v5386_v34  ;;  %v3834_v11 = vsel %vm3833_vm1, %v5366_v13, %v5361_v10  ;;  %v5002_v56 = vpack.c.bf16 %v6161_v5, %v6111_v16 }
 0x2cb   : > { %v5380_v20 = vpop.permute.xlu0 %5379  ;;  %4987 = vmatprep.subr.bf16.mxu0 %v4986_v59  ;;  %3718 = vmatprep.mubr.f32.mxu1 %v5491_v1  ;;  %v6402_v38 = vpop.permute.xlu1 %5434  ;;  %v5072_v33 = vpack.c.bf16 %v3836_v54, %v3834_v11 }
 0x2cc   : > { %v5382_v44 = vunpack.i.h.bf16 %v5380_v20  ;;  %v5381_v52 = vunpack.i.l.bf16 %v5380_v20  ;;  %2720 = vmatprep.mubr.f32.mxu0 %v5491_v1  ;;  %4726 = vmatmul.mubr.msk.f32.gmra.mrb[4].mxu1 %vm2643_vm6, %v4724_v12 }
 0x2cd   : > { %5069 = vmatpush3.bf16.msra.mxu1 %v5066_v62  ;;  %4698 = vmatmul.mubr.msk.f32.gmra.mrb[6].mxu0 %vm2643_vm6, %v4696_v25  ;;  %v5406_v62 = vunpack.i.l.bf16 %v6342_v17  ;;  %v4705_v17 = vld [vmem:[%s6610_s11 + $0x20] sm:$0xff] }
 0x2ce   : > { %4989 = vmatpush3.bf16.msra.mxu0 %v4986_v59  ;;  %5071 = vmatprep.subr.bf16.mxu1 %v5070_v49  ;;  %v3841_v7 = vsel %vm3833_vm1, %v5381_v52, %v5382_v44  ;;  %v3840_v27 = vsel %vm3833_vm1, %v5392_v18, %v5381_v52  ;;  %v5082_v2 = vpack.c.bf16 %v5382_v44, %v5377_v48  ;;  %v2571_v59 = vld [vmem:[%s6610_s11 + $0x8] sm:$0xff]  ;;  %v5417_v48 = vunpack.i.h.bf16 %v6355_v30 }
 0x2cf   : > { %v6409_v45 = vpop.permute.xlu0 %5394  ;;  %4991 = vmatprep.subr.bf16.mxu0 %v4990_v40  ;;  %4938 = vmatprep.mubr.msk.f32.mxu1 %vm2643_vm6, %v4723_v35  ;;  %v5074_v55 = vpack.c.bf16 %v3841_v7, %v3839_v3  ;;  %v5076_v24 = vpack.c.bf16 %v3840_v27, %v3838_v58  ;;  %v6425_v53 = vpop.permute.xlu1 %5444  ;;  %v4730_v35 = vld [vmem:[%s6610_s11 + $0x68] sm:$0xff]  ;;  %v4051_v30 = vsel %vm4045_vm3, %v5406_v62, %v5407_v22  ;;  %v5437_v3 = vunpack.i.h.bf16 %v6402_v38 }
 0x2d0   : > { %4883 = vmatprep.mubr.msk.f32.mxu0 %vm2643_vm6, %v4695_v46  ;;  %4939 = vmatmul.mubr.msk.f32.vlgmr.msra.gmra.mrb[6].mxu1 %vm2643_vm6, %v4724_v12  ;;  %v5397_v29 = vunpack.i.h.bf16 %v6409_v45  ;;  %v5396_v42 = vunpack.i.l.bf16 %v6409_v45  ;;  %v5447_v47 = vunpack.i.h.bf16 %v6425_v53  ;;  %v5446_v34 = vunpack.i.l.bf16 %v6425_v53  ;;  %v4735_v45 = vld [vmem:[%s6610_s11 + $0x70] sm:$0xff] }
 0x2d1   : > { %5073 = vmatpush1.bf16.msra.mxu1 %v5072_v33  ;;  %4884 = vmatmul.mubr.msk.f32.vlgmr.msra.gmra.mrb[8].mxu0 %vm2643_vm6, %v4696_v25  ;;  %v4049_v46 = vsel %vm4045_vm3, %v5431_v41, %v5432_v37  ;;  %v5436_v7 = vunpack.i.l.bf16 %v6402_v38 }
 0x2d2   : > { %4993 = vmatpush1.bf16.msra.mxu0 %v4992_v63  ;;  %5075 = vmatprep.subr.bf16.mxu1 %v5074_v55  ;;  %v2570_v63 = vld [vmem:[%s6610_s11] sm:$0xff]  ;;  %v4047_v6 = vsel %vm4045_vm3, %v5396_v42, %v5397_v29  ;;  %v2991_v15 = vsel %vm2987_vm7, %v5446_v34, %v5447_v47  ;;  %v4050_v55 = vsel %vm4045_vm3, %v5416_v39, %v5406_v62 }
 0x2d3   : > { %v5400_v40 = vpop.permute.xlu0 %5399  ;;  %4995 = vmatprep.subr.bf16.mxu0 %v4994_v43  ;;  %3924 = vmatprep.mubr.f32.mxu1 %v5491_v1  ;;  %v6451_v57 = vpop.permute.xlu1 %5449  ;;  %v5086_v5 = vpack.c.bf16 %v4049_v46, %v4047_v6  ;;  %v5094_v38 = vpack.c.bf16 %v5432_v37, %v5397_v29  ;;  %v4736_v46 = vld [vmem:[%s6610_s11 + $0x78] sm:$0xff] }
 0x2d4   : > { %2872 = vmatprep.mubr.f32.mxu0 %v5491_v1  ;;  %v5402_v32 = vunpack.i.h.bf16 %v5400_v40  ;;  %v5401_v31 = vunpack.i.l.bf16 %v5400_v40  ;;  %v5451_v33 = vunpack.i.l.bf16 %v6451_v57 }
 0x2d5   : > { %5077 = vmatpush1.bf16.msra.mxu1 %v5076_v24 }
 0x2d6   : > { %4997 = vmatpush1.bf16.msra.mxu0 %v4996_v8  ;;  %5079 = vmatprep.subr.bf16.mxu1 %v5078_v60  ;;  %v4048_v9 = vsel %vm4045_vm3, %v5402_v32, %v5431_v41  ;;  %v4046_v13 = vsel %vm4045_vm3, %v5401_v31, %v5396_v42  ;;  %v2992_v41 = vsel %vm2987_vm7, %v5451_v33, %v5436_v7  ;;  %v4741_v33 = vld [vmem:[%s6610_s11 + $0x80] sm:$0xff] }
 0x2d7   : > { %v6444_v0 = vpop.permute.xlu0 %5409  ;;  %4999 = vmatprep.subr.bf16.mxu0 %v6158_v4  ;;  %v5088_v20 = vpack.c.bf16 %v4048_v9, %v4046_v13  ;;  %v6493_v49 = vpop.permute.xlu1 %5464 }
 0x2d8   : > { %4731 = vmatmul.mubr.msk.f32.vlgmr.msra.gmra.mrb[2].mxu1 %vm2643_vm6, %v4729_v19  ;;  %v5412_v8 = vunpack.i.h.bf16 %v6444_v0  ;;  %v5411_v10 = vunpack.i.l.bf16 %v6444_v0  ;;  %v5467_v36 = vunpack.i.h.bf16 %v6493_v49  ;;  %v5466_v29 = vunpack.i.l.bf16 %v6493_v49 }
 0x2d9   : > { %5081 = vmatpush3.bf16.msra.mxu1 %v5078_v60  ;;  %4701 = vmatmul.mubr.msk.f32.vlgmr.msra.gmra.mrb[4].mxu0 %vm2643_vm6, %v2570_v63  ;;  %v5452_v60 = vunpack.i.h.bf16 %v6451_v57 }
 0x2da   : > { %5001 = vmatpush3.bf16.msra.mxu0 %v6158_v4  ;;  %5083 = vmatprep.subr.bf16.mxu1 %v5082_v2  ;;  %v4053_v12 = vsel %vm4045_vm3, %v5411_v10, %v5412_v8  ;;  %v4052_v44 = vsel %vm4045_vm3, %v5417_v48, %v5411_v10  ;;  %v5098_v10 = vpack.c.bf16 %v5412_v8, %v5407_v22 }
 0x2db   : > { %v6469_v16 = vpop.permute.xlu0 %5419  ;;  %5003 = vmatprep.subr.bf16.mxu0 %v5002_v56  ;;  %3930 = vmatprep.mubr.f32.mxu1 %v5491_v1  ;;  %v5090_v28 = vpack.c.bf16 %v4053_v12, %v4051_v30  ;;  %v5092_v58 = vpack.c.bf16 %v4052_v44, %v4050_v55  ;;  %v4261_v8 = vsel %vm4257_vm8, %v5466_v29, %v5467_v36  ;;  %v4706_v12 = vld [vmem:[%s6610_s11 + $0x28] sm:$0xff] }
 0x2dc   : > { %v5422_v4 = vunpack.i.h.bf16 %v6469_v16  ;;  %v5421_v26 = vunpack.i.l.bf16 %v6469_v16  ;;  %4732 = vmatmul.mubr.msk.f32.gmra.mrb[4].mxu1 %vm2643_vm6, %v4730_v35  ;;  %2878 = vmatprep.mubr.f32.mxu0 %v5491_v1 }
 0x2dd   : > { %5085 = vmatpush3.bf16.msra.mxu1 %v5082_v2  ;;  %4949 = vmatprep.mubr.msk.f32.mxu1 %vm2643_vm6, %v4729_v19  ;;  %v2993_v2 = vsel %vm2987_vm7, %v5436_v7, %v5437_v3 }
 0x2de   : > { %5005 = vmatpush3.bf16.msra.mxu0 %v5002_v56  ;;  %5087 = vmatprep.subr.bf16.mxu1 %v5086_v5  ;;  %v2989_v25 = vsel %vm2987_vm7, %v5421_v26, %v5422_v4 }
 0x2df   : > { %v5425_v54 = vpop.permute.xlu0 %5424  ;;  %4702 = vmatmul.mubr.msk.f32.gmra.mrb[6].mxu0 %vm2643_vm6, %v2571_v59  ;;  %v5006_v11 = vpack.c.bf16 %v2991_v15, %v2989_v25 }
 0x2e0   : > { %v5427_v52 = vunpack.i.h.bf16 %v5425_v54  ;;  %v5426_v18 = vunpack.i.l.bf16 %v5425_v54  ;;  %4950 = vmatmul.mubr.msk.f32.vlgmr.msra.gmra.mrb[6].mxu1 %vm2643_vm6, %v4730_v35  ;;  %4894 = vmatprep.mubr.msk.f32.mxu0 %vm2643_vm6, %v2570_v63  ;;  %v6517_v63 = vpop.permute.xlu1 %5469 }
 0x2e1   : > { %5007 = vmatprep.subr.bf16.mxu0 %v5006_v11  ;;  %5089 = vmatpush1.bf16.msra.mxu1 %v5088_v20  ;;  %v5472_v5 = vunpack.i.h.bf16 %v6517_v63  ;;  %v5471_v9 = vunpack.i.l.bf16 %v6517_v63 }
 0x2e2   : > { %v2990_v27 = vsel %vm2987_vm7, %v5427_v52, %v5446_v34  ;;  %v2988_v43 = vsel %vm2987_vm7, %v5426_v18, %v5421_v26  ;;  %5091 = vmatprep.subr.bf16.mxu1 %v5090_v28  ;;  %4136 = vmatprep.mubr.f32.mxu1 %v5491_v1  ;;  %v5014_v34 = vpack.c.bf16 %v5447_v47, %v5422_v4  ;;  %v6634_v28 = vunpack.i.h.bf16 %v6211_v23  ;;  %v4742_v23 = vld [vmem:[%s6610_s11 + $0x88] sm:$0xff] }
 0x2e3   : > { %v5008_v24 = vpack.c.bf16 %v2990_v27, %v2988_v43  ;;  %v5440_v40 = vpop.permute.xlu0 %5439  ;;  %4895 = vmatmul.mubr.msk.f32.vlgmr.msra.gmra.mrb[8].mxu0 %vm2643_vm6, %v2571_v59  ;;  %v4263_v54 = vsel %vm4257_vm8, %v5471_v9, %v5472_v5 }
 0x2e4   : > { %v5442_v42 = vunpack.i.h.bf16 %v5440_v40  ;;  %v5441_v19 = vunpack.i.l.bf16 %v5440_v40  ;;  %3078 = vmatprep.mubr.f32.mxu0 %v5491_v1  ;;  %v5480_v53 = vpop.permute.xlu1 %5479 }
 0x2e5   : > { %5009 = vmatpush1.bf16.msra.mxu0 %v5008_v24  ;;  %5093 = vmatpush1.bf16.msra.mxu1 %v5092_v58  ;;  %v5481_v4 = vunpack.i.l.bf16 %v5480_v53  ;;  %v5482_v25 = vunpack.i.h.bf16 %v5480_v53 }
 0x2e6   : > { %v2994_v37 = vsel %vm2987_vm7, %v5452_v60, %v5441_v19  ;;  %5095 = vmatprep.subr.bf16.mxu1 %v5094_v38  ;;  %v2995_v32 = vsel %vm2987_vm7, %v5441_v19, %v5442_v42  ;;  %v5018_v13 = vpack.c.bf16 %v5442_v42, %v5437_v3  ;;  %v5034_v3 = vpack.c.bf16 %v6634_v28, %v5247_v21 }
 0x2e7   : > { %v5012_v31 = vpack.c.bf16 %v2994_v37, %v2992_v41  ;;  %v5455_v6 = vpop.permute.xlu0 %5454  ;;  %v5010_v57 = vpack.c.bf16 %v2995_v32, %v2993_v2  ;;  %v4262_v11 = vsel %vm4257_vm8, %v5481_v4, %v5471_v9 }
 0x2e8   : > { %v5457_v56 = vunpack.i.h.bf16 %v5455_v6  ;;  %v5456_v35 = vunpack.i.l.bf16 %v5455_v6  ;;  %4737 = vmatmul.mubr.msk.f32.vlgmr.msra.gmra.mrb[2].mxu1 %vm2643_vm6, %v4735_v45 }
 0x2e9   : > { %5011 = vmatprep.subr.bf16.mxu0 %v5010_v57  ;;  %5097 = vmatpush3.bf16.msra.mxu1 %v5094_v38 }
 0x2ea   : > { %5013 = vmatpush1.bf16.msra.mxu0 %v5012_v31  ;;  %5099 = vmatprep.subr.bf16.mxu1 %v5098_v10  ;;  %v4259_v0 = vsel %vm4257_vm8, %v5456_v35, %v5457_v56  ;;  %v5110_v7 = vpack.c.bf16 %v5467_v36, %v5457_v56 }
 0x2eb   : > { %v5460_v47 = vpop.permute.xlu0 %5459  ;;  %5015 = vmatprep.subr.bf16.mxu0 %v5014_v34  ;;  %4142 = vmatprep.mubr.f32.mxu1 %v5491_v1  ;;  %v5102_v22 = vpack.c.bf16 %v4261_v8, %v4259_v0 }
 0x2ec   : > { %v5462_v62 = vunpack.i.h.bf16 %v5460_v47  ;;  %v5461_v16 = vunpack.i.l.bf16 %v5460_v47  ;;  %4738 = vmatmul.mubr.msk.f32.gmra.mrb[4].mxu1 %vm2643_vm6, %v4736_v46 }
 0x2ed   : > { %4707 = vmatmul.mubr.msk.f32.vlgmr.msra.gmra.mrb[4].mxu0 %vm2643_vm6, %v4705_v17  ;;  %5101 = vmatpush3.bf16.msra.mxu1 %v5098_v10 }
 0x2ee   : > { %v4260_v26 = vsel %vm4257_vm8, %v5462_v62, %v5466_v29  ;;  %v4258_v59 = vsel %vm4257_vm8, %v5461_v16, %v5456_v35  ;;  %5017 = vmatpush3.bf16.msra.mxu0 %v5014_v34  ;;  %5103 = vmatprep.subr.bf16.mxu1 %v5102_v22 }
 0x2ef   : > { %v5104_v48 = vpack.c.bf16 %v4260_v26, %v4258_v59  ;;  %v5475_v39 = vpop.permute.xlu0 %5474  ;;  %5019 = vmatprep.subr.bf16.mxu0 %v5018_v13  ;;  %3084 = vmatprep.mubr.f32.mxu0 %v5491_v1 }
 0x2f0   : > { %v5477_v15 = vunpack.i.h.bf16 %v5475_v39  ;;  %v5476_v20 = vunpack.i.l.bf16 %v5475_v39  ;;  %4960 = vmatprep.mubr.msk.f32.mxu1 %vm2643_vm6, %v4735_v45  ;;  %v4458_v24 = vpop.permute.xlu1 %4457 }
 0x2f1   : > { %4708 = vmatmul.mubr.msk.f32.gmra.mrb[6].mxu0 %vm2643_vm6, %v4706_v12  ;;  %4961 = vmatmul.mubr.msk.f32.vlgmr.msra.gmra.mrb[6].mxu1 %vm2643_vm6, %v4736_v46 }
 0x2f2   : > { %v4264_v30 = vsel %vm4257_vm8, %v5482_v25, %v5476_v20  ;;  %5105 = vmatpush1.bf16.msra.mxu1 %v5104_v48  ;;  %5021 = vmatpush3.bf16.msra.mxu0 %v5018_v13  ;;  %v4265_v44 = vsel %vm4257_vm8, %v5476_v20, %v5477_v15  ;;  %v5114_v61 = vpack.c.bf16 %v5477_v15, %v5472_v5 }
 0x2f3   : > { %v5108_v52 = vpack.c.bf16 %v4264_v30, %v4262_v11  ;;  %5031 = vmatprep.subr.bf16.mxu0 %v6219_v50  ;;  %4905 = vmatprep.mubr.msk.f32.mxu0 %vm2643_vm6, %v4705_v17  ;;  %v5106_v18 = vpack.c.bf16 %v4265_v44, %v4263_v54 }
 0x2f4   : > { %4348 = vmatprep.mubr.f32.mxu1 %v5491_v1  ;;  %v4476_v35 = vpop.permute.xlu1 %4475 }
 0x2f5   : > { %4906 = vmatmul.mubr.msk.f32.vlgmr.msra.gmra.mrb[8].mxu0 %vm2643_vm6, %v4706_v12  ;;  %5107 = vmatprep.subr.bf16.mxu1 %v5106_v18 }
 0x2f6   : > { %5033 = vmatpush3.bf16.msra.mxu0 %v6219_v50  ;;  %5109 = vmatpush1.bf16.msra.mxu1 %v5108_v52 }
 0x2f7   : > { %5035 = vmatprep.subr.bf16.mxu0 %v5034_v3  ;;  %5111 = vmatprep.subr.bf16.mxu1 %v5110_v7 }
 0x2f8   : > { %4916 = vmatprep.mubr.msk.f32.mxu0 %vm2643_vm6, %v6264_v51 }
 0x2f9   : > { %4743 = vmatmul.mubr.msk.f32.vlgmr.msra.gmra.mrb[2].mxu1 %vm2643_vm6, %v4741_v33 }
 0x2fa   : > { %5037 = vmatpush3.bf16.msra.mxu0 %v5034_v3  ;;  %5113 = vmatpush3.bf16.msra.mxu1 %v5110_v7 }
 0x2fb   : > { %5115 = vmatprep.subr.bf16.mxu1 %v5114_v61  ;;  %4354 = vmatprep.mubr.f32.mxu1 %v5491_v1 }
 0x2fd   : > { %4917 = vmatmul.mubr.msk.f32.vlgmr.msra.gmra.mrb[8].mxu0 %vm2643_vm6, %v6279_v14  ;;  %4744 = vmatmul.mubr.msk.f32.gmra.mrb[4].mxu1 %vm2643_vm6, %v4742_v23 }
 0x2fe   : > { %5117 = vmatpush3.bf16.msra.mxu1 %v5114_v61  ;;  %4971 = vmatprep.mubr.msk.f32.mxu1 %vm2643_vm6, %v4741_v33 }
 0x300   : > { %v4453_v55 = vpop.permute.xlu0 %4452 }
 0x301   : > { %4972 = vmatmul.mubr.msk.f32.vlgmr.msra.gmra.mrb[6].mxu1 %vm2643_vm6, %v4742_v23 }
 0x304   : > { %v4471_v2 = vpop.permute.xlu0 %4470 }
 0x3c0   : > { %v3080_v50 = vpop.f32.mrb[4].mxu0 }
 0x3c1   : > { %v3082_v21 = vpop.f32.mrb[5].mxu0 }
 0x3c4   : > { %v3086_v51 = vpop.f32.mrb[6].mxu0 }
 0x3c5   : > { %v3088_v49 = vpop.f32.mrb[7].mxu0 }
 0x3cc   : > { %v4350_v27 = vpop.f32.mrb[2].mxu1 }
 0x3cd   : > { %v5118_v43 = vadd.f32 %v4350_v27, %v3080_v50  ;;  %v4352_v58 = vpop.f32.mrb[3].mxu1 }
 0x3ce   : > { %v5119_v1 = vadd.f32 %v4352_v58, %v3082_v21 }
 0x3cf   : > { %v4442_v40 = vmax.f32 %v5118_v43, 0.0 }
 0x3d0   : > { %v4443_v14 = vmax.f32 %v5119_v1, 0.0  ;;  %v4918_v38 = vpop.f32.mrb[8].mxu0  ;;  %v4356_v60 = vpop.f32.mrb[4].mxu1 }
 0x3d1   : > { %v4460_v42 = vmul.f32 %v4453_v55, %v4442_v40  ;;  %v5120_v19 = vadd.f32 %v4356_v60, %v3086_v51  ;;  %v3368_v41 = vpop.f32.mrb[9].mxu0  ;;  %v4358_v63 = vpop.f32.mrb[5].mxu1 }
 0x3d2   : > { %v4461_v45 = vmul.f32 %v4453_v55, %v4443_v14  ;;  %v5121_v36 = vadd.f32 %v4358_v63, %v3088_v49 }
 0x3d3   : > { %v4478_v29 = vadd.f32 %v4471_v2, %v4460_v42  ;;  %v4445_v37 = vmax.f32 %v5120_v19, 0.0 }
 0x3d4   : > { %v4479_v32 = vadd.f32 %v4471_v2, %v4461_v45  ;;  %v4446_v31 = vmax.f32 %v5121_v36, 0.0  ;;  %v4973_v6 = vpop.f32.mrb[6].mxu1 }
 0x3d5   : > { %4484 = vst [vmem:[%s607_s27] sm:$0xff] %v4478_v29  ;;  %v4463_v57 = vmul.f32 %v4458_v24, %v4445_v37  ;;  %v5122_v10 = vadd.f32 %v4973_v6, %v4918_v38  ;;  %v4427_v56 = vpop.f32.mrb[7].mxu1 }
 0x3d6   : > { %4485 = vst [vmem:[%s607_s27 + $0x8] sm:$0xff] %v4479_v32  ;;  %v4464_v34 = vmul.f32 %v4458_v24, %v4446_v31  ;;  %v5123_v46 = vadd.f32 %v4427_v56, %v3368_v41 }
 0x3d7   : > { %v4481_v17 = vadd.f32 %v4476_v35, %v4463_v57  ;;  %v4447_v0 = vmax.f32 %v5122_v10, 0.0 }
 0x3d8   : > { %v4482_v8 = vadd.f32 %v4476_v35, %v4464_v34  ;;  %v4444_v53 = vmax.f32 %v5123_v46, 0.0 }
 0x3d9   : > { %4487 = vst [vmem:[%s607_s27 + $0x18] sm:$0xff] %v4481_v17  ;;  %v4465_v47 = vmul.f32 %v4458_v24, %v4447_v0 }
 0x3da   : > { %4488 = vst [vmem:[%s607_s27 + $0x20] sm:$0xff] %v4482_v8  ;;  %v4462_v22 = vmul.f32 %v4453_v55, %v4444_v53 }
 0x3db   : > { %v4483_v62 = vadd.f32 %v4476_v35, %v4465_v47 }
 0x3dc   : > { %v4480_v16 = vadd.f32 %v4471_v2, %v4462_v22 }
 0x3dd   : > { %4489 = vst.msk [vmem:[%s607_s27 + $0x28] sm:$0xff] %vm2643_vm6, %v4483_v62 }
 0x3de   : > { %4486 = vst.msk [vmem:[%s607_s27 + $0x10] sm:$0xff] %vm2643_vm6, %v4480_v16 }
 0x3df PF: > { %s24_s29 = sadd.s32 1, %s5489_s29  }
 0x3e0   : > { %p21_p4 = scmp.ge.s32.totalorder %s24_s29, 4  }
 0x3e2   :  { %23 = sbr.rel (!%p21_p4) target bundleno = 1 (0x1), region = 143 }

</bundles_post_ra>
